<compile_context>
chip_gen: v7x
topology: tpu7x:2x2x1
jax: 0.10.0
libtpu: 0.0.40
codegen_flags: <defaults>
</compile_context>

<pallas_src>
import functools

import jax
import jax.numpy as jnp
from jax.experimental import pallas as pl
from jax.experimental.pallas import tpu as pltpu

K = 10          # APPNP power-iteration steps (fixed in the module)
ALPHA = 0.1     # teleport probability
LANE = 128      # TPU lane width


def _round_up(x, m):
    return (x + m - 1) // m * m


def _pad_to(a, rows, cols):
    return jnp.pad(a, ((0, rows - a.shape[0]), (0, cols - a.shape[1])))


def _vmem_budget_bytes():
    """Generation-aware VMEM budget (v5e/v6e: 128 MiB, v7x: 64 MiB physical)."""
    cap = 64 * 1024 * 1024
    try:
        info = pltpu.get_tpu_info()
        cap = int(info.vmem_capacity_bytes)
    except Exception:
        pass
    return int(cap * 0.85)   # leave headroom for compiler-internal scratch


# ---------------------------------------------------------------------------
# Small-N fast path: one program, everything VMEM resident, unrolled K-loops.
# ---------------------------------------------------------------------------
def _fused_small_kernel(x_ref, a_ref, w1_ref, b1_ref, w2_ref, b2_ref, out_ref,
                        *, alpha, k_steps):
    a = a_ref[...]                                   # bf16 (N_pad, N_pad)
    one_m_a = 1.0 - alpha

    h1 = jnp.dot(x_ref[...], w1_ref[...],
                 preferred_element_type=jnp.float32) + b1_ref[...]
    ah1 = alpha * h1
    z = h1
    for _ in range(k_steps):
        z = one_m_a * jnp.dot(a, z.astype(a.dtype),
                              preferred_element_type=jnp.float32) + ah1

    z = jnp.maximum(z, 0.0)                          # ReLU; dropout = identity (eval)

    h2 = jnp.dot(z, w2_ref[...],
                 preferred_element_type=jnp.float32) + b2_ref[...]
    ah2 = alpha * h2
    z2 = h2
    for _ in range(k_steps):
        z2 = one_m_a * jnp.dot(a, z2.astype(a.dtype),
                               preferred_element_type=jnp.float32) + ah2

    out_ref[...] = z2.astype(out_ref.dtype)


# ---------------------------------------------------------------------------
# Tiled path: grid = (2*(K+1) phases, row tiles), fused Linear+APPNP stages,
# A_hat VMEM-resident across phases when it fits.
# ---------------------------------------------------------------------------
def _fused_grid_kernel(x_ref, a_ref, w1_ref, b1_ref, w2_ref, b2_ref,
                       out_ref, z_buf, ah_buf, *rest,
                       alpha, k_steps, resident):
    a_res = rest[0] if resident else None
    p = pl.program_id(0)           # phase: 0 init1, 1..K prop1, K+1 init2, K+2..2K+1 prop2
    i = pl.program_id(1)           # row-tile index
    tm = out_ref.shape[0]
    row0 = pl.multiple_of(i * tm, tm)
    one_m_a = 1.0 - alpha

    @pl.when(p == 0)
    def _stage1_init():
        # NOTE: padded x rows are zero but still pick up b1; harmless because
        # the corresponding A_hat *columns* are zero, so padded rows never
        # contaminate real rows (padded output rows are sliced off outside).
        h = jnp.dot(x_ref[...], w1_ref[...],
                    preferred_element_type=jnp.float32) + b1_ref[...]
        z_buf[0, pl.ds(row0, tm), :] = h.astype(z_buf.dtype)
        ah_buf[pl.ds(row0, tm), :] = alpha * h

    @pl.when(p == k_steps + 1)
    def _stage2_init():
        # ReLU(z1) for this row tile, then Linear2 (dropout = identity, eval).
        z1 = jnp.maximum(
            z_buf[k_steps & 1, pl.ds(row0, tm), :].astype(jnp.float32), 0.0)
        h = jnp.dot(z1, w2_ref[...],
                    preferred_element_type=jnp.float32) + b2_ref[...]
        z_buf[0, pl.ds(row0, tm), :] = h.astype(z_buf.dtype)
        ah_buf[pl.ds(row0, tm), :] = alpha * h

    is_prop = jnp.logical_and(p != 0, p != k_steps + 1)

    @pl.when(is_prop)
    def _propagate():
        if resident:
            # Phase 1 is the only time A_hat tiles arrive from HBM; cache them.
            @pl.when(p == 1)
            def _cache_a():
                a_res[pl.ds(row0, tm), :] = a_ref[...]
            a_tile = a_res[pl.ds(row0, tm), :]
        else:
            a_tile = a_ref[...]

        k_in = jnp.where(p <= k_steps, p, p - (k_steps + 1))   # 1..K within stage
        cur = k_in & 1
        prev = 1 - cur
        z_prev = z_buf[prev]                                   # full (N_pad, F) bf16
        acc = jnp.dot(a_tile, z_prev, preferred_element_type=jnp.float32)
        # (1-alpha) applied in f32 on the accumulator (not folded into bf16 A).
        z_new = one_m_a * acc + ah_buf[pl.ds(row0, tm), :]
        z_buf[cur, pl.ds(row0, tm), :] = z_new.astype(z_buf.dtype)

        @pl.when(p == 2 * k_steps + 1)
        def _finalize():
            out_ref[...] = z_new.astype(out_ref.dtype)


# ---------------------------------------------------------------------------
# Graph / reference helpers
# ---------------------------------------------------------------------------
def build_normalized_adjacency(edge_index, num_nodes, n_pad=None):
    """Dense GCN-normalized adjacency with self-loops (PyG gcn_norm semantics).

    edge_index: (2, E) int32, row 0 = source j, row 1 = target i.
    Returns (n_pad, n_pad) f32 with A_hat[i, j] = deg[i]^-0.5 * deg[j]^-0.5.
    Padded rows/cols are zero and get no self-loops.
    TODO(synk): duplicate edges are deduplicated here (.set); PyG scatter-add
    SpMM would count them, so multigraph inputs diverge from the torch module.
    """
    if n_pad is None:
        n_pad = num_nodes
    src, dst = edge_index[0], edge_index[1]
    a = jnp.zeros((n_pad, n_pad), jnp.float32).at[dst, src].set(1.0)
    self_loops = (jnp.arange(n_pad) < num_nodes).astype(jnp.float32)
    a = a + jnp.diag(self_loops)
    deg = a.sum(axis=1)
    dinv = jnp.where(deg > 0, jax.lax.rsqrt(deg), 0.0)
    return dinv[:, None] * a * dinv[None, :]


def reference_forward(x, a_hat, w1, b1, w2, b2, *, alpha=ALPHA, k_steps=K):
    """Pure f32 JAX reference matching the PyTorch module in eval mode."""
    h = x @ w1 + b1
    z = h
    for _ in range(k_steps):
        z = (1.0 - alpha) * (a_hat @ z) + alpha * h
    z = jnp.maximum(z, 0.0)
    h2 = z @ w2 + b2
    z2 = h2
    for _ in range(k_steps):
        z2 = (1.0 - alpha) * (a_hat @ z2) + alpha * h2
    return z2


# ---------------------------------------------------------------------------
# Forward wrapper
# ---------------------------------------------------------------------------
def appnp_forward(x, edge_index, w1, b1, w2, b2, *, alpha=ALPHA, k_steps=K,
                  tm=None, force_tiled=False, force_streamed=False):
    """Full APPNP_ModelBen2 forward (eval mode)."""
    n, in_dim = x.shape
    nhid = w1.shape[1]
    out_dim = w2.shape[1]
    # One shared (lane-dense) feature width for both stages.
    f = max(_round_up(nhid, LANE), _round_up(out_dim, LANE))
    budget = _vmem_budget_bytes()

    # -------- path selection --------
    n_pad_small = _round_up(n, LANE)
    small_bytes = (2 * n_pad_small * n_pad_small          # A bf16
                   + n_pad_small * (in_dim + f) * 4       # x + out
                   + 8 * n_pad_small * f * 4              # live f32 intermediates
                   + (in_dim * f + f * f + 2 * f) * 4)    # weights
    use_small = ((not force_tiled) and n_pad_small <= 1024
                 and small_bytes <= budget)

    if use_small:
        n_pad = n_pad_small
    else:
        if tm is None:
            tm = min(512, _round_up(n, LANE))   # big row tiles amortize MXU pushes
        n_pad = _round_up(n, tm)

    # Dense GCN-normalized adjacency, bf16 for the MXU; (1-alpha) is applied in
    # f32 inside the kernel rather than folded in here.
    a_hat = build_normalized_adjacency(edge_index, n, n_pad).astype(jnp.bfloat16)
    # TODO(synk): fp8 (v7x) / int8 (v5e/v6e) quantization of A_hat for very
    # large graphs is not implemented.

    x_p = _pad_to(x.astype(jnp.float32), n_pad, in_dim)
    w1_p = _pad_to(w1.astype(jnp.float32), in_dim, f)
    b1_p = _pad_to(b1.reshape(1, -1).astype(jnp.float32), 1, f)
    w2_p = _pad_to(w2.astype(jnp.float32), f, f)
    b2_p = _pad_to(b2.reshape(1, -1).astype(jnp.float32), 1, f)

    flops = (2 * n_pad * in_dim * f + 2 * n_pad * f * f
             + 4 * k_steps * n_pad * n_pad * f)

    if use_small:
        out = pl.pallas_call(
            functools.partial(_fused_small_kernel, alpha=alpha, k_steps=k_steps),
            out_shape=jax.ShapeDtypeStruct((n_pad, f), jnp.float32),
            grid=(1,),
            in_specs=[
                pl.BlockSpec((n_pad, in_dim), lambda i: (0, 0)),
                pl.BlockSpec((n_pad, n_pad), lambda i: (0, 0)),
                pl.BlockSpec((in_dim, f), lambda i: (0, 0)),
                pl.BlockSpec((1, f), lambda i: (0, 0)),
                pl.BlockSpec((f, f), lambda i: (0, 0)),
                pl.BlockSpec((1, f), lambda i: (0, 0)),
            ],
            out_specs=pl.BlockSpec((n_pad, f), lambda i: (0, 0)),
            compiler_params=pltpu.CompilerParams(
                dimension_semantics=("arbitrary",),
                vmem_limit_bytes=budget),
            cost_estimate=pl.CostEstimate(
                flops=flops, transcendentals=0,
                bytes_accessed=2 * n_pad * n_pad + n_pad * (in_dim + f) * 4),
        )(x_p, a_hat, w1_p, b1_p, w2_p, b2_p)
        return out[:n, :out_dim]

    # -------- tiled path --------
    n_tiles = n_pad // tm
    fixed_bytes = (2 * n_pad * f * 2            # z ping-pong (bf16)
                   + n_pad * f * 4              # alpha*h (f32)
                   + 2 * tm * n_pad * 2         # streamed A double buffer
                   + 2 * tm * (in_dim + f) * 4  # x / out double buffers
                   + 2 * (in_dim * f + f * f + 2 * f) * 4)
    resident_bytes = n_pad * n_pad * 2
    resident = (not force_streamed) and (fixed_bytes + resident_bytes <= budget)

    last_phase = 2 * k_steps + 1

    def x_map(p, i):
        return (jnp.where(p == 0, i, 0), 0)

    if resident:
        def a_map(p, i):   # A_hat streamed from HBM exactly once (phase 1)
            return (jnp.where(p == 1, i, 0), 0)
    else:
        def a_map(p, i):   # A_hat re-streamed for every propagation phase
            need = jnp.logical_and(p != 0, p != k_steps + 1)
            return (jnp.where(need, i, 0), 0)

    def out_map(p, i):
        return (jnp.where(p == last_phase, i, 0), 0)

    scratch = [pltpu.VMEM((2, n_pad, f), jnp.bfloat16),   # z ping-pong
               pltpu.VMEM((n_pad, f), jnp.float32)]       # alpha*h
    if resident:
        scratch.append(pltpu.VMEM((n_pad, n_pad), jnp.bfloat16))  # resident A

    a_bytes = n_pad * n_pad * 2 * (1 if resident else 2 * k_steps)

    out = pl.pallas_call(
        functools.partial(_fused_grid_kernel, alpha=alpha, k_steps=k_steps,
                          resident=resident),
        out_shape=jax.ShapeDtypeStruct((n_pad, f), jnp.float32),
        grid=(2 * (k_steps + 1), n_tiles),
        in_specs=[
            pl.BlockSpec((tm, in_dim), x_map),
            pl.BlockSpec((tm, n_pad), a_map),
            pl.BlockSpec((in_dim, f), lambda p, i: (0, 0)),
            pl.BlockSpec((1, f), lambda p, i: (0, 0)),
            pl.BlockSpec((f, f), lambda p, i: (0, 0)),
            pl.BlockSpec((1, f), lambda p, i: (0, 0)),
        ],
        out_specs=pl.BlockSpec((tm, f), out_map),
        scratch_shapes=scratch,
        compiler_params=pltpu.CompilerParams(
            # Every propagation step reads the FULL previous z held in shared
            # VMEM scratch, so both grid axes carry a recurrence.
            # TODO(synk): v7x 2-TC split of the row-tile axis (core_map +
            # VMEM_SHARED z exchange) is not implemented.
            dimension_semantics=("arbitrary", "arbitrary"),
            vmem_limit_bytes=budget),
        cost_estimate=pl.CostEstimate(
            flops=flops, transcendentals=0,
            bytes_accessed=a_bytes + n_pad * (in_dim + f) * 4),
    )(x_p, a_hat, w1_p, b1_p, w2_p, b2_p)
    return out[:n, :out_dim]


# ---------------------------------------------------------------------------
if __name__ == "__main__":
    key = jax.random.PRNGKey(0)

    def make_inputs(k, n, in_dim, nhid, out_dim, e):
        kx, ke, kw1, kb1, kw2, kb2 = jax.random.split(k, 6)
        x = jax.random.normal(kx, (n, in_dim), jnp.float32)
        edge_index = jax.random.randint(ke, (2, e), 0, n, jnp.int32)
        bound1 = 1.0 / jnp.sqrt(in_dim)
        w1 = jax.random.uniform(kw1, (in_dim, nhid), jnp.float32, -bound1, bound1)
        b1 = jax.random.uniform(kb1, (nhid,), jnp.float32, -bound1, bound1)
        bound2 = 1.0 / jnp.sqrt(nhid)
        w2 = jax.random.uniform(kw2, (nhid, out_dim), jnp.float32, -bound2, bound2)
        b2 = jax.random.uniform(kb2, (out_dim,), jnp.float32, -bound2, bound2)
        return x, edge_index, w1, b1, w2, b2

    def check(out, x, edge_index, w1, b1, w2, b2, tag):
        a_ref_mat = build_normalized_adjacency(edge_index, x.shape[0])
        ref = reference_forward(x, a_ref_mat, w1, b1, w2, b2)
        assert out.shape == ref.shape, (tag, out.shape, ref.shape)
        err = float(jnp.max(jnp.abs(out - ref)))
        assert jnp.allclose(out, ref, atol=5e-2, rtol=5e-2), (
            f"{tag}: mismatch vs JAX reference, max abs err = {err}")

    k1, k2 = jax.random.split(key)

    # 1) Module-consistent small shape -> fused single-program fast path.
    args1 = make_inputs(k1, 32, 16, 32, 8, 64)
    out1 = jax.block_until_ready(appnp_forward(*args1))
    check(out1, *args1, tag="small fused path")

    # 2) Larger graph -> tiled path with A_hat held VMEM-resident across phases.
    args2 = make_inputs(k2, 300, 16, 32, 8, 1500)
    out2 = jax.block_until_ready(appnp_forward(*args2, tm=128, force_tiled=True))
    check(out2, *args2, tag="tiled resident-A path")

    # 3) Same graph, forcing the streamed-A fallback (very-large-N code path).
    out3 = jax.block_until_ready(
        appnp_forward(*args2, tm=128, force_tiled=True, force_streamed=True))
    check(out3, *args2, tag="tiled streamed-A path")

    print("KERNEL_OK")
</pallas_src>

<mosaic_0001>
module attributes {stable_mosaic.version = 11 : i64} {
  func.func @_fused_small_kernel(%arg0: i32, %arg1: memref<128x16xf32, #tpu.memory_space<vmem>>, %arg2: memref<128x128xbf16, #tpu.memory_space<vmem>>, %arg3: memref<16x128xf32, #tpu.memory_space<vmem>>, %arg4: memref<1x128xf32, #tpu.memory_space<vmem>>, %arg5: memref<128x128xf32, #tpu.memory_space<vmem>>, %arg6: memref<1x128xf32, #tpu.memory_space<vmem>>, %arg7: memref<128x128xf32, #tpu.memory_space<vmem>>) attributes {dimension_semantics = [#tpu.dimension_semantics<arbitrary>], iteration_bounds = array<i64: 1>, scalar_prefetch = 0 : i64, scratch_operands = 0 : i64, tpu.core_type = #tpu.core_type<tc>, window_params = [{pipeline_mode = #tpu.pipeline_mode<synchronous>, transform_indices = @transform_0, window_bounds = array<i64: 128, 16>}, {pipeline_mode = #tpu.pipeline_mode<synchronous>, transform_indices = @transform_1, window_bounds = array<i64: 128, 128>}, {pipeline_mode = #tpu.pipeline_mode<synchronous>, transform_indices = @transform_2, window_bounds = array<i64: 16, 128>}, {pipeline_mode = #tpu.pipeline_mode<synchronous>, transform_indices = @transform_3, window_bounds = array<i64: 1, 128>}, {pipeline_mode = #tpu.pipeline_mode<synchronous>, transform_indices = @transform_4, window_bounds = array<i64: 128, 128>}, {pipeline_mode = #tpu.pipeline_mode<synchronous>, transform_indices = @transform_5, window_bounds = array<i64: 1, 128>}, {pipeline_mode = #tpu.pipeline_mode<synchronous>, transform_indices = @transform_6, window_bounds = array<i64: 128, 128>}]} {
    %c0 = arith.constant 0 : index
    %c0_0 = arith.constant 0 : index
    %0 = vector.load %arg2[%c0, %c0_0] : memref<128x128xbf16, #tpu.memory_space<vmem>>, vector<128x128xbf16>
    %c0_1 = arith.constant 0 : index
    %c0_2 = arith.constant 0 : index
    %1 = vector.load %arg1[%c0_1, %c0_2] : memref<128x16xf32, #tpu.memory_space<vmem>>, vector<128x16xf32>
    %c0_3 = arith.constant 0 : index
    %c0_4 = arith.constant 0 : index
    %2 = vector.load %arg3[%c0_3, %c0_4] : memref<16x128xf32, #tpu.memory_space<vmem>>, vector<16x128xf32>
    %cst = arith.constant dense<0.000000e+00> : vector<128x128xf32>
    %3 = tpu.matmul %1, %2, %cst {dimension_numbers = #tpu.dot_dimension_numbers<[1], [0], [0], [1], [0, 0, 1, 1], [], []>} : vector<128x16xf32>, vector<16x128xf32>, vector<128x128xf32> -> vector<128x128xf32>
    %c0_5 = arith.constant 0 : index
    %c0_6 = arith.constant 0 : index
    %4 = vector.load %arg4[%c0_5, %c0_6] : memref<1x128xf32, #tpu.memory_space<vmem>>, vector<1x128xf32>
    %5 = vector.broadcast %4 : vector<1x128xf32> to vector<128x128xf32>
    %6 = arith.addf %3, %5 : vector<128x128xf32>
    %cst_7 = arith.constant 1.000000e-01 : f32
    %7 = vector.broadcast %cst_7 : f32 to vector<128x128xf32>
    %8 = arith.mulf %7, %6 : vector<128x128xf32>
    %9 = arith.truncf %6 : vector<128x128xf32> to vector<128x128xbf16>
    %cst_8 = arith.constant dense<0.000000e+00> : vector<128x128xf32>
    %10 = tpu.matmul %0, %9, %cst_8 {dimension_numbers = #tpu.dot_dimension_numbers<[1], [0], [0], [1], [0, 0, 1, 1], [], []>} : vector<128x128xbf16>, vector<128x128xbf16>, vector<128x128xf32> -> vector<128x128xf32>
    %cst_9 = arith.constant 0.899999976 : f32
    %11 = vector.broadcast %cst_9 : f32 to vector<128x128xf32>
    %12 = arith.mulf %11, %10 : vector<128x128xf32>
    %13 = arith.addf %12, %8 : vector<128x128xf32>
    %14 = arith.truncf %13 : vector<128x128xf32> to vector<128x128xbf16>
    %cst_10 = arith.constant dense<0.000000e+00> : vector<128x128xf32>
    %15 = tpu.matmul %0, %14, %cst_10 {dimension_numbers = #tpu.dot_dimension_numbers<[1], [0], [0], [1], [0, 0, 1, 1], [], []>} : vector<128x128xbf16>, vector<128x128xbf16>, vector<128x128xf32> -> vector<128x128xf32>
    %cst_11 = arith.constant 0.899999976 : f32
    %16 = vector.broadcast %cst_11 : f32 to vector<128x128xf32>
    %17 = arith.mulf %16, %15 : vector<128x128xf32>
    %18 = arith.addf %17, %8 : vector<128x128xf32>
    %19 = arith.truncf %18 : vector<128x128xf32> to vector<128x128xbf16>
    %cst_12 = arith.constant dense<0.000000e+00> : vector<128x128xf32>
    %20 = tpu.matmul %0, %19, %cst_12 {dimension_numbers = #tpu.dot_dimension_numbers<[1], [0], [0], [1], [0, 0, 1, 1], [], []>} : vector<128x128xbf16>, vector<128x128xbf16>, vector<128x128xf32> -> vector<128x128xf32>
    %cst_13 = arith.constant 0.899999976 : f32
    %21 = vector.broadcast %cst_13 : f32 to vector<128x128xf32>
    %22 = arith.mulf %21, %20 : vector<128x128xf32>
    %23 = arith.addf %22, %8 : vector<128x128xf32>
    %24 = arith.truncf %23 : vector<128x128xf32> to vector<128x128xbf16>
    %cst_14 = arith.constant dense<0.000000e+00> : vector<128x128xf32>
    %25 = tpu.matmul %0, %24, %cst_14 {dimension_numbers = #tpu.dot_dimension_numbers<[1], [0], [0], [1], [0, 0, 1, 1], [], []>} : vector<128x128xbf16>, vector<128x128xbf16>, vector<128x128xf32> -> vector<128x128xf32>
    %cst_15 = arith.constant 0.899999976 : f32
    %26 = vector.broadcast %cst_15 : f32 to vector<128x128xf32>
    %27 = arith.mulf %26, %25 : vector<128x128xf32>
    %28 = arith.addf %27, %8 : vector<128x128xf32>
    %29 = arith.truncf %28 : vector<128x128xf32> to vector<128x128xbf16>
    %cst_16 = arith.constant dense<0.000000e+00> : vector<128x128xf32>
    %30 = tpu.matmul %0, %29, %cst_16 {dimension_numbers = #tpu.dot_dimension_numbers<[1], [0], [0], [1], [0, 0, 1, 1], [], []>} : vector<128x128xbf16>, vector<128x128xbf16>, vector<128x128xf32> -> vector<128x128xf32>
    %cst_17 = arith.constant 0.899999976 : f32
    %31 = vector.broadcast %cst_17 : f32 to vector<128x128xf32>
    %32 = arith.mulf %31, %30 : vector<128x128xf32>
    %33 = arith.addf %32, %8 : vector<128x128xf32>
    %34 = arith.truncf %33 : vector<128x128xf32> to vector<128x128xbf16>
    %cst_18 = arith.constant dense<0.000000e+00> : vector<128x128xf32>
    %35 = tpu.matmul %0, %34, %cst_18 {dimension_numbers = #tpu.dot_dimension_numbers<[1], [0], [0], [1], [0, 0, 1, 1], [], []>} : vector<128x128xbf16>, vector<128x128xbf16>, vector<128x128xf32> -> vector<128x128xf32>
    %cst_19 = arith.constant 0.899999976 : f32
    %36 = vector.broadcast %cst_19 : f32 to vector<128x128xf32>
    %37 = arith.mulf %36, %35 : vector<128x128xf32>
    %38 = arith.addf %37, %8 : vector<128x128xf32>
    %39 = arith.truncf %38 : vector<128x128xf32> to vector<128x128xbf16>
    %cst_20 = arith.constant dense<0.000000e+00> : vector<128x128xf32>
    %40 = tpu.matmul %0, %39, %cst_20 {dimension_numbers = #tpu.dot_dimension_numbers<[1], [0], [0], [1], [0, 0, 1, 1], [], []>} : vector<128x128xbf16>, vector<128x128xbf16>, vector<128x128xf32> -> vector<128x128xf32>
    %cst_21 = arith.constant 0.899999976 : f32
    %41 = vector.broadcast %cst_21 : f32 to vector<128x128xf32>
    %42 = arith.mulf %41, %40 : vector<128x128xf32>
    %43 = arith.addf %42, %8 : vector<128x128xf32>
    %44 = arith.truncf %43 : vector<128x128xf32> to vector<128x128xbf16>
    %cst_22 = arith.constant dense<0.000000e+00> : vector<128x128xf32>
    %45 = tpu.matmul %0, %44, %cst_22 {dimension_numbers = #tpu.dot_dimension_numbers<[1], [0], [0], [1], [0, 0, 1, 1], [], []>} : vector<128x128xbf16>, vector<128x128xbf16>, vector<128x128xf32> -> vector<128x128xf32>
    %cst_23 = arith.constant 0.899999976 : f32
    %46 = vector.broadcast %cst_23 : f32 to vector<128x128xf32>
    %47 = arith.mulf %46, %45 : vector<128x128xf32>
    %48 = arith.addf %47, %8 : vector<128x128xf32>
    %49 = arith.truncf %48 : vector<128x128xf32> to vector<128x128xbf16>
    %cst_24 = arith.constant dense<0.000000e+00> : vector<128x128xf32>
    %50 = tpu.matmul %0, %49, %cst_24 {dimension_numbers = #tpu.dot_dimension_numbers<[1], [0], [0], [1], [0, 0, 1, 1], [], []>} : vector<128x128xbf16>, vector<128x128xbf16>, vector<128x128xf32> -> vector<128x128xf32>
    %cst_25 = arith.constant 0.899999976 : f32
    %51 = vector.broadcast %cst_25 : f32 to vector<128x128xf32>
    %52 = arith.mulf %51, %50 : vector<128x128xf32>
    %53 = arith.addf %52, %8 : vector<128x128xf32>
    %54 = arith.truncf %53 : vector<128x128xf32> to vector<128x128xbf16>
    %cst_26 = arith.constant dense<0.000000e+00> : vector<128x128xf32>
    %55 = tpu.matmul %0, %54, %cst_26 {dimension_numbers = #tpu.dot_dimension_numbers<[1], [0], [0], [1], [0, 0, 1, 1], [], []>} : vector<128x128xbf16>, vector<128x128xbf16>, vector<128x128xf32> -> vector<128x128xf32>
    %cst_27 = arith.constant 0.899999976 : f32
    %56 = vector.broadcast %cst_27 : f32 to vector<128x128xf32>
    %57 = arith.mulf %56, %55 : vector<128x128xf32>
    %58 = arith.addf %57, %8 : vector<128x128xf32>
    %cst_28 = arith.constant 0.000000e+00 : f32
    %59 = vector.broadcast %cst_28 : f32 to vector<128x128xf32>
    %60 = arith.maximumf %58, %59 : vector<128x128xf32>
    %c0_29 = arith.constant 0 : index
    %c0_30 = arith.constant 0 : index
    %61 = vector.load %arg5[%c0_29, %c0_30] : memref<128x128xf32, #tpu.memory_space<vmem>>, vector<128x128xf32>
    %cst_31 = arith.constant dense<0.000000e+00> : vector<128x128xf32>
    %62 = tpu.matmul %60, %61, %cst_31 {dimension_numbers = #tpu.dot_dimension_numbers<[1], [0], [0], [1], [0, 0, 1, 1], [], []>} : vector<128x128xf32>, vector<128x128xf32>, vector<128x128xf32> -> vector<128x128xf32>
    %c0_32 = arith.constant 0 : index
    %c0_33 = arith.constant 0 : index
    %63 = vector.load %arg6[%c0_32, %c0_33] : memref<1x128xf32, #tpu.memory_space<vmem>>, vector<1x128xf32>
    %64 = vector.broadcast %63 : vector<1x128xf32> to vector<128x128xf32>
    %65 = arith.addf %62, %64 : vector<128x128xf32>
    %cst_34 = arith.constant 1.000000e-01 : f32
    %66 = vector.broadcast %cst_34 : f32 to vector<128x128xf32>
    %67 = arith.mulf %66, %65 : vector<128x128xf32>
    %68 = arith.truncf %65 : vector<128x128xf32> to vector<128x128xbf16>
    %cst_35 = arith.constant dense<0.000000e+00> : vector<128x128xf32>
    %69 = tpu.matmul %0, %68, %cst_35 {dimension_numbers = #tpu.dot_dimension_numbers<[1], [0], [0], [1], [0, 0, 1, 1], [], []>} : vector<128x128xbf16>, vector<128x128xbf16>, vector<128x128xf32> -> vector<128x128xf32>
    %cst_36 = arith.constant 0.899999976 : f32
    %70 = vector.broadcast %cst_36 : f32 to vector<128x128xf32>
    %71 = arith.mulf %70, %69 : vector<128x128xf32>
    %72 = arith.addf %71, %67 : vector<128x128xf32>
    %73 = arith.truncf %72 : vector<128x128xf32> to vector<128x128xbf16>
    %cst_37 = arith.constant dense<0.000000e+00> : vector<128x128xf32>
    %74 = tpu.matmul %0, %73, %cst_37 {dimension_numbers = #tpu.dot_dimension_numbers<[1], [0], [0], [1], [0, 0, 1, 1], [], []>} : vector<128x128xbf16>, vector<128x128xbf16>, vector<128x128xf32> -> vector<128x128xf32>
    %cst_38 = arith.constant 0.899999976 : f32
    %75 = vector.broadcast %cst_38 : f32 to vector<128x128xf32>
    %76 = arith.mulf %75, %74 : vector<128x128xf32>
    %77 = arith.addf %76, %67 : vector<128x128xf32>
    %78 = arith.truncf %77 : vector<128x128xf32> to vector<128x128xbf16>
    %cst_39 = arith.constant dense<0.000000e+00> : vector<128x128xf32>
    %79 = tpu.matmul %0, %78, %cst_39 {dimension_numbers = #tpu.dot_dimension_numbers<[1], [0], [0], [1], [0, 0, 1, 1], [], []>} : vector<128x128xbf16>, vector<128x128xbf16>, vector<128x128xf32> -> vector<128x128xf32>
    %cst_40 = arith.constant 0.899999976 : f32
    %80 = vector.broadcast %cst_40 : f32 to vector<128x128xf32>
    %81 = arith.mulf %80, %79 : vector<128x128xf32>
    %82 = arith.addf %81, %67 : vector<128x128xf32>
    %83 = arith.truncf %82 : vector<128x128xf32> to vector<128x128xbf16>
    %cst_41 = arith.constant dense<0.000000e+00> : vector<128x128xf32>
    %84 = tpu.matmul %0, %83, %cst_41 {dimension_numbers = #tpu.dot_dimension_numbers<[1], [0], [0], [1], [0, 0, 1, 1], [], []>} : vector<128x128xbf16>, vector<128x128xbf16>, vector<128x128xf32> -> vector<128x128xf32>
    %cst_42 = arith.constant 0.899999976 : f32
    %85 = vector.broadcast %cst_42 : f32 to vector<128x128xf32>
    %86 = arith.mulf %85, %84 : vector<128x128xf32>
    %87 = arith.addf %86, %67 : vector<128x128xf32>
    %88 = arith.truncf %87 : vector<128x128xf32> to vector<128x128xbf16>
    %cst_43 = arith.constant dense<0.000000e+00> : vector<128x128xf32>
    %89 = tpu.matmul %0, %88, %cst_43 {dimension_numbers = #tpu.dot_dimension_numbers<[1], [0], [0], [1], [0, 0, 1, 1], [], []>} : vector<128x128xbf16>, vector<128x128xbf16>, vector<128x128xf32> -> vector<128x128xf32>
    %cst_44 = arith.constant 0.899999976 : f32
    %90 = vector.broadcast %cst_44 : f32 to vector<128x128xf32>
    %91 = arith.mulf %90, %89 : vector<128x128xf32>
    %92 = arith.addf %91, %67 : vector<128x128xf32>
    %93 = arith.truncf %92 : vector<128x128xf32> to vector<128x128xbf16>
    %cst_45 = arith.constant dense<0.000000e+00> : vector<128x128xf32>
    %94 = tpu.matmul %0, %93, %cst_45 {dimension_numbers = #tpu.dot_dimension_numbers<[1], [0], [0], [1], [0, 0, 1, 1], [], []>} : vector<128x128xbf16>, vector<128x128xbf16>, vector<128x128xf32> -> vector<128x128xf32>
    %cst_46 = arith.constant 0.899999976 : f32
    %95 = vector.broadcast %cst_46 : f32 to vector<128x128xf32>
    %96 = arith.mulf %95, %94 : vector<128x128xf32>
    %97 = arith.addf %96, %67 : vector<128x128xf32>
    %98 = arith.truncf %97 : vector<128x128xf32> to vector<128x128xbf16>
    %cst_47 = arith.constant dense<0.000000e+00> : vector<128x128xf32>
    %99 = tpu.matmul %0, %98, %cst_47 {dimension_numbers = #tpu.dot_dimension_numbers<[1], [0], [0], [1], [0, 0, 1, 1], [], []>} : vector<128x128xbf16>, vector<128x128xbf16>, vector<128x128xf32> -> vector<128x128xf32>
    %cst_48 = arith.constant 0.899999976 : f32
    %100 = vector.broadcast %cst_48 : f32 to vector<128x128xf32>
    %101 = arith.mulf %100, %99 : vector<128x128xf32>
    %102 = arith.addf %101, %67 : vector<128x128xf32>
    %103 = arith.truncf %102 : vector<128x128xf32> to vector<128x128xbf16>
    %cst_49 = arith.constant dense<0.000000e+00> : vector<128x128xf32>
    %104 = tpu.matmul %0, %103, %cst_49 {dimension_numbers = #tpu.dot_dimension_numbers<[1], [0], [0], [1], [0, 0, 1, 1], [], []>} : vector<128x128xbf16>, vector<128x128xbf16>, vector<128x128xf32> -> vector<128x128xf32>
    %cst_50 = arith.constant 0.899999976 : f32
    %105 = vector.broadcast %cst_50 : f32 to vector<128x128xf32>
    %106 = arith.mulf %105, %104 : vector<128x128xf32>
    %107 = arith.addf %106, %67 : vector<128x128xf32>
    %108 = arith.truncf %107 : vector<128x128xf32> to vector<128x128xbf16>
    %cst_51 = arith.constant dense<0.000000e+00> : vector<128x128xf32>
    %109 = tpu.matmul %0, %108, %cst_51 {dimension_numbers = #tpu.dot_dimension_numbers<[1], [0], [0], [1], [0, 0, 1, 1], [], []>} : vector<128x128xbf16>, vector<128x128xbf16>, vector<128x128xf32> -> vector<128x128xf32>
    %cst_52 = arith.constant 0.899999976 : f32
    %110 = vector.broadcast %cst_52 : f32 to vector<128x128xf32>
    %111 = arith.mulf %110, %109 : vector<128x128xf32>
    %112 = arith.addf %111, %67 : vector<128x128xf32>
    %113 = arith.truncf %112 : vector<128x128xf32> to vector<128x128xbf16>
    %cst_53 = arith.constant dense<0.000000e+00> : vector<128x128xf32>
    %114 = tpu.matmul %0, %113, %cst_53 {dimension_numbers = #tpu.dot_dimension_numbers<[1], [0], [0], [1], [0, 0, 1, 1], [], []>} : vector<128x128xbf16>, vector<128x128xbf16>, vector<128x128xf32> -> vector<128x128xf32>
    %cst_54 = arith.constant 0.899999976 : f32
    %115 = vector.broadcast %cst_54 : f32 to vector<128x128xf32>
    %116 = arith.mulf %115, %114 : vector<128x128xf32>
    %117 = arith.addf %116, %67 : vector<128x128xf32>
    %c0_55 = arith.constant 0 : index
    %c0_56 = arith.constant 0 : index
    %118 = vector.load %arg7[%c0_55, %c0_56] : memref<128x128xf32, #tpu.memory_space<vmem>>, vector<128x128xf32>
    tpu.vector_store %arg7[%c0_55, %c0_56], %117 {strides = array<i32>} : memref<128x128xf32, #tpu.memory_space<vmem>>, vector<128x128xf32>,
    return
  }
  func.func @transform_0(%arg0: i32) -> (i32, i32) {
    %c0_i32 = arith.constant 0 : i32
    %c0_i32_0 = arith.constant 0 : i32
    %c0_i32_1 = arith.constant 0 : i32
    return %c0_i32, %c0_i32_0 : i32, i32
  }
  func.func @transform_1(%arg0: i32) -> (i32, i32) {
    %c0_i32 = arith.constant 0 : i32
    %c0_i32_0 = arith.constant 0 : i32
    %c0_i32_1 = arith.constant 0 : i32
    return %c0_i32, %c0_i32_0 : i32, i32
  }
  func.func @transform_2(%arg0: i32) -> (i32, i32) {
    %c0_i32 = arith.constant 0 : i32
    %c0_i32_0 = arith.constant 0 : i32
    %c0_i32_1 = arith.constant 0 : i32
    return %c0_i32, %c0_i32_0 : i32, i32
  }
  func.func @transform_3(%arg0: i32) -> (i32, i32) {
    %c0_i32 = arith.constant 0 : i32
    %c0_i32_0 = arith.constant 0 : i32
    %c0_i32_1 = arith.constant 0 : i32
    return %c0_i32, %c0_i32_0 : i32, i32
  }
  func.func @transform_4(%arg0: i32) -> (i32, i32) {
    %c0_i32 = arith.constant 0 : i32
    %c0_i32_0 = arith.constant 0 : i32
    %c0_i32_1 = arith.constant 0 : i32
    return %c0_i32, %c0_i32_0 : i32, i32
  }
  func.func @transform_5(%arg0: i32) -> (i32, i32) {
    %c0_i32 = arith.constant 0 : i32
    %c0_i32_0 = arith.constant 0 : i32
    %c0_i32_1 = arith.constant 0 : i32
    return %c0_i32, %c0_i32_0 : i32, i32
  }
  func.func @transform_6(%arg0: i32) -> (i32, i32) {
    %c0_i32 = arith.constant 0 : i32
    %c0_i32_0 = arith.constant 0 : i32
    %c0_i32_1 = arith.constant 0 : i32
    return %c0_i32, %c0_i32_0 : i32, i32
  }
}

</mosaic_0001>

<bundles_post_ra>
// kernel: tpu_custom_call.1
= control target key start
LH: loop header
LB: loop body
LE: loop exit
PB: predicated region body
PF: predicated region fallthrough
CT: control target
= control target key end

     0   :  { %11 = vsyncpa [#allocation3], 0  ;;  %s5462_s0 = inlined_call_operand.vmem [shape: f32[128,16], index: 0, kind: input, shape index: {}]   ;;  %s5463_s1 = inlined_call_operand.hbm [shape: bf16[128,128], index: 1, kind: input, shape index: {}]   ;;  %s5464_s2 = inlined_call_operand.vmem [shape: f32[16,128], index: 2, kind: input, shape index: {}]   ;;  %s5465_s3 = inlined_call_operand.vmem [shape: f32[1,128], index: 3, kind: input, shape index: {}]   ;;  %s5466_s4 = inlined_call_operand.vmem [shape: f32[128,128], index: 4, kind: input, shape index: {}]   ;;  %s5467_s5 = inlined_call_operand.vmem [shape: f32[1,128], index: 5, kind: input, shape index: {}]   ;;  %s5468_s6 = inlined_call_operand.hbm [shape: f32[128,128], index: 6, kind: output, shape index: {}]  }
   0x1   :  { %12 = vsyncpa [#allocation4], 0  ;;  %s4568_s21 = smov [#allocation2]   ;;  %s4520_s25 = scalar_lea.hbm %s5463_s1, 1024 }
   0x2   :  { %s20_s22 = sshll.u32 %s4568_s21, 4  ;;  %p4521_p0 = scmp.ne.s32.totalorder %s5463_s1, %s4520_s25  ;;  %s21_s22 = int_to_ptr.vmem [resolvable:$true] %s20_s22 }
   0x3   :  { %p4524_p1 = scmp.lt.u32.totalorder %s4520_s25, %s5463_s1 }
   0x5   :  { %p4526_p2 = pnand %p4524_p1, %p4521_p0 }
   0x7   :  { %4529 = shalt.err (!%p4526_p2)
}
   0x8   :  { %s4530_s30 = scalar_lea.vmem %s21_s22, 1024  ;;  %p4535_p4 = scmp.lt.s32.totalorder %s21_s22, %s21_s22 }
   0x9   :  { %p4531_p3 = scmp.ne.s32.totalorder %s21_s22, %s4530_s30  ;;  %p4536_p5 = scmp.lt.s32.totalorder %s4530_s30, %s4530_s30 }
   0xb   :  { %p4537_p6 = por %p4536_p5, %p4535_p4 }
   0xd   :  { %p4538_p7 = pnand %p4537_p6, %p4531_p3 }
   0xf   :  { %4541 = shalt.err (!%p4538_p7)
}
  0x10   :  { %s4569_s7 = smov 64   ;;  %s4570_s8 = smov 4  }
  0x11   :  { %26 = dma.hbm_to_vmem [thread:$0]  %s5463_s1, 1024, %s21_s22, [#allocation3], %s4569_s7, %s4569_s7, %s4570_s8  }
  0x12   :  { %4564 = dma.done.wait [#allocation3], 1024  }
  0x13   :  { %4565 = vsyncadd [#allocation3], 4294966272  ;;  %vm80_vm0 = vcmask 130048   ;;  %v71_v0 = vld [vmem:[%s5464_s2] sm:$0xff]  ;;  %v72_v1 = vld [vmem:[%s5464_s2 + $0x8] sm:$0xff] }
  0x14   :  { %v55_v2 = vld [vmem:[%s5462_s0] sm:$0xff]  ;;  %v4431_v3 = vpack.c.bf16 %v72_v1, %v71_v0  ;;  %v56_v4 = vld [vmem:[%s5462_s0 + $0x8] sm:$0xff]  ;;  %v57_v5 = vld [vmem:[%s5462_s0 + $0x10] sm:$0xff] }
  0x15   :  { %3711 = vmatprep.mubr.msk.f32.mxu0 %vm80_vm0, %v55_v2  ;;  %v58_v6 = vld [vmem:[%s5462_s0 + $0x18] sm:$0xff]  ;;  %v59_v7 = vld [vmem:[%s5462_s0 + $0x20] sm:$0xff]  ;;  %v60_v8 = vld [vmem:[%s5462_s0 + $0x28] sm:$0xff] }
  0x16   :  { %4432 = vmatprep.subr.bf16.mxu0 %v4431_v3  ;;  %v61_v9 = vld [vmem:[%s5462_s0 + $0x30] sm:$0xff]  ;;  %v62_v10 = vld [vmem:[%s5462_s0 + $0x38] sm:$0xff]  ;;  %v63_v11 = vld [vmem:[%s5462_s0 + $0x40] sm:$0xff] }
  0x17   :  { %4434 = vmatpush3.bf16.msra.mxu0 %v4431_v3  ;;  %v64_v12 = vld [vmem:[%s5462_s0 + $0x48] sm:$0xff]  ;;  %v65_v13 = vld [vmem:[%s5462_s0 + $0x50] sm:$0xff]  ;;  %v66_v14 = vld [vmem:[%s5462_s0 + $0x58] sm:$0xff] }
  0x18   :  { %v67_v15 = vld [vmem:[%s5462_s0 + $0x60] sm:$0xff]  ;;  %v68_v16 = vld [vmem:[%s5462_s0 + $0x68] sm:$0xff]  ;;  %v69_v17 = vld [vmem:[%s5462_s0 + $0x70] sm:$0xff] }
  0x19   :  { %v70_v18 = vld [vmem:[%s5462_s0 + $0x78] sm:$0xff]  ;;  %v4691_v19 = vld [vmem:[#allocation2] sm:$0xff]   ;;  %v4746_v61 = vld [vmem:[#allocation2 + $0x8] sm:$0xff]  }
  0x1a   :  { %3712 = vmatmul.mubr.msk.f32.vlgmr.msra.gmra.mrb[0].mxu0 %vm80_vm0, %v56_v4  ;;  %3751 = vmatprep.mubr.bf16.mxu1 %v4691_v19  ;;  %v3311_v20 = vld [vmem:[%s5465_s3] ss:$0 sm:$0xff]  ;;  %v4748_v62 = vld [vmem:[#allocation2 + $0x10] sm:$0xff]   ;;  %v4752_v63 = vld [vmem:[#allocation2 + $0x18] sm:$0xff]  }
  0x1b   :  { %3714 = vmatprep.mubr.msk.f32.mxu0 %vm80_vm0, %v57_v5  ;;  %v4754_v0 = vld [vmem:[#allocation2 + $0x20] sm:$0xff]   ;;  %v4758_v1 = vld [vmem:[#allocation2 + $0x28] sm:$0xff]   ;;  %v4760_v2 = vld [vmem:[#allocation2 + $0x30] sm:$0xff]  }
  0x1c   :  { %v4764_v3 = vld [vmem:[#allocation2 + $0x38] sm:$0xff]  }
  0x1e   :  { %3715 = vmatmul.mubr.msk.f32.gmra.mrb[2].mxu0 %vm80_vm0, %v58_v6 }
  0x1f   :  { %3717 = vmatprep.mubr.msk.f32.mxu0 %vm80_vm0, %v59_v7 }
  0x22   :  { %3718 = vmatmul.mubr.msk.f32.gmra.mrb[4].mxu0 %vm80_vm0, %v60_v8 }
  0x23   :  { %3720 = vmatprep.mubr.msk.f32.mxu0 %vm80_vm0, %v61_v9 }
  0x26   :  { %3721 = vmatmul.mubr.msk.f32.gmra.mrb[6].mxu0 %vm80_vm0, %v62_v10 }
  0x27   :  { %3723 = vmatprep.mubr.msk.f32.mxu0 %vm80_vm0, %v63_v11 }
  0x2a   :  { %3724 = vmatmul.mubr.msk.f32.gmra.mrb[8].mxu0 %vm80_vm0, %v64_v12 }
  0x2b   :  { %3726 = vmatprep.mubr.msk.f32.mxu0 %vm80_vm0, %v65_v13 }
  0x2e   :  { %3727 = vmatmul.mubr.msk.f32.gmra.mrb[10].mxu0 %vm80_vm0, %v66_v14 }
  0x2f   :  { %3729 = vmatprep.mubr.msk.f32.mxu0 %vm80_vm0, %v67_v15 }
  0x32   :  { %3730 = vmatmul.mubr.msk.f32.gmra.mrb[12].mxu0 %vm80_vm0, %v68_v16 }
  0x33   :  { %3732 = vmatprep.mubr.msk.f32.mxu0 %vm80_vm0, %v69_v17 }
  0x36   :  { %3733 = vmatmul.mubr.msk.f32.gmra.mrb[14].mxu0 %vm80_vm0, %v70_v18 }
  0x37   :  { %3783 = vmatprep.mubr.bf16.mxu0 %v4691_v19 }
  0xed   :  { %v3713_v21 = vpop.f32.mrb[0].mxu0 }
  0xee   :  { %v4698_v22 = vadd.f32 %v3713_v21, %v3311_v20  ;;  %v195_v23 = vpop.f32.mrb[1].mxu0 }
  0xef   :  { %v4700_v24 = vadd.f32 %v3311_v20, %v195_v23 }
  0xf0   :  { %v4775_v13 = vmul.f32 0.1, %v4698_v22 }
  0xf1   :  { %v3716_v25 = vpop.f32.mrb[2].mxu0  ;;  %v290_v26 = vpack.c.bf16 %v4698_v22, %v4700_v24  ;;  %v4778_v14 = vmul.f32 0.1, %v4700_v24 }
  0xf2   :  { %v4704_v27 = vadd.f32 %v3716_v25, %v3311_v20  ;;  %v205_v28 = vpop.f32.mrb[3].mxu0 }
  0xf3   :  { %v4706_v29 = vadd.f32 %v3311_v20, %v205_v28  ;;  %3735 = vmatprep.subr.bf16.mxu1 %v290_v26 }
  0xf4   :  { %3736 = vmatpush3.bf16.msra.mxu1 %v290_v26  ;;  %v4769_v7 = vmul.f32 0.1, %v4704_v27 }
  0xf5   :  { %v291_v30 = vpack.c.bf16 %v4704_v27, %v4706_v29  ;;  %v3719_v31 = vpop.f32.mrb[4].mxu0  ;;  %v4772_v10 = vmul.f32 0.1, %v4706_v29 }
  0xf6   :  { %v4710_v32 = vadd.f32 %v3719_v31, %v3311_v20  ;;  %v215_v33 = vpop.f32.mrb[5].mxu0 }
  0xf7   :  { %v4712_v34 = vadd.f32 %v3311_v20, %v215_v33  ;;  %3737 = vmatprep.subr.bf16.mxu1 %v291_v30 }
  0xf8   :  { %3738 = vmatpush3.bf16.msra.mxu1 %v291_v30  ;;  %v4791_v33 = vmul.f32 0.1, %v4710_v32 }
  0xf9   :  { %v292_v35 = vpack.c.bf16 %v4710_v32, %v4712_v34  ;;  %v3722_v36 = vpop.f32.mrb[6].mxu0 }
  0xfa   :  { %v4716_v37 = vadd.f32 %v3722_v36, %v3311_v20  ;;  %v225_v38 = vpop.f32.mrb[7].mxu0 }
  0xfb   :  { %v4718_v39 = vadd.f32 %v3311_v20, %v225_v38  ;;  %3739 = vmatprep.subr.bf16.mxu1 %v292_v35 }
  0xfc   :  { %3740 = vmatpush3.bf16.msra.mxu1 %v292_v35  ;;  %v4785_v22 = vmul.f32 0.1, %v4716_v37  ;;  %v4794_v35 = vmul.f32 0.1, %v4712_v34 }
  0xfd   :  { %v293_v40 = vpack.c.bf16 %v4716_v37, %v4718_v39  ;;  %v3725_v41 = vpop.f32.mrb[8].mxu0  ;;  %v4788_v29 = vmul.f32 0.1, %v4718_v39 }
  0xfe   :  { %v4722_v42 = vadd.f32 %v3725_v41, %v3311_v20  ;;  %v235_v43 = vpop.f32.mrb[9].mxu0 }
  0xff   :  { %v4724_v44 = vadd.f32 %v3311_v20, %v235_v43  ;;  %3741 = vmatprep.subr.bf16.mxu1 %v293_v40 }
 0x100   :  { %3742 = vmatpush3.bf16.msra.mxu1 %v293_v40 }
 0x101   :  { %v294_v45 = vpack.c.bf16 %v4722_v42, %v4724_v44  ;;  %v3728_v46 = vpop.f32.mrb[10].mxu0 }
 0x102   :  { %v4728_v47 = vadd.f32 %v3728_v46, %v3311_v20  ;;  %v245_v48 = vpop.f32.mrb[11].mxu0 }
 0x103   :  { %v4730_v49 = vadd.f32 %v3311_v20, %v245_v48  ;;  %3743 = vmatprep.subr.bf16.mxu1 %v294_v45 }
 0x104   :  { %3744 = vmatpush3.bf16.msra.mxu1 %v294_v45  ;;  %v4801_v48 = vmul.f32 0.1, %v4728_v47 }
 0x105   :  { %v295_v50 = vpack.c.bf16 %v4728_v47, %v4730_v49  ;;  %v3731_v51 = vpop.f32.mrb[12].mxu0 }
 0x106   :  { %v4734_v52 = vadd.f32 %v3731_v51, %v3311_v20  ;;  %v255_v53 = vpop.f32.mrb[13].mxu0  ;;  %v4804_v51 = vmul.f32 0.1, %v4730_v49 }
 0x107   :  { %v4736_v54 = vadd.f32 %v3311_v20, %v255_v53  ;;  %3745 = vmatprep.subr.bf16.mxu1 %v295_v50 }
 0x108   :  { %3746 = vmatpush3.bf16.msra.mxu1 %v295_v50 }
 0x109   :  { %v296_v55 = vpack.c.bf16 %v4734_v52, %v4736_v54  ;;  %v3734_v56 = vpop.f32.mrb[14].mxu0 }
 0x10a   :  { %v4740_v57 = vadd.f32 %v3734_v56, %v3311_v20  ;;  %v265_v58 = vpop.f32.mrb[15].mxu0  ;;  %v4807_v56 = vmul.f32 0.1, %v4722_v42 }
 0x10b   :  { %v4742_v59 = vadd.f32 %v3311_v20, %v265_v58  ;;  %3747 = vmatprep.subr.bf16.mxu1 %v296_v55  ;;  %v4810_v58 = vmul.f32 0.1, %v4724_v44 }
 0x10c   :  { %3748 = vmatpush3.bf16.msra.mxu1 %v296_v55 }
 0x10d   :  { %v297_v60 = vpack.c.bf16 %v4740_v57, %v4742_v59 }
 0x10f   :  { %3749 = vmatprep.subr.bf16.mxu1 %v297_v60 }
 0x110   :  { %3750 = vmatpush3.bf16.msra.mxu1 %v297_v60 }
 0x113   :  { %3752 = vmatmul.mubr.bf16.vlgmr.msra.gmra.mrb[0].mxu1 %v4746_v61 }
 0x114   :  { %3755 = vmatprep.mubr.bf16.mxu1 %v4748_v62 }
 0x11b   :  { %3756 = vmatmul.mubr.bf16.gmra.mrb[4].mxu1 %v4752_v63 }
 0x11c   :  { %3759 = vmatprep.mubr.bf16.mxu1 %v4754_v0 }
 0x123   :  { %3760 = vmatmul.mubr.bf16.gmra.mrb[8].mxu1 %v4758_v1 }
 0x124   :  { %3763 = vmatprep.mubr.bf16.mxu1 %v4760_v2 }
 0x12b   :  { %3764 = vmatmul.mubr.bf16.gmra.mrb[12].mxu1 %v4764_v3 }
 0x12c   :  { %3815 = vmatprep.mubr.bf16.mxu1 %v4691_v19 }
 0x1e6   :  { %v3753_v4 = vpop.f32.mrb[0].mxu1 }
 0x1e7   :  { %v445_v5 = vmul.f32 0.9, %v3753_v4  ;;  %v380_v6 = vpop.f32.mrb[1].mxu1 }
 0x1e8   :  { %v443_v8 = vmul.f32 0.9, %v380_v6  ;;  %v3754_v9 = vpop.f32.mrb[2].mxu1 }
 0x1e9   :  { %v446_v11 = vmul.f32 0.9, %v3754_v9  ;;  %v383_v12 = vpop.f32.mrb[3].mxu1  ;;  %v461_v16 = vadd.f32 %v445_v5, %v4772_v10 }
 0x1ea   :  { %v444_v15 = vmul.f32 0.9, %v383_v12  ;;  %v459_v18 = vadd.f32 %v443_v8, %v4778_v14  ;;  %v4817_v12 = vmul.f32 0.1, %v4740_v57 }
 0x1eb   :  { %v462_v17 = vadd.f32 %v446_v11, %v4769_v7 }
 0x1ec   :  { %v460_v20 = vadd.f32 %v444_v15, %v4775_v13 }
 0x1ed   :  { %v476_v21 = vpack.c.bf16 %v462_v17, %v461_v16  ;;  %v4820_v16 = vmul.f32 0.1, %v4742_v59 }
 0x1ee   :  { %v3757_v23 = vpop.f32.mrb[4].mxu1  ;;  %v475_v25 = vpack.c.bf16 %v460_v20, %v459_v18  ;;  %v4823_v20 = vmul.f32 0.1, %v4734_v52 }
 0x1ef   :  { %v449_v26 = vmul.f32 0.9, %v3757_v23  ;;  %v396_v27 = vpop.f32.mrb[5].mxu1 }
 0x1f0   :  { %v447_v28 = vmul.f32 0.9, %v396_v27  ;;  %v3758_v24 = vpop.f32.mrb[6].mxu1  ;;  %3767 = vmatprep.subr.bf16.mxu0 %v475_v25 }
 0x1f1   :  { %v450_v30 = vmul.f32 0.9, %v3758_v24  ;;  %v399_v31 = vpop.f32.mrb[7].mxu1  ;;  %3768 = vmatpush3.bf16.msra.mxu0 %v475_v25  ;;  %v465_v37 = vadd.f32 %v449_v26, %v4788_v29 }
 0x1f2   :  { %v448_v36 = vmul.f32 0.9, %v399_v31  ;;  %3769 = vmatprep.subr.bf16.mxu0 %v476_v21  ;;  %v463_v40 = vadd.f32 %v447_v28, %v4794_v35 }
 0x1f3   :  { %v466_v38 = vadd.f32 %v450_v30, %v4785_v22 }
 0x1f4   :  { %v464_v39 = vadd.f32 %v448_v36, %v4791_v33 }
 0x1f5   :  { %3770 = vmatpush3.bf16.msra.mxu0 %v476_v21  ;;  %v478_v41 = vpack.c.bf16 %v466_v38, %v465_v37  ;;  %v4826_v21 = vmul.f32 0.1, %v4736_v54 }
 0x1f6   :  { %v3761_v43 = vpop.f32.mrb[8].mxu1  ;;  %v477_v45 = vpack.c.bf16 %v464_v39, %v463_v40 }
 0x1f7   :  { %v453_v46 = vmul.f32 0.9, %v3761_v43  ;;  %v412_v32 = vpop.f32.mrb[9].mxu1 }
 0x1f8   :  { %v451_v34 = vmul.f32 0.9, %v412_v32  ;;  %v3762_v50 = vpop.f32.mrb[10].mxu1  ;;  %3771 = vmatprep.subr.bf16.mxu0 %v477_v45 }
 0x1f9   :  { %v454_v53 = vmul.f32 0.9, %v3762_v50  ;;  %v415_v55 = vpop.f32.mrb[11].mxu1  ;;  %3772 = vmatpush3.bf16.msra.mxu0 %v477_v45  ;;  %v469_v47 = vadd.f32 %v453_v46, %v4804_v51 }
 0x1fa   :  { %v452_v60 = vmul.f32 0.9, %v415_v55  ;;  %3773 = vmatprep.subr.bf16.mxu0 %v478_v41  ;;  %v467_v5 = vadd.f32 %v451_v34, %v4810_v58 }
 0x1fb   :  { %v470_v4 = vadd.f32 %v454_v53, %v4801_v48 }
 0x1fc   :  { %v468_v49 = vadd.f32 %v452_v60, %v4807_v56 }
 0x1fd   :  { %3774 = vmatpush3.bf16.msra.mxu0 %v478_v41  ;;  %v480_v6 = vpack.c.bf16 %v470_v4, %v469_v47 }
 0x1fe   :  { %v3765_v8 = vpop.f32.mrb[12].mxu1  ;;  %v479_v9 = vpack.c.bf16 %v468_v49, %v467_v5 }
 0x1ff   :  { %v457_v11 = vmul.f32 0.9, %v3765_v8  ;;  %v428_v42 = vpop.f32.mrb[13].mxu1 }
 0x200   :  { %v455_v44 = vmul.f32 0.9, %v428_v42  ;;  %v3766_v15 = vpop.f32.mrb[14].mxu1  ;;  %3775 = vmatprep.subr.bf16.mxu0 %v479_v9 }
 0x201   :  { %v458_v17 = vmul.f32 0.9, %v3766_v15  ;;  %v431_v18 = vpop.f32.mrb[15].mxu1  ;;  %3776 = vmatpush3.bf16.msra.mxu0 %v479_v9  ;;  %v473_v57 = vadd.f32 %v457_v11, %v4820_v16 }
 0x202   :  { %v456_v23 = vmul.f32 0.9, %v431_v18  ;;  %3777 = vmatprep.subr.bf16.mxu0 %v480_v6  ;;  %v471_v26 = vadd.f32 %v455_v44, %v4826_v21 }
 0x203   :  { %v474_v25 = vadd.f32 %v458_v17, %v4817_v12 }
 0x204   :  { %v472_v59 = vadd.f32 %v456_v23, %v4823_v20 }
 0x205   :  { %3778 = vmatpush3.bf16.msra.mxu0 %v480_v6  ;;  %v482_v27 = vpack.c.bf16 %v474_v25, %v473_v57 }
 0x206   :  { %v481_v28 = vpack.c.bf16 %v472_v59, %v471_v26 }
 0x208   :  { %3779 = vmatprep.subr.bf16.mxu0 %v481_v28 }
 0x209   :  { %3780 = vmatpush3.bf16.msra.mxu0 %v481_v28 }
 0x20a   :  { %3781 = vmatprep.subr.bf16.mxu0 %v482_v27 }
 0x20d   :  { %3782 = vmatpush3.bf16.msra.mxu0 %v482_v27 }
 0x210   :  { %3784 = vmatmul.mubr.bf16.vlgmr.msra.gmra.mrb[16].mxu0 %v4746_v61 }
 0x211   :  { %3787 = vmatprep.mubr.bf16.mxu0 %v4748_v62 }
 0x218   :  { %3788 = vmatmul.mubr.bf16.gmra.mrb[20].mxu0 %v4752_v63 }
 0x219   :  { %3791 = vmatprep.mubr.bf16.mxu0 %v4754_v0 }
 0x220   :  { %3792 = vmatmul.mubr.bf16.gmra.mrb[24].mxu0 %v4758_v1 }
 0x221   :  { %3795 = vmatprep.mubr.bf16.mxu0 %v4760_v2 }
 0x228   :  { %3796 = vmatmul.mubr.bf16.gmra.mrb[28].mxu0 %v4764_v3 }
 0x229   :  { %3847 = vmatprep.mubr.bf16.mxu0 %v4691_v19 }
 0x2e3   :  { %v3785_v52 = vpop.f32.mrb[16].mxu0 }
 0x2e4   :  { %v582_v54 = vmul.f32 0.9, %v3785_v52  ;;  %v517_v24 = vpop.f32.mrb[17].mxu0 }
 0x2e5   :  { %v580_v30 = vmul.f32 0.9, %v517_v24  ;;  %v3786_v31 = vpop.f32.mrb[18].mxu0 }
 0x2e6   :  { %v583_v36 = vmul.f32 0.9, %v3786_v31  ;;  %v520_v37 = vpop.f32.mrb[19].mxu0  ;;  %v598_v40 = vadd.f32 %v582_v54, %v4772_v10 }
 0x2e7   :  { %v581_v38 = vmul.f32 0.9, %v520_v37  ;;  %v596_v41 = vadd.f32 %v580_v30, %v4778_v14 }
 0x2e8   :  { %v599_v39 = vadd.f32 %v583_v36, %v4769_v7 }
 0x2e9   :  { %v597_v43 = vadd.f32 %v581_v38, %v4775_v13 }
 0x2ea   :  { %v613_v45 = vpack.c.bf16 %v599_v39, %v598_v40 }
 0x2eb   :  { %v3789_v46 = vpop.f32.mrb[20].mxu0  ;;  %v612_v32 = vpack.c.bf16 %v597_v43, %v596_v41 }
 0x2ec   :  { %v586_v34 = vmul.f32 0.9, %v3789_v46  ;;  %v533_v50 = vpop.f32.mrb[21].mxu0 }
 0x2ed   :  { %v584_v53 = vmul.f32 0.9, %v533_v50  ;;  %v3790_v55 = vpop.f32.mrb[22].mxu0  ;;  %3799 = vmatprep.subr.bf16.mxu1 %v612_v32 }
 0x2ee   :  { %v587_v60 = vmul.f32 0.9, %v3790_v55  ;;  %v536_v47 = vpop.f32.mrb[23].mxu0  ;;  %3800 = vmatpush3.bf16.msra.mxu1 %v612_v32  ;;  %v602_v5 = vadd.f32 %v586_v34, %v4788_v29 }
 0x2ef   :  { %v585_v4 = vmul.f32 0.9, %v536_v47  ;;  %3801 = vmatprep.subr.bf16.mxu1 %v613_v45  ;;  %v600_v6 = vadd.f32 %v584_v53, %v4794_v35 }
 0x2f0   :  { %v603_v49 = vadd.f32 %v587_v60, %v4785_v22 }
 0x2f1   :  { %v601_v8 = vadd.f32 %v585_v4, %v4791_v33 }
 0x2f2   :  { %3802 = vmatpush3.bf16.msra.mxu1 %v613_v45  ;;  %v615_v9 = vpack.c.bf16 %v603_v49, %v602_v5 }
 0x2f3   :  { %v3793_v11 = vpop.f32.mrb[24].mxu0  ;;  %v614_v42 = vpack.c.bf16 %v601_v8, %v600_v6 }
 0x2f4   :  { %v590_v44 = vmul.f32 0.9, %v3793_v11  ;;  %v549_v15 = vpop.f32.mrb[25].mxu0 }
 0x2f5   :  { %v588_v17 = vmul.f32 0.9, %v549_v15  ;;  %v3794_v18 = vpop.f32.mrb[26].mxu0  ;;  %3803 = vmatprep.subr.bf16.mxu1 %v614_v42 }
 0x2f6   :  { %v591_v23 = vmul.f32 0.9, %v3794_v18  ;;  %v552_v57 = vpop.f32.mrb[27].mxu0  ;;  %3804 = vmatpush3.bf16.msra.mxu1 %v614_v42  ;;  %v606_v26 = vadd.f32 %v590_v44, %v4804_v51 }
 0x2f7   :  { %v589_v25 = vmul.f32 0.9, %v552_v57  ;;  %3805 = vmatprep.subr.bf16.mxu1 %v615_v9  ;;  %v604_v27 = vadd.f32 %v588_v17, %v4810_v58 }
 0x2f8   :  { %v607_v59 = vadd.f32 %v591_v23, %v4801_v48 }
 0x2f9   :  { %v605_v28 = vadd.f32 %v589_v25, %v4807_v56 }
 0x2fa   :  { %3806 = vmatpush3.bf16.msra.mxu1 %v615_v9  ;;  %v617_v52 = vpack.c.bf16 %v607_v59, %v606_v26 }
 0x2fb   :  { %v3797_v54 = vpop.f32.mrb[28].mxu0  ;;  %v616_v24 = vpack.c.bf16 %v605_v28, %v604_v27 }
 0x2fc   :  { %v594_v30 = vmul.f32 0.9, %v3797_v54  ;;  %v565_v31 = vpop.f32.mrb[29].mxu0 }
 0x2fd   :  { %v592_v36 = vmul.f32 0.9, %v565_v31  ;;  %v3798_v37 = vpop.f32.mrb[30].mxu0  ;;  %3807 = vmatprep.subr.bf16.mxu1 %v616_v24 }
 0x2fe   :  { %v595_v38 = vmul.f32 0.9, %v3798_v37  ;;  %v568_v40 = vpop.f32.mrb[31].mxu0  ;;  %3808 = vmatpush3.bf16.msra.mxu1 %v616_v24  ;;  %v610_v41 = vadd.f32 %v594_v30, %v4820_v16 }
 0x2ff   :  { %v593_v39 = vmul.f32 0.9, %v568_v40  ;;  %3809 = vmatprep.subr.bf16.mxu1 %v617_v52  ;;  %v608_v45 = vadd.f32 %v592_v36, %v4826_v21 }
 0x300   :  { %v611_v43 = vadd.f32 %v595_v38, %v4817_v12 }
 0x301   :  { %v609_v46 = vadd.f32 %v593_v39, %v4823_v20 }
 0x302   :  { %3810 = vmatpush3.bf16.msra.mxu1 %v617_v52  ;;  %v619_v32 = vpack.c.bf16 %v611_v43, %v610_v41 }
 0x303   :  { %v618_v34 = vpack.c.bf16 %v609_v46, %v608_v45 }
 0x305   :  { %3811 = vmatprep.subr.bf16.mxu1 %v618_v34 }
 0x306   :  { %3812 = vmatpush3.bf16.msra.mxu1 %v618_v34 }
 0x307   :  { %3813 = vmatprep.subr.bf16.mxu1 %v619_v32 }
 0x30a   :  { %3814 = vmatpush3.bf16.msra.mxu1 %v619_v32 }
 0x30d   :  { %3816 = vmatmul.mubr.bf16.vlgmr.msra.gmra.mrb[16].mxu1 %v4746_v61 }
 0x30e   :  { %3819 = vmatprep.mubr.bf16.mxu1 %v4748_v62 }
 0x315   :  { %3820 = vmatmul.mubr.bf16.gmra.mrb[20].mxu1 %v4752_v63 }
 0x316   :  { %3823 = vmatprep.mubr.bf16.mxu1 %v4754_v0 }
 0x31d   :  { %3824 = vmatmul.mubr.bf16.gmra.mrb[24].mxu1 %v4758_v1 }
 0x31e   :  { %3827 = vmatprep.mubr.bf16.mxu1 %v4760_v2 }
 0x325   :  { %3828 = vmatmul.mubr.bf16.gmra.mrb[28].mxu1 %v4764_v3 }
 0x326   :  { %3879 = vmatprep.mubr.bf16.mxu1 %v4691_v19 }
 0x3e0   :  { %v3817_v50 = vpop.f32.mrb[16].mxu1 }
 0x3e1   :  { %v719_v53 = vmul.f32 0.9, %v3817_v50  ;;  %v654_v55 = vpop.f32.mrb[17].mxu1 }
 0x3e2   :  { %v717_v60 = vmul.f32 0.9, %v654_v55  ;;  %v3818_v47 = vpop.f32.mrb[18].mxu1 }
 0x3e3   :  { %v720_v4 = vmul.f32 0.9, %v3818_v47  ;;  %v657_v5 = vpop.f32.mrb[19].mxu1  ;;  %v735_v6 = vadd.f32 %v719_v53, %v4772_v10 }
 0x3e4   :  { %v718_v49 = vmul.f32 0.9, %v657_v5  ;;  %v733_v9 = vadd.f32 %v717_v60, %v4778_v14 }
 0x3e5   :  { %v736_v8 = vadd.f32 %v720_v4, %v4769_v7 }
 0x3e6   :  { %v734_v11 = vadd.f32 %v718_v49, %v4775_v13 }
 0x3e7   :  { %v750_v42 = vpack.c.bf16 %v736_v8, %v735_v6 }
 0x3e8   :  { %v3821_v44 = vpop.f32.mrb[20].mxu1  ;;  %v749_v15 = vpack.c.bf16 %v734_v11, %v733_v9 }
 0x3e9   :  { %v723_v17 = vmul.f32 0.9, %v3821_v44  ;;  %v670_v18 = vpop.f32.mrb[21].mxu1 }
 0x3ea   :  { %v721_v23 = vmul.f32 0.9, %v670_v18  ;;  %v3822_v57 = vpop.f32.mrb[22].mxu1  ;;  %3831 = vmatprep.subr.bf16.mxu0 %v749_v15 }
 0x3eb   :  { %v724_v25 = vmul.f32 0.9, %v3822_v57  ;;  %v673_v26 = vpop.f32.mrb[23].mxu1  ;;  %3832 = vmatpush3.bf16.msra.mxu0 %v749_v15  ;;  %v739_v27 = vadd.f32 %v723_v17, %v4788_v29 }
 0x3ec   :  { %v722_v59 = vmul.f32 0.9, %v673_v26  ;;  %3833 = vmatprep.subr.bf16.mxu0 %v750_v42  ;;  %v737_v52 = vadd.f32 %v721_v23, %v4794_v35 }
 0x3ed   :  { %v740_v28 = vadd.f32 %v724_v25, %v4785_v22 }
 0x3ee   :  { %v738_v54 = vadd.f32 %v722_v59, %v4791_v33 }
 0x3ef   :  { %3834 = vmatpush3.bf16.msra.mxu0 %v750_v42  ;;  %v752_v24 = vpack.c.bf16 %v740_v28, %v739_v27 }
 0x3f0   :  { %v3825_v30 = vpop.f32.mrb[24].mxu1  ;;  %v751_v31 = vpack.c.bf16 %v738_v54, %v737_v52 }
 0x3f1   :  { %v727_v36 = vmul.f32 0.9, %v3825_v30  ;;  %v686_v37 = vpop.f32.mrb[25].mxu1 }
 0x3f2   :  { %v725_v38 = vmul.f32 0.9, %v686_v37  ;;  %v3826_v40 = vpop.f32.mrb[26].mxu1  ;;  %3835 = vmatprep.subr.bf16.mxu0 %v751_v31 }
 0x3f3   :  { %v728_v39 = vmul.f32 0.9, %v3826_v40  ;;  %v689_v41 = vpop.f32.mrb[27].mxu1  ;;  %3836 = vmatpush3.bf16.msra.mxu0 %v751_v31  ;;  %v743_v45 = vadd.f32 %v727_v36, %v4804_v51 }
 0x3f4   :  { %v726_v43 = vmul.f32 0.9, %v689_v41  ;;  %3837 = vmatprep.subr.bf16.mxu0 %v752_v24  ;;  %v741_v32 = vadd.f32 %v725_v38, %v4810_v58 }
 0x3f5   :  { %v744_v46 = vadd.f32 %v728_v39, %v4801_v48 }
 0x3f6   :  { %v742_v34 = vadd.f32 %v726_v43, %v4807_v56 }
 0x3f7   :  { %3838 = vmatpush3.bf16.msra.mxu0 %v752_v24  ;;  %v754_v50 = vpack.c.bf16 %v744_v46, %v743_v45 }
 0x3f8   :  { %v3829_v53 = vpop.f32.mrb[28].mxu1  ;;  %v753_v55 = vpack.c.bf16 %v742_v34, %v741_v32 }
 0x3f9   :  { %v731_v60 = vmul.f32 0.9, %v3829_v53  ;;  %v702_v47 = vpop.f32.mrb[29].mxu1 }
 0x3fa   :  { %v729_v4 = vmul.f32 0.9, %v702_v47  ;;  %v3830_v5 = vpop.f32.mrb[30].mxu1  ;;  %3839 = vmatprep.subr.bf16.mxu0 %v753_v55 }
 0x3fb   :  { %v732_v49 = vmul.f32 0.9, %v3830_v5  ;;  %v705_v6 = vpop.f32.mrb[31].mxu1  ;;  %3840 = vmatpush3.bf16.msra.mxu0 %v753_v55  ;;  %v747_v9 = vadd.f32 %v731_v60, %v4820_v16 }
 0x3fc   :  { %v730_v8 = vmul.f32 0.9, %v705_v6  ;;  %3841 = vmatprep.subr.bf16.mxu0 %v754_v50  ;;  %v745_v42 = vadd.f32 %v729_v4, %v4826_v21 }
 0x3fd   :  { %v748_v11 = vadd.f32 %v732_v49, %v4817_v12 }
 0x3fe   :  { %v746_v44 = vadd.f32 %v730_v8, %v4823_v20 }
 0x3ff   :  { %3842 = vmatpush3.bf16.msra.mxu0 %v754_v50  ;;  %v756_v15 = vpack.c.bf16 %v748_v11, %v747_v9 }
 0x400   :  { %v755_v17 = vpack.c.bf16 %v746_v44, %v745_v42 }
 0x402   :  { %3843 = vmatprep.subr.bf16.mxu0 %v755_v17 }
 0x403   :  { %3844 = vmatpush3.bf16.msra.mxu0 %v755_v17 }
 0x404   :  { %3845 = vmatprep.subr.bf16.mxu0 %v756_v15 }
 0x407   :  { %3846 = vmatpush3.bf16.msra.mxu0 %v756_v15 }
 0x40a   :  { %3848 = vmatmul.mubr.bf16.vlgmr.msra.gmra.mrb[32].mxu0 %v4746_v61 }
 0x40b   :  { %3851 = vmatprep.mubr.bf16.mxu0 %v4748_v62 }
 0x412   :  { %3852 = vmatmul.mubr.bf16.gmra.mrb[36].mxu0 %v4752_v63 }
 0x413   :  { %3855 = vmatprep.mubr.bf16.mxu0 %v4754_v0 }
 0x41a   :  { %3856 = vmatmul.mubr.bf16.gmra.mrb[40].mxu0 %v4758_v1 }
 0x41b   :  { %3859 = vmatprep.mubr.bf16.mxu0 %v4760_v2 }
 0x422   :  { %3860 = vmatmul.mubr.bf16.gmra.mrb[44].mxu0 %v4764_v3 }
 0x423   :  { %3911 = vmatprep.mubr.bf16.mxu0 %v4691_v19 }
 0x4dd   :  { %v3849_v18 = vpop.f32.mrb[32].mxu0 }
 0x4de   :  { %v856_v23 = vmul.f32 0.9, %v3849_v18  ;;  %v791_v57 = vpop.f32.mrb[33].mxu0 }
 0x4df   :  { %v854_v25 = vmul.f32 0.9, %v791_v57  ;;  %v3850_v26 = vpop.f32.mrb[34].mxu0 }
 0x4e0   :  { %v857_v59 = vmul.f32 0.9, %v3850_v26  ;;  %v794_v27 = vpop.f32.mrb[35].mxu0  ;;  %v872_v52 = vadd.f32 %v856_v23, %v4772_v10 }
 0x4e1   :  { %v855_v28 = vmul.f32 0.9, %v794_v27  ;;  %v870_v24 = vadd.f32 %v854_v25, %v4778_v14 }
 0x4e2   :  { %v873_v54 = vadd.f32 %v857_v59, %v4769_v7 }
 0x4e3   :  { %v871_v30 = vadd.f32 %v855_v28, %v4775_v13 }
 0x4e4   :  { %v887_v31 = vpack.c.bf16 %v873_v54, %v872_v52 }
 0x4e5   :  { %v3853_v36 = vpop.f32.mrb[36].mxu0  ;;  %v886_v37 = vpack.c.bf16 %v871_v30, %v870_v24 }
 0x4e6   :  { %v860_v38 = vmul.f32 0.9, %v3853_v36  ;;  %v807_v40 = vpop.f32.mrb[37].mxu0 }
 0x4e7   :  { %v858_v39 = vmul.f32 0.9, %v807_v40  ;;  %v3854_v41 = vpop.f32.mrb[38].mxu0  ;;  %3863 = vmatprep.subr.bf16.mxu1 %v886_v37 }
 0x4e8   :  { %v861_v43 = vmul.f32 0.9, %v3854_v41  ;;  %v810_v45 = vpop.f32.mrb[39].mxu0  ;;  %3864 = vmatpush3.bf16.msra.mxu1 %v886_v37  ;;  %v876_v32 = vadd.f32 %v860_v38, %v4788_v29 }
 0x4e9   :  { %v859_v46 = vmul.f32 0.9, %v810_v45  ;;  %3865 = vmatprep.subr.bf16.mxu1 %v887_v31  ;;  %v874_v50 = vadd.f32 %v858_v39, %v4794_v35 }
 0x4ea   :  { %v877_v34 = vadd.f32 %v861_v43, %v4785_v22 }
 0x4eb   :  { %v875_v53 = vadd.f32 %v859_v46, %v4791_v33 }
 0x4ec   :  { %3866 = vmatpush3.bf16.msra.mxu1 %v887_v31  ;;  %v889_v55 = vpack.c.bf16 %v877_v34, %v876_v32 }
 0x4ed   :  { %v3857_v60 = vpop.f32.mrb[40].mxu0  ;;  %v888_v47 = vpack.c.bf16 %v875_v53, %v874_v50 }
 0x4ee   :  { %v864_v4 = vmul.f32 0.9, %v3857_v60  ;;  %v823_v5 = vpop.f32.mrb[41].mxu0 }
 0x4ef   :  { %v862_v49 = vmul.f32 0.9, %v823_v5  ;;  %v3858_v6 = vpop.f32.mrb[42].mxu0  ;;  %3867 = vmatprep.subr.bf16.mxu1 %v888_v47 }
 0x4f0   :  { %v865_v8 = vmul.f32 0.9, %v3858_v6  ;;  %v826_v9 = vpop.f32.mrb[43].mxu0  ;;  %3868 = vmatpush3.bf16.msra.mxu1 %v888_v47  ;;  %v880_v42 = vadd.f32 %v864_v4, %v4804_v51 }
 0x4f1   :  { %v863_v11 = vmul.f32 0.9, %v826_v9  ;;  %3869 = vmatprep.subr.bf16.mxu1 %v889_v55  ;;  %v878_v15 = vadd.f32 %v862_v49, %v4810_v58 }
 0x4f2   :  { %v881_v44 = vadd.f32 %v865_v8, %v4801_v48 }
 0x4f3   :  { %v879_v17 = vadd.f32 %v863_v11, %v4807_v56 }
 0x4f4   :  { %3870 = vmatpush3.bf16.msra.mxu1 %v889_v55  ;;  %v891_v18 = vpack.c.bf16 %v881_v44, %v880_v42 }
 0x4f5   :  { %v3861_v23 = vpop.f32.mrb[44].mxu0  ;;  %v890_v57 = vpack.c.bf16 %v879_v17, %v878_v15 }
 0x4f6   :  { %v868_v25 = vmul.f32 0.9, %v3861_v23  ;;  %v839_v26 = vpop.f32.mrb[45].mxu0 }
 0x4f7   :  { %v866_v59 = vmul.f32 0.9, %v839_v26  ;;  %v3862_v27 = vpop.f32.mrb[46].mxu0  ;;  %3871 = vmatprep.subr.bf16.mxu1 %v890_v57 }
 0x4f8   :  { %v869_v28 = vmul.f32 0.9, %v3862_v27  ;;  %v842_v52 = vpop.f32.mrb[47].mxu0  ;;  %3872 = vmatpush3.bf16.msra.mxu1 %v890_v57  ;;  %v884_v24 = vadd.f32 %v868_v25, %v4820_v16 }
 0x4f9   :  { %v867_v54 = vmul.f32 0.9, %v842_v52  ;;  %3873 = vmatprep.subr.bf16.mxu1 %v891_v18  ;;  %v882_v31 = vadd.f32 %v866_v59, %v4826_v21 }
 0x4fa   :  { %v885_v30 = vadd.f32 %v869_v28, %v4817_v12 }
 0x4fb   :  { %v883_v36 = vadd.f32 %v867_v54, %v4823_v20 }
 0x4fc   :  { %3874 = vmatpush3.bf16.msra.mxu1 %v891_v18  ;;  %v893_v37 = vpack.c.bf16 %v885_v30, %v884_v24 }
 0x4fd   :  { %v892_v38 = vpack.c.bf16 %v883_v36, %v882_v31 }
 0x4ff   :  { %3875 = vmatprep.subr.bf16.mxu1 %v892_v38 }
 0x500   :  { %3876 = vmatpush3.bf16.msra.mxu1 %v892_v38 }
 0x501   :  { %3877 = vmatprep.subr.bf16.mxu1 %v893_v37 }
 0x504   :  { %3878 = vmatpush3.bf16.msra.mxu1 %v893_v37 }
 0x507   :  { %3880 = vmatmul.mubr.bf16.vlgmr.msra.gmra.mrb[32].mxu1 %v4746_v61 }
 0x508   :  { %3883 = vmatprep.mubr.bf16.mxu1 %v4748_v62 }
 0x50f   :  { %3884 = vmatmul.mubr.bf16.gmra.mrb[36].mxu1 %v4752_v63 }
 0x510   :  { %3887 = vmatprep.mubr.bf16.mxu1 %v4754_v0 }
 0x517   :  { %3888 = vmatmul.mubr.bf16.gmra.mrb[40].mxu1 %v4758_v1 }
 0x518   :  { %3891 = vmatprep.mubr.bf16.mxu1 %v4760_v2 }
 0x51f   :  { %3892 = vmatmul.mubr.bf16.gmra.mrb[44].mxu1 %v4764_v3 }
 0x520   :  { %3943 = vmatprep.mubr.bf16.mxu1 %v4691_v19 }
 0x5da   :  { %v3881_v40 = vpop.f32.mrb[32].mxu1 }
 0x5db   :  { %v993_v39 = vmul.f32 0.9, %v3881_v40  ;;  %v928_v41 = vpop.f32.mrb[33].mxu1 }
 0x5dc   :  { %v991_v43 = vmul.f32 0.9, %v928_v41  ;;  %v3882_v45 = vpop.f32.mrb[34].mxu1 }
 0x5dd   :  { %v994_v46 = vmul.f32 0.9, %v3882_v45  ;;  %v931_v32 = vpop.f32.mrb[35].mxu1  ;;  %v1009_v50 = vadd.f32 %v993_v39, %v4772_v10 }
 0x5de   :  { %v992_v34 = vmul.f32 0.9, %v931_v32  ;;  %v1007_v55 = vadd.f32 %v991_v43, %v4778_v14 }
 0x5df   :  { %v1010_v53 = vadd.f32 %v994_v46, %v4769_v7 }
 0x5e0   :  { %v1008_v60 = vadd.f32 %v992_v34, %v4775_v13 }
 0x5e1   :  { %v1024_v47 = vpack.c.bf16 %v1010_v53, %v1009_v50 }
 0x5e2   :  { %v3885_v4 = vpop.f32.mrb[36].mxu1  ;;  %v1023_v5 = vpack.c.bf16 %v1008_v60, %v1007_v55 }
 0x5e3   :  { %v997_v49 = vmul.f32 0.9, %v3885_v4  ;;  %v944_v6 = vpop.f32.mrb[37].mxu1 }
 0x5e4   :  { %v995_v8 = vmul.f32 0.9, %v944_v6  ;;  %v3886_v9 = vpop.f32.mrb[38].mxu1  ;;  %3895 = vmatprep.subr.bf16.mxu0 %v1023_v5 }
 0x5e5   :  { %v998_v11 = vmul.f32 0.9, %v3886_v9  ;;  %v947_v42 = vpop.f32.mrb[39].mxu1  ;;  %3896 = vmatpush3.bf16.msra.mxu0 %v1023_v5  ;;  %v1013_v15 = vadd.f32 %v997_v49, %v4788_v29 }
 0x5e6   :  { %v996_v44 = vmul.f32 0.9, %v947_v42  ;;  %3897 = vmatprep.subr.bf16.mxu0 %v1024_v47  ;;  %v1011_v18 = vadd.f32 %v995_v8, %v4794_v35 }
 0x5e7   :  { %v1014_v17 = vadd.f32 %v998_v11, %v4785_v22 }
 0x5e8   :  { %v1012_v23 = vadd.f32 %v996_v44, %v4791_v33 }
 0x5e9   :  { %3898 = vmatpush3.bf16.msra.mxu0 %v1024_v47  ;;  %v1026_v57 = vpack.c.bf16 %v1014_v17, %v1013_v15 }
 0x5ea   :  { %v3889_v25 = vpop.f32.mrb[40].mxu1  ;;  %v1025_v26 = vpack.c.bf16 %v1012_v23, %v1011_v18 }
 0x5eb   :  { %v1001_v59 = vmul.f32 0.9, %v3889_v25  ;;  %v960_v27 = vpop.f32.mrb[41].mxu1 }
 0x5ec   :  { %v999_v28 = vmul.f32 0.9, %v960_v27  ;;  %v3890_v52 = vpop.f32.mrb[42].mxu1  ;;  %3899 = vmatprep.subr.bf16.mxu0 %v1025_v26 }
 0x5ed   :  { %v1002_v54 = vmul.f32 0.9, %v3890_v52  ;;  %v963_v24 = vpop.f32.mrb[43].mxu1  ;;  %3900 = vmatpush3.bf16.msra.mxu0 %v1025_v26  ;;  %v1017_v31 = vadd.f32 %v1001_v59, %v4804_v51 }
 0x5ee   :  { %v1000_v30 = vmul.f32 0.9, %v963_v24  ;;  %3901 = vmatprep.subr.bf16.mxu0 %v1026_v57  ;;  %v1015_v37 = vadd.f32 %v999_v28, %v4810_v58 }
 0x5ef   :  { %v1018_v36 = vadd.f32 %v1002_v54, %v4801_v48 }
 0x5f0   :  { %v1016_v38 = vadd.f32 %v1000_v30, %v4807_v56 }
 0x5f1   :  { %3902 = vmatpush3.bf16.msra.mxu0 %v1026_v57  ;;  %v1028_v40 = vpack.c.bf16 %v1018_v36, %v1017_v31 }
 0x5f2   :  { %v3893_v39 = vpop.f32.mrb[44].mxu1  ;;  %v1027_v41 = vpack.c.bf16 %v1016_v38, %v1015_v37 }
 0x5f3   :  { %v1005_v43 = vmul.f32 0.9, %v3893_v39  ;;  %v976_v45 = vpop.f32.mrb[45].mxu1 }
 0x5f4   :  { %v1003_v46 = vmul.f32 0.9, %v976_v45  ;;  %v3894_v32 = vpop.f32.mrb[46].mxu1  ;;  %3903 = vmatprep.subr.bf16.mxu0 %v1027_v41 }
 0x5f5   :  { %v1006_v34 = vmul.f32 0.9, %v3894_v32  ;;  %v979_v50 = vpop.f32.mrb[47].mxu1  ;;  %3904 = vmatpush3.bf16.msra.mxu0 %v1027_v41  ;;  %v1021_v55 = vadd.f32 %v1005_v43, %v4820_v16 }
 0x5f6   :  { %v1004_v53 = vmul.f32 0.9, %v979_v50  ;;  %3905 = vmatprep.subr.bf16.mxu0 %v1028_v40  ;;  %v1019_v47 = vadd.f32 %v1003_v46, %v4826_v21 }
 0x5f7   :  { %v1022_v60 = vadd.f32 %v1006_v34, %v4817_v12 }
 0x5f8   :  { %v1020_v4 = vadd.f32 %v1004_v53, %v4823_v20 }
 0x5f9   :  { %3906 = vmatpush3.bf16.msra.mxu0 %v1028_v40  ;;  %v1030_v5 = vpack.c.bf16 %v1022_v60, %v1021_v55 }
 0x5fa   :  { %v1029_v49 = vpack.c.bf16 %v1020_v4, %v1019_v47 }
 0x5fc   :  { %3907 = vmatprep.subr.bf16.mxu0 %v1029_v49 }
 0x5fd   :  { %3908 = vmatpush3.bf16.msra.mxu0 %v1029_v49 }
 0x5fe   :  { %3909 = vmatprep.subr.bf16.mxu0 %v1030_v5 }
 0x601   :  { %3910 = vmatpush3.bf16.msra.mxu0 %v1030_v5 }
 0x604   :  { %3912 = vmatmul.mubr.bf16.vlgmr.msra.gmra.mrb[48].mxu0 %v4746_v61 }
 0x605   :  { %3915 = vmatprep.mubr.bf16.mxu0 %v4748_v62 }
 0x60c   :  { %3916 = vmatmul.mubr.bf16.gmra.mrb[52].mxu0 %v4752_v63 }
 0x60d   :  { %3919 = vmatprep.mubr.bf16.mxu0 %v4754_v0 }
 0x614   :  { %3920 = vmatmul.mubr.bf16.gmra.mrb[56].mxu0 %v4758_v1 }
 0x615   :  { %3923 = vmatprep.mubr.bf16.mxu0 %v4760_v2 }
 0x61c   :  { %3924 = vmatmul.mubr.bf16.gmra.mrb[60].mxu0 %v4764_v3 }
 0x61d   :  { %3975 = vmatprep.mubr.bf16.mxu0 %v4691_v19 }
 0x6d7   :  { %v3913_v6 = vpop.f32.mrb[48].mxu0 }
 0x6d8   :  { %v1130_v8 = vmul.f32 0.9, %v3913_v6  ;;  %v1065_v9 = vpop.f32.mrb[49].mxu0 }
 0x6d9   :  { %v1128_v11 = vmul.f32 0.9, %v1065_v9  ;;  %v3914_v42 = vpop.f32.mrb[50].mxu0 }
 0x6da   :  { %v1131_v44 = vmul.f32 0.9, %v3914_v42  ;;  %v1068_v15 = vpop.f32.mrb[51].mxu0  ;;  %v1146_v18 = vadd.f32 %v1130_v8, %v4772_v10 }
 0x6db   :  { %v1129_v17 = vmul.f32 0.9, %v1068_v15  ;;  %v1144_v57 = vadd.f32 %v1128_v11, %v4778_v14 }
 0x6dc   :  { %v1147_v23 = vadd.f32 %v1131_v44, %v4769_v7 }
 0x6dd   :  { %v1145_v25 = vadd.f32 %v1129_v17, %v4775_v13 }
 0x6de   :  { %v1161_v26 = vpack.c.bf16 %v1147_v23, %v1146_v18 }
 0x6df   :  { %v3917_v59 = vpop.f32.mrb[52].mxu0  ;;  %v1160_v27 = vpack.c.bf16 %v1145_v25, %v1144_v57 }
 0x6e0   :  { %v1134_v19 = vmul.f32 0.9, %v3917_v59  ;;  %v1081_v28 = vpop.f32.mrb[53].mxu0 }
 0x6e1   :  { %v1132_v52 = vmul.f32 0.9, %v1081_v28  ;;  %v3918_v54 = vpop.f32.mrb[54].mxu0  ;;  %3927 = vmatprep.subr.bf16.mxu1 %v1160_v27 }
 0x6e2   :  { %v1135_v24 = vmul.f32 0.9, %v3918_v54  ;;  %v1084_v30 = vpop.f32.mrb[55].mxu0  ;;  %3928 = vmatpush3.bf16.msra.mxu1 %v1160_v27  ;;  %v1150_v36 = vadd.f32 %v1134_v19, %v4788_v29  ;;  %v4959_v19 = vld [vmem:[#allocation2] sm:$0xff]  }
 0x6e3   :  { %v1133_v31 = vmul.f32 0.9, %v1084_v30  ;;  %3929 = vmatprep.subr.bf16.mxu1 %v1161_v26  ;;  %v1148_v38 = vadd.f32 %v1132_v52, %v4794_v35 }
 0x6e4   :  { %v1151_v37 = vadd.f32 %v1135_v24, %v4785_v22 }
 0x6e5   :  { %v1149_v40 = vadd.f32 %v1133_v31, %v4791_v33 }
 0x6e6   :  { %3930 = vmatpush3.bf16.msra.mxu1 %v1161_v26  ;;  %v1163_v39 = vpack.c.bf16 %v1151_v37, %v1150_v36 }
 0x6e7   :  { %v3921_v41 = vpop.f32.mrb[56].mxu0  ;;  %v1162_v43 = vpack.c.bf16 %v1149_v40, %v1148_v38 }
 0x6e8   :  { %v1138_v45 = vmul.f32 0.9, %v3921_v41  ;;  %v1097_v46 = vpop.f32.mrb[57].mxu0 }
 0x6e9   :  { %v1136_v32 = vmul.f32 0.9, %v1097_v46  ;;  %v3922_v34 = vpop.f32.mrb[58].mxu0  ;;  %3931 = vmatprep.subr.bf16.mxu1 %v1162_v43 }
 0x6ea   :  { %v1139_v50 = vmul.f32 0.9, %v3922_v34  ;;  %v1100_v53 = vpop.f32.mrb[59].mxu0  ;;  %3932 = vmatpush3.bf16.msra.mxu1 %v1162_v43  ;;  %v1154_v60 = vadd.f32 %v1138_v45, %v4804_v51 }
 0x6eb   :  { %v1137_v55 = vmul.f32 0.9, %v1100_v53  ;;  %3933 = vmatprep.subr.bf16.mxu1 %v1163_v39  ;;  %v1152_v4 = vadd.f32 %v1136_v32, %v4810_v58 }
 0x6ec   :  { %v1155_v47 = vadd.f32 %v1139_v50, %v4801_v48 }
 0x6ed   :  { %v1153_v5 = vadd.f32 %v1137_v55, %v4807_v56 }
 0x6ee   :  { %3934 = vmatpush3.bf16.msra.mxu1 %v1163_v39  ;;  %v1165_v49 = vpack.c.bf16 %v1155_v47, %v1154_v60 }
 0x6ef   :  { %v3925_v6 = vpop.f32.mrb[60].mxu0  ;;  %v1164_v8 = vpack.c.bf16 %v1153_v5, %v1152_v4 }
 0x6f0   :  { %v1142_v9 = vmul.f32 0.9, %v3925_v6  ;;  %v1113_v11 = vpop.f32.mrb[61].mxu0 }
 0x6f1   :  { %v1140_v42 = vmul.f32 0.9, %v1113_v11  ;;  %v3926_v44 = vpop.f32.mrb[62].mxu0  ;;  %3935 = vmatprep.subr.bf16.mxu1 %v1164_v8 }
 0x6f2   :  { %v1143_v15 = vmul.f32 0.9, %v3926_v44  ;;  %v1116_v17 = vpop.f32.mrb[63].mxu0  ;;  %3936 = vmatpush3.bf16.msra.mxu1 %v1164_v8  ;;  %v1158_v23 = vadd.f32 %v1142_v9, %v4820_v16 }
 0x6f3   :  { %v1141_v18 = vmul.f32 0.9, %v1116_v17  ;;  %3937 = vmatprep.subr.bf16.mxu1 %v1165_v49  ;;  %v1156_v25 = vadd.f32 %v1140_v42, %v4826_v21 }
 0x6f4   :  { %v1159_v57 = vadd.f32 %v1143_v15, %v4817_v12 }
 0x6f5   :  { %v1157_v26 = vadd.f32 %v1141_v18, %v4823_v20 }
 0x6f6   :  { %3938 = vmatpush3.bf16.msra.mxu1 %v1165_v49  ;;  %v1167_v59 = vpack.c.bf16 %v1159_v57, %v1158_v23 }
 0x6f7   :  { %v1166_v27 = vpack.c.bf16 %v1157_v26, %v1156_v25 }
 0x6f9   :  { %3939 = vmatprep.subr.bf16.mxu1 %v1166_v27 }
 0x6fa   :  { %3940 = vmatpush3.bf16.msra.mxu1 %v1166_v27 }
 0x6fb   :  { %3941 = vmatprep.subr.bf16.mxu1 %v1167_v59 }
 0x6fe   :  { %3942 = vmatpush3.bf16.msra.mxu1 %v1167_v59 }
 0x701   :  { %3944 = vmatmul.mubr.bf16.vlgmr.msra.gmra.mrb[48].mxu1 %v4746_v61 }
 0x702   :  { %3947 = vmatprep.mubr.bf16.mxu1 %v4748_v62 }
 0x709   :  { %3948 = vmatmul.mubr.bf16.gmra.mrb[52].mxu1 %v4752_v63 }
 0x70a   :  { %3951 = vmatprep.mubr.bf16.mxu1 %v4754_v0 }
 0x711   :  { %3952 = vmatmul.mubr.bf16.gmra.mrb[56].mxu1 %v4758_v1 }
 0x712   :  { %3955 = vmatprep.mubr.bf16.mxu1 %v4760_v2 }
 0x719   :  { %3956 = vmatmul.mubr.bf16.gmra.mrb[60].mxu1 %v4764_v3 }
 0x71a   :  { %4007 = vmatprep.mubr.bf16.mxu1 %v4959_v19 }
 0x7d4   :  { %v3945_v28 = vpop.f32.mrb[48].mxu1 }
 0x7d5   :  { %v1267_v52 = vmul.f32 0.9, %v3945_v28  ;;  %v1202_v54 = vpop.f32.mrb[49].mxu1 }
 0x7d6   :  { %v1265_v61 = vmul.f32 0.9, %v1202_v54  ;;  %v3946_v24 = vpop.f32.mrb[50].mxu1 }
 0x7d7   :  { %v1268_v62 = vmul.f32 0.9, %v3946_v24  ;;  %v1205_v30 = vpop.f32.mrb[51].mxu1  ;;  %v1283_v0 = vadd.f32 %v1267_v52, %v4772_v10 }
 0x7d8   :  { %v1266_v63 = vmul.f32 0.9, %v1205_v30  ;;  %v1281_v2 = vadd.f32 %v1265_v61, %v4778_v14 }
 0x7d9   :  { %v1284_v1 = vadd.f32 %v1268_v62, %v4769_v7 }
 0x7da   :  { %v1282_v3 = vadd.f32 %v1266_v63, %v4775_v13 }
 0x7db   :  { %v1298_v31 = vpack.c.bf16 %v1284_v1, %v1283_v0  ;;  %v4978_v1 = vld [vmem:[#allocation2 + $0x8] sm:$0xff]  }
 0x7dc   :  { %v3949_v36 = vpop.f32.mrb[52].mxu1  ;;  %v1297_v37 = vpack.c.bf16 %v1282_v3, %v1281_v2  ;;  %v4981_v2 = vld [vmem:[#allocation2 + $0x10] sm:$0xff]   ;;  %v4984_v3 = vld [vmem:[#allocation2 + $0x18] sm:$0xff]  }
 0x7dd   :  { %v1271_v38 = vmul.f32 0.9, %v3949_v36  ;;  %v1218_v40 = vpop.f32.mrb[53].mxu1  ;;  %v4990_v36 = vld [vmem:[#allocation2 + $0x28] sm:$0xff]  }
 0x7de   :  { %v1269_v39 = vmul.f32 0.9, %v1218_v40  ;;  %v3950_v41 = vpop.f32.mrb[54].mxu1  ;;  %3959 = vmatprep.subr.bf16.mxu0 %v1297_v37 }
 0x7df   :  { %v1272_v43 = vmul.f32 0.9, %v3950_v41  ;;  %v1221_v45 = vpop.f32.mrb[55].mxu1  ;;  %3960 = vmatpush3.bf16.msra.mxu0 %v1297_v37  ;;  %v1287_v32 = vadd.f32 %v1271_v38, %v4788_v29  ;;  %v4993_v37 = vld [vmem:[#allocation2 + $0x30] sm:$0xff]   ;;  %v4996_v38 = vld [vmem:[#allocation2 + $0x38] sm:$0xff]  }
 0x7e0   :  { %v1270_v46 = vmul.f32 0.9, %v1221_v45  ;;  %3961 = vmatprep.subr.bf16.mxu0 %v1298_v31  ;;  %v1285_v50 = vadd.f32 %v1269_v39, %v4794_v35 }
 0x7e1   :  { %v1288_v34 = vadd.f32 %v1272_v43, %v4785_v22 }
 0x7e2   :  { %v1286_v53 = vadd.f32 %v1270_v46, %v4791_v33 }
 0x7e3   :  { %3962 = vmatpush3.bf16.msra.mxu0 %v1298_v31  ;;  %v1300_v55 = vpack.c.bf16 %v1288_v34, %v1287_v32  ;;  %v4987_v31 = vld [vmem:[#allocation2 + $0x20] sm:$0xff]  }
 0x7e4   :  { %v3953_v60 = vpop.f32.mrb[56].mxu1  ;;  %v1299_v47 = vpack.c.bf16 %v1286_v53, %v1285_v50 }
 0x7e5   :  { %v1275_v4 = vmul.f32 0.9, %v3953_v60  ;;  %v1234_v5 = vpop.f32.mrb[57].mxu1 }
 0x7e6   :  { %v1273_v49 = vmul.f32 0.9, %v1234_v5  ;;  %v3954_v6 = vpop.f32.mrb[58].mxu1  ;;  %3963 = vmatprep.subr.bf16.mxu0 %v1299_v47 }
 0x7e7   :  { %v1276_v8 = vmul.f32 0.9, %v3954_v6  ;;  %v1237_v9 = vpop.f32.mrb[59].mxu1  ;;  %3964 = vmatpush3.bf16.msra.mxu0 %v1299_v47  ;;  %v1291_v42 = vadd.f32 %v1275_v4, %v4804_v51 }
 0x7e8   :  { %v1274_v11 = vmul.f32 0.9, %v1237_v9  ;;  %3965 = vmatprep.subr.bf16.mxu0 %v1300_v55  ;;  %v1289_v15 = vadd.f32 %v1273_v49, %v4810_v58 }
 0x7e9   :  { %v1292_v44 = vadd.f32 %v1276_v8, %v4801_v48 }
 0x7ea   :  { %v1290_v17 = vadd.f32 %v1274_v11, %v4807_v56 }
 0x7eb   :  { %3966 = vmatpush3.bf16.msra.mxu0 %v1300_v55  ;;  %v1302_v18 = vpack.c.bf16 %v1292_v44, %v1291_v42 }
 0x7ec   :  { %v3957_v23 = vpop.f32.mrb[60].mxu1  ;;  %v1301_v57 = vpack.c.bf16 %v1290_v17, %v1289_v15 }
 0x7ed   :  { %v1279_v25 = vmul.f32 0.9, %v3957_v23  ;;  %v1250_v26 = vpop.f32.mrb[61].mxu1 }
 0x7ee   :  { %v1277_v59 = vmul.f32 0.9, %v1250_v26  ;;  %v3958_v27 = vpop.f32.mrb[62].mxu1  ;;  %3967 = vmatprep.subr.bf16.mxu0 %v1301_v57 }
 0x7ef   :  { %v1280_v28 = vmul.f32 0.9, %v3958_v27  ;;  %v1253_v52 = vpop.f32.mrb[63].mxu1  ;;  %3968 = vmatpush3.bf16.msra.mxu0 %v1301_v57  ;;  %v1295_v61 = vadd.f32 %v1279_v25, %v4820_v16 }
 0x7f0   :  { %v1278_v54 = vmul.f32 0.9, %v1253_v52  ;;  %3969 = vmatprep.subr.bf16.mxu0 %v1302_v18  ;;  %v1293_v62 = vadd.f32 %v1277_v59, %v4826_v21 }
 0x7f1   :  { %v1296_v24 = vadd.f32 %v1280_v28, %v4817_v12 }
 0x7f2   :  { %v1294_v30 = vadd.f32 %v1278_v54, %v4823_v20 }
 0x7f3   :  { %3970 = vmatpush3.bf16.msra.mxu0 %v1302_v18  ;;  %v1304_v63 = vpack.c.bf16 %v1296_v24, %v1295_v61 }
 0x7f4   :  { %v1303_v0 = vpack.c.bf16 %v1294_v30, %v1293_v62 }
 0x7f6   :  { %3971 = vmatprep.subr.bf16.mxu0 %v1303_v0 }
 0x7f7   :  { %3972 = vmatpush3.bf16.msra.mxu0 %v1303_v0 }
 0x7f8   :  { %3973 = vmatprep.subr.bf16.mxu0 %v1304_v63 }
 0x7fb   :  { %3974 = vmatpush3.bf16.msra.mxu0 %v1304_v63 }
 0x7fe   :  { %3976 = vmatmul.mubr.bf16.vlgmr.msra.gmra.mrb[64].mxu0 %v4978_v1 }
 0x7ff   :  { %3979 = vmatprep.mubr.bf16.mxu0 %v4981_v2 }
 0x806   :  { %3980 = vmatmul.mubr.bf16.gmra.mrb[68].mxu0 %v4984_v3 }
 0x807   :  { %3983 = vmatprep.mubr.bf16.mxu0 %v4987_v31 }
 0x80e   :  { %3984 = vmatmul.mubr.bf16.gmra.mrb[72].mxu0 %v4990_v36 }
 0x80f   :  { %3987 = vmatprep.mubr.bf16.mxu0 %v4993_v37 }
 0x816   :  { %3988 = vmatmul.mubr.bf16.gmra.mrb[76].mxu0 %v4996_v38 }
 0x817   :  { %4039 = vmatprep.mubr.bf16.mxu0 %v4959_v19 }
 0x8d1   :  { %v3977_v40 = vpop.f32.mrb[64].mxu0 }
 0x8d2   :  { %v1404_v39 = vmul.f32 0.9, %v3977_v40  ;;  %v1339_v41 = vpop.f32.mrb[65].mxu0 }
 0x8d3   :  { %v1402_v43 = vmul.f32 0.9, %v1339_v41  ;;  %v3978_v45 = vpop.f32.mrb[66].mxu0 }
 0x8d4   :  { %v1405_v46 = vmul.f32 0.9, %v3978_v45  ;;  %v1342_v32 = vpop.f32.mrb[67].mxu0  ;;  %v1420_v50 = vadd.f32 %v1404_v39, %v4772_v10 }
 0x8d5   :  { %v1403_v34 = vmul.f32 0.9, %v1342_v32  ;;  %v1418_v55 = vadd.f32 %v1402_v43, %v4778_v14 }
 0x8d6   :  { %v1421_v53 = vadd.f32 %v1405_v46, %v4769_v7 }
 0x8d7   :  { %v1419_v60 = vadd.f32 %v1403_v34, %v4775_v13 }
 0x8d8   :  { %v1435_v47 = vpack.c.bf16 %v1421_v53, %v1420_v50 }
 0x8d9   :  { %v3981_v4 = vpop.f32.mrb[68].mxu0  ;;  %v1434_v5 = vpack.c.bf16 %v1419_v60, %v1418_v55 }
 0x8da   :  { %v1408_v49 = vmul.f32 0.9, %v3981_v4  ;;  %v1355_v6 = vpop.f32.mrb[69].mxu0 }
 0x8db   :  { %v1406_v8 = vmul.f32 0.9, %v1355_v6  ;;  %v3982_v9 = vpop.f32.mrb[70].mxu0  ;;  %3991 = vmatprep.subr.bf16.mxu1 %v1434_v5  ;;  %v1724_v6 = vld [vmem:[%s5466_s4] sm:$0xff] }
 0x8dc   :  { %v1409_v11 = vmul.f32 0.9, %v3982_v9  ;;  %v1358_v42 = vpop.f32.mrb[71].mxu0  ;;  %3992 = vmatpush3.bf16.msra.mxu1 %v1434_v5  ;;  %v1424_v15 = vadd.f32 %v1408_v49, %v4788_v29  ;;  %v1726_v9 = vld [vmem:[%s5466_s4 + $0x10] sm:$0xff] }
 0x8dd   :  { %v1407_v44 = vmul.f32 0.9, %v1358_v42  ;;  %3993 = vmatprep.subr.bf16.mxu1 %v1435_v47  ;;  %v1422_v18 = vadd.f32 %v1406_v8, %v4794_v35  ;;  %v1725_v8 = vld [vmem:[%s5466_s4 + $0x8] sm:$0xff]  ;;  %v1727_v42 = vld [vmem:[%s5466_s4 + $0x18] sm:$0xff] }
 0x8de   :  { %v1425_v17 = vadd.f32 %v1409_v11, %v4785_v22  ;;  %v4435_v11 = vpack.c.bf16 %v1725_v8, %v1724_v6 }
 0x8df   :  { %v1423_v23 = vadd.f32 %v1407_v44, %v4791_v33  ;;  %v4439_v44 = vpack.c.bf16 %v1727_v42, %v1726_v9 }
 0x8e0   :  { %3994 = vmatpush3.bf16.msra.mxu1 %v1435_v47  ;;  %v1437_v57 = vpack.c.bf16 %v1425_v17, %v1424_v15  ;;  %v1728_v15 = vld [vmem:[%s5466_s4 + $0x20] sm:$0xff]  ;;  %v1729_v17 = vld [vmem:[%s5466_s4 + $0x28] sm:$0xff] }
 0x8e1   :  { %v3985_v25 = vpop.f32.mrb[72].mxu0  ;;  %v1436_v26 = vpack.c.bf16 %v1423_v23, %v1422_v18  ;;  %v4443_v18 = vpack.c.bf16 %v1729_v17, %v1728_v15  ;;  %v1730_v23 = vld [vmem:[%s5466_s4 + $0x30] sm:$0xff] }
 0x8e2   :  { %v1412_v59 = vmul.f32 0.9, %v3985_v25  ;;  %v1371_v27 = vpop.f32.mrb[73].mxu0 }
 0x8e3   :  { %v1410_v28 = vmul.f32 0.9, %v1371_v27  ;;  %v3986_v52 = vpop.f32.mrb[74].mxu0  ;;  %3995 = vmatprep.subr.bf16.mxu1 %v1436_v26 }
 0x8e4   :  { %v1413_v54 = vmul.f32 0.9, %v3986_v52  ;;  %v1374_v61 = vpop.f32.mrb[75].mxu0  ;;  %3996 = vmatpush3.bf16.msra.mxu1 %v1436_v26  ;;  %v1428_v62 = vadd.f32 %v1412_v59, %v4804_v51  ;;  %v1732_v26 = vld [vmem:[%s5466_s4 + $0x40] sm:$0xff]  ;;  %v1733_v59 = vld [vmem:[%s5466_s4 + $0x48] sm:$0xff]  ;;  %v1735_v52 = vld [vmem:[%s5466_s4 + $0x58] sm:$0xff] }
 0x8e5   :  { %v1411_v24 = vmul.f32 0.9, %v1374_v61  ;;  %3997 = vmatprep.subr.bf16.mxu1 %v1437_v57  ;;  %v1426_v63 = vadd.f32 %v1410_v28, %v4810_v58  ;;  %v4451_v27 = vpack.c.bf16 %v1733_v59, %v1732_v26  ;;  %v1734_v28 = vld [vmem:[%s5466_s4 + $0x50] sm:$0xff] }
 0x8e6   :  { %v1429_v30 = vadd.f32 %v1413_v54, %v4801_v48  ;;  %v4455_v54 = vpack.c.bf16 %v1735_v52, %v1734_v28 }
 0x8e7   :  { %v1427_v0 = vadd.f32 %v1411_v24, %v4807_v56 }
 0x8e8   :  { %3998 = vmatpush3.bf16.msra.mxu1 %v1437_v57  ;;  %v1439_v40 = vpack.c.bf16 %v1429_v30, %v1428_v62  ;;  %v1731_v57 = vld [vmem:[%s5466_s4 + $0x38] sm:$0xff] }
 0x8e9   :  { %v3989_v39 = vpop.f32.mrb[76].mxu0  ;;  %v1438_v41 = vpack.c.bf16 %v1427_v0, %v1426_v63  ;;  %v4447_v25 = vpack.c.bf16 %v1731_v57, %v1730_v23 }
 0x8ea   :  { %v1416_v43 = vmul.f32 0.9, %v3989_v39  ;;  %v1387_v45 = vpop.f32.mrb[77].mxu0 }
 0x8eb   :  { %v1414_v46 = vmul.f32 0.9, %v1387_v45  ;;  %v3990_v32 = vpop.f32.mrb[78].mxu0  ;;  %3999 = vmatprep.subr.bf16.mxu1 %v1438_v41 }
 0x8ec   :  { %v1417_v34 = vmul.f32 0.9, %v3990_v32  ;;  %v1390_v50 = vpop.f32.mrb[79].mxu0  ;;  %4000 = vmatpush3.bf16.msra.mxu1 %v1438_v41  ;;  %v1432_v55 = vadd.f32 %v1416_v43, %v4820_v16 }
 0x8ed   :  { %v1415_v53 = vmul.f32 0.9, %v1390_v50  ;;  %4001 = vmatprep.subr.bf16.mxu1 %v1439_v40  ;;  %v1430_v47 = vadd.f32 %v1414_v46, %v4826_v21 }
 0x8ee   :  { %v1433_v60 = vadd.f32 %v1417_v34, %v4817_v12 }
 0x8ef   :  { %v1431_v4 = vadd.f32 %v1415_v53, %v4823_v20 }
 0x8f0   :  { %4002 = vmatpush3.bf16.msra.mxu1 %v1439_v40  ;;  %v1441_v5 = vpack.c.bf16 %v1433_v60, %v1432_v55 }
 0x8f1   :  { %v1440_v49 = vpack.c.bf16 %v1431_v4, %v1430_v47 }
 0x8f3   :  { %4003 = vmatprep.subr.bf16.mxu1 %v1440_v49 }
 0x8f4   :  { %4004 = vmatpush3.bf16.msra.mxu1 %v1440_v49 }
 0x8f5   :  { %4005 = vmatprep.subr.bf16.mxu1 %v1441_v5 }
 0x8f8   :  { %4006 = vmatpush3.bf16.msra.mxu1 %v1441_v5 }
 0x8f9   :  { %4436 = vmatprep.subr.bf16.mxu1 %v4435_v11 }
 0x8fb   :  { %4008 = vmatmul.mubr.bf16.vlgmr.msra.gmra.mrb[64].mxu1 %v4978_v1 }
 0x8fc   :  { %4011 = vmatprep.mubr.bf16.mxu1 %v4981_v2  ;;  %4438 = vmatpush3.bf16.msra.mxu1 %v4435_v11 }
 0x8fd   :  { %4440 = vmatprep.subr.bf16.mxu1 %v4439_v44 }
 0x900   :  { %4442 = vmatpush3.bf16.msra.mxu1 %v4439_v44 }
 0x901   :  { %4444 = vmatprep.subr.bf16.mxu1 %v4443_v18 }
 0x903   :  { %4012 = vmatmul.mubr.bf16.gmra.mrb[68].mxu1 %v4984_v3 }
 0x904   :  { %4015 = vmatprep.mubr.bf16.mxu1 %v4987_v31  ;;  %4446 = vmatpush3.bf16.msra.mxu1 %v4443_v18 }
 0x905   :  { %4448 = vmatprep.subr.bf16.mxu1 %v4447_v25 }
 0x908   :  { %4450 = vmatpush3.bf16.msra.mxu1 %v4447_v25 }
 0x909   :  { %4452 = vmatprep.subr.bf16.mxu1 %v4451_v27 }
 0x90b   :  { %4016 = vmatmul.mubr.bf16.gmra.mrb[72].mxu1 %v4990_v36 }
 0x90c   :  { %4019 = vmatprep.mubr.bf16.mxu1 %v4993_v37  ;;  %4454 = vmatpush3.bf16.msra.mxu1 %v4451_v27 }
 0x90d   :  { %4456 = vmatprep.subr.bf16.mxu1 %v4455_v54 }
 0x910   :  { %4458 = vmatpush3.bf16.msra.mxu1 %v4455_v54 }
 0x913   :  { %4020 = vmatmul.mubr.bf16.gmra.mrb[76].mxu1 %v4996_v38 }
 0x9ce   :  { %v4009_v61 = vpop.f32.mrb[64].mxu1 }
 0x9cf   :  { %v1541_v24 = vmul.f32 0.9, %v4009_v61  ;;  %v1476_v62 = vpop.f32.mrb[65].mxu1 }
 0x9d0   :  { %v1539_v30 = vmul.f32 0.9, %v1476_v62  ;;  %v4010_v63 = vpop.f32.mrb[66].mxu1 }
 0x9d1   :  { %v1542_v0 = vmul.f32 0.9, %v4010_v63  ;;  %v1479_v40 = vpop.f32.mrb[67].mxu1  ;;  %v1557_v41 = vadd.f32 %v1541_v24, %v4772_v10 }
 0x9d2   :  { %v1540_v39 = vmul.f32 0.9, %v1479_v40  ;;  %v1555_v45 = vadd.f32 %v1539_v30, %v4778_v14 }
 0x9d3   :  { %v1558_v43 = vadd.f32 %v1542_v0, %v4769_v7 }
 0x9d4   :  { %v1556_v46 = vadd.f32 %v1540_v39, %v4775_v13 }
 0x9d5   :  { %v1572_v32 = vpack.c.bf16 %v1558_v43, %v1557_v41 }
 0x9d6   :  { %v4013_v34 = vpop.f32.mrb[68].mxu1  ;;  %v1571_v50 = vpack.c.bf16 %v1556_v46, %v1555_v45 }
 0x9d7   :  { %v1545_v53 = vmul.f32 0.9, %v4013_v34  ;;  %v1492_v55 = vpop.f32.mrb[69].mxu1 }
 0x9d8   :  { %v1543_v60 = vmul.f32 0.9, %v1492_v55  ;;  %v4014_v47 = vpop.f32.mrb[70].mxu1  ;;  %4023 = vmatprep.subr.bf16.mxu0 %v1571_v50  ;;  %v1736_v55 = vld [vmem:[%s5466_s4 + $0x60] sm:$0xff] }
 0x9d9   :  { %v1546_v4 = vmul.f32 0.9, %v4014_v47  ;;  %v1495_v5 = vpop.f32.mrb[71].mxu1  ;;  %4024 = vmatpush3.bf16.msra.mxu0 %v1571_v50  ;;  %v1561_v6 = vadd.f32 %v1545_v53, %v4788_v29 }
 0x9da   :  { %v1544_v49 = vmul.f32 0.9, %v1495_v5  ;;  %4025 = vmatprep.subr.bf16.mxu0 %v1572_v32  ;;  %v1559_v9 = vadd.f32 %v1543_v60, %v4794_v35  ;;  %v1737_v60 = vld [vmem:[%s5466_s4 + $0x68] sm:$0xff]  ;;  %v1739_v5 = vld [vmem:[%s5466_s4 + $0x78] sm:$0xff] }
 0x9db   :  { %v1562_v8 = vadd.f32 %v1546_v4, %v4785_v22  ;;  %v4459_v47 = vpack.c.bf16 %v1737_v60, %v1736_v55  ;;  %v1738_v4 = vld [vmem:[%s5466_s4 + $0x70] sm:$0xff] }
 0x9dc   :  { %v1560_v11 = vadd.f32 %v1544_v49, %v4791_v33  ;;  %v4463_v49 = vpack.c.bf16 %v1739_v5, %v1738_v4 }
 0x9dd   :  { %4026 = vmatpush3.bf16.msra.mxu0 %v1572_v32  ;;  %v1574_v42 = vpack.c.bf16 %v1562_v8, %v1561_v6  ;;  %4460 = vmatprep.subr.bf16.mxu1 %v4459_v47 }
 0x9de   :  { %v4017_v44 = vpop.f32.mrb[72].mxu1  ;;  %v1573_v15 = vpack.c.bf16 %v1560_v11, %v1559_v9  ;;  %4462 = vmatpush3.bf16.msra.mxu1 %v4459_v47 }
 0x9df   :  { %v1549_v17 = vmul.f32 0.9, %v4017_v44  ;;  %v1508_v18 = vpop.f32.mrb[73].mxu1  ;;  %4464 = vmatprep.subr.bf16.mxu1 %v4463_v49 }
 0x9e0   :  { %v1547_v23 = vmul.f32 0.9, %v1508_v18  ;;  %v4018_v57 = vpop.f32.mrb[74].mxu1  ;;  %4027 = vmatprep.subr.bf16.mxu0 %v1573_v15 }
 0x9e1   :  { %v1550_v25 = vmul.f32 0.9, %v4018_v57  ;;  %v1511_v26 = vpop.f32.mrb[75].mxu1  ;;  %4028 = vmatpush3.bf16.msra.mxu0 %v1573_v15  ;;  %v1565_v27 = vadd.f32 %v1549_v17, %v4804_v51 }
 0x9e2   :  { %v1548_v59 = vmul.f32 0.9, %v1511_v26  ;;  %4029 = vmatprep.subr.bf16.mxu0 %v1574_v42  ;;  %v1563_v52 = vadd.f32 %v1547_v23, %v4810_v58  ;;  %4466 = vmatpush3.bf16.msra.mxu1 %v4463_v49 }
 0x9e3   :  { %v1566_v28 = vadd.f32 %v1550_v25, %v4801_v48 }
 0x9e4   :  { %v1564_v54 = vadd.f32 %v1548_v59, %v4807_v56 }
 0x9e5   :  { %4030 = vmatpush3.bf16.msra.mxu0 %v1574_v42  ;;  %v1576_v61 = vpack.c.bf16 %v1566_v28, %v1565_v27 }
 0x9e6   :  { %v4021_v24 = vpop.f32.mrb[76].mxu1  ;;  %v1575_v62 = vpack.c.bf16 %v1564_v54, %v1563_v52 }
 0x9e7   :  { %v1553_v30 = vmul.f32 0.9, %v4021_v24  ;;  %v1524_v63 = vpop.f32.mrb[77].mxu1 }
 0x9e8   :  { %v1551_v0 = vmul.f32 0.9, %v1524_v63  ;;  %v4022_v40 = vpop.f32.mrb[78].mxu1  ;;  %4031 = vmatprep.subr.bf16.mxu0 %v1575_v62 }
 0x9e9   :  { %v1554_v39 = vmul.f32 0.9, %v4022_v40  ;;  %v1527_v41 = vpop.f32.mrb[79].mxu1  ;;  %4032 = vmatpush3.bf16.msra.mxu0 %v1575_v62  ;;  %v1569_v45 = vadd.f32 %v1553_v30, %v4820_v16 }
 0x9ea   :  { %v1552_v43 = vmul.f32 0.9, %v1527_v41  ;;  %4033 = vmatprep.subr.bf16.mxu0 %v1576_v61  ;;  %v1567_v32 = vadd.f32 %v1551_v0, %v4826_v21 }
 0x9eb   :  { %v1570_v46 = vadd.f32 %v1554_v39, %v4817_v12 }
 0x9ec   :  { %v1568_v34 = vadd.f32 %v1552_v43, %v4823_v20 }
 0x9ed   :  { %4034 = vmatpush3.bf16.msra.mxu0 %v1576_v61  ;;  %v1578_v50 = vpack.c.bf16 %v1570_v46, %v1569_v45 }
 0x9ee   :  { %v1577_v53 = vpack.c.bf16 %v1568_v34, %v1567_v32 }
 0x9f0   :  { %4035 = vmatprep.subr.bf16.mxu0 %v1577_v53 }
 0x9f1   :  { %4036 = vmatpush3.bf16.msra.mxu0 %v1577_v53 }
 0x9f2   :  { %4037 = vmatprep.subr.bf16.mxu0 %v1578_v50 }
 0x9f5   :  { %4038 = vmatpush3.bf16.msra.mxu0 %v1578_v50 }
 0x9f8   :  { %4040 = vmatmul.mubr.bf16.vlgmr.msra.gmra.mrb[80].mxu0 %v4978_v1 }
 0x9f9   :  { %4043 = vmatprep.mubr.bf16.mxu0 %v4981_v2 }
 0xa00   :  { %4044 = vmatmul.mubr.bf16.gmra.mrb[84].mxu0 %v4984_v3 }
 0xa01   :  { %4047 = vmatprep.mubr.bf16.mxu0 %v4987_v31 }
 0xa08   :  { %4048 = vmatmul.mubr.bf16.gmra.mrb[88].mxu0 %v4990_v36 }
 0xa09   :  { %4051 = vmatprep.mubr.bf16.mxu0 %v4993_v37 }
 0xa10   :  { %4052 = vmatmul.mubr.bf16.gmra.mrb[92].mxu0 %v4996_v38 }
 0xa11   :  { %4127 = vmatprep.mubr.bf16.mxu0 %v4959_v19 }
 0xacb   :  { %v4041_v6 = vpop.f32.mrb[80].mxu0 }
 0xacc   :  { %v1678_v8 = vmul.f32 0.9, %v4041_v6  ;;  %v1613_v9 = vpop.f32.mrb[81].mxu0 }
 0xacd   :  { %v1676_v11 = vmul.f32 0.9, %v1613_v9  ;;  %v4042_v42 = vpop.f32.mrb[82].mxu0 }
 0xace   :  { %v1616_v44 = vpop.f32.mrb[83].mxu0  ;;  %v1679_v17 = vmul.f32 0.9, %v4042_v42  ;;  %v1694_v23 = vadd.f32 %v1678_v8, %v4772_v10 }
 0xacf   :  { %v1692_v15 = vadd.f32 %v1676_v11, %v4778_v14  ;;  %v1677_v18 = vmul.f32 0.9, %v1616_v44 }
 0xad0   :  { %v1695_v26 = vadd.f32 %v1679_v17, %v4769_v7  ;;  %v1710_v28 = vmax.f32 %v1694_v23, 0.0 }
 0xad1   :  { %v1708_v57 = vmax.f32 %v1692_v15, 0.0  ;;  %v1693_v25 = vadd.f32 %v1677_v18, %v4775_v13 }
 0xad2   :  { %v1711_v14 = vmax.f32 %v1695_v26, 0.0 }
 0xad3   :  { %v1709_v59 = vmax.f32 %v1693_v25, 0.0  ;;  %v4045_v27 = vpop.f32.mrb[84].mxu0  ;;  %4087 = vmatprep.mubr.f32.mxu1 %v1708_v57 }
 0xad4   :  { %v1682_v52 = vmul.f32 0.9, %v4045_v27  ;;  %v1629_v54 = vpop.f32.mrb[85].mxu0 }
 0xad5   :  { %v1680_v61 = vmul.f32 0.9, %v1629_v54  ;;  %v4046_v24 = vpop.f32.mrb[86].mxu0  ;;  %4088 = vmatmul.mubr.f32.vlgmr.msra.gmra.mrb[80].mxu1 %v1709_v59 }
 0xad6   :  { %v1632_v62 = vpop.f32.mrb[87].mxu0  ;;  %4090 = vmatprep.mubr.f32.mxu1 %v1710_v28  ;;  %v1683_v10 = vmul.f32 0.9, %v4046_v24  ;;  %v1698_v13 = vadd.f32 %v1682_v52, %v4788_v29 }
 0xad7   :  { %v1696_v30 = vadd.f32 %v1680_v61, %v4794_v35  ;;  %v1681_v63 = vmul.f32 0.9, %v1632_v62 }
 0xad8   :  { %v1699_v40 = vadd.f32 %v1683_v10, %v4785_v22  ;;  %v1714_v43 = vmax.f32 %v1698_v13, 0.0 }
 0xad9   :  { %v1712_v0 = vmax.f32 %v1696_v30, 0.0  ;;  %v1697_v7 = vadd.f32 %v1681_v63, %v4791_v33  ;;  %4091 = vmatmul.mubr.f32.gmra.mrb[82].mxu1 %v1711_v14 }
 0xada   :  { %v1715_v50 = vmax.f32 %v1699_v40, 0.0 }
 0xadb   :  { %v1713_v39 = vmax.f32 %v1697_v7, 0.0  ;;  %v4049_v41 = vpop.f32.mrb[88].mxu0  ;;  %4093 = vmatprep.mubr.f32.mxu1 %v1712_v0 }
 0xadc   :  { %v1686_v45 = vmul.f32 0.9, %v4049_v41  ;;  %v1645_v46 = vpop.f32.mrb[89].mxu0 }
 0xadd   :  { %v1684_v32 = vmul.f32 0.9, %v1645_v46  ;;  %v4050_v34 = vpop.f32.mrb[90].mxu0  ;;  %4094 = vmatmul.mubr.f32.gmra.mrb[84].mxu1 %v1713_v39 }
 0xade   :  { %v1648_v35 = vpop.f32.mrb[91].mxu0  ;;  %4096 = vmatprep.mubr.f32.mxu1 %v1714_v43  ;;  %v1687_v53 = vmul.f32 0.9, %v4050_v34  ;;  %v1702_v33 = vadd.f32 %v1686_v45, %v4804_v51 }
 0xadf   :  { %v1700_v29 = vadd.f32 %v1684_v32, %v4810_v58  ;;  %v1685_v55 = vmul.f32 0.9, %v1648_v35 }
 0xae0   :  { %v1703_v47 = vadd.f32 %v1687_v53, %v4801_v48  ;;  %v1718_v49 = vmax.f32 %v1702_v33, 0.0 }
 0xae1   :  { %v1716_v60 = vmax.f32 %v1700_v29, 0.0  ;;  %v1701_v22 = vadd.f32 %v1685_v55, %v4807_v56  ;;  %4097 = vmatmul.mubr.f32.gmra.mrb[86].mxu1 %v1715_v50 }
 0xae2   :  { %v1719_v42 = vmax.f32 %v1703_v47, 0.0 }
 0xae3   :  { %v1717_v4 = vmax.f32 %v1701_v22, 0.0  ;;  %v4053_v5 = vpop.f32.mrb[92].mxu0  ;;  %4099 = vmatprep.mubr.f32.mxu1 %v1716_v60 }
 0xae4   :  { %v1690_v6 = vmul.f32 0.9, %v4053_v5  ;;  %v1661_v8 = vpop.f32.mrb[93].mxu0 }
 0xae5   :  { %v1688_v9 = vmul.f32 0.9, %v1661_v8  ;;  %v4054_v11 = vpop.f32.mrb[94].mxu0  ;;  %4100 = vmatmul.mubr.f32.gmra.mrb[88].mxu1 %v1717_v4 }
 0xae6   :  { %v1664_v58 = vpop.f32.mrb[95].mxu0  ;;  %4102 = vmatprep.mubr.f32.mxu1 %v1718_v49  ;;  %v1691_v44 = vmul.f32 0.9, %v4054_v11  ;;  %v1706_v56 = vadd.f32 %v1690_v6, %v4820_v16 }
 0xae7   :  { %v1704_v51 = vadd.f32 %v1688_v9, %v4826_v21  ;;  %v1689_v15 = vmul.f32 0.9, %v1664_v58  ;;  %v3336_v21 = vld [vmem:[%s5467_s5] ss:$0 sm:$0xff]  ;;  %s4571_s5 = smov [#allocation5]  }
 0xae8   :  { %v1707_v18 = vadd.f32 %v1691_v44, %v4817_v12  ;;  %v1722_v57 = vmax.f32 %v1706_v56, 0.0  ;;  %s3299_s24 = sshll.u32 %s4571_s5, 4  ;;  %s3300_s24 = int_to_ptr.vmem [resolvable:$true] %s3299_s24 }
 0xae9   :  { %v1720_v17 = vmax.f32 %v1704_v51, 0.0  ;;  %v1705_v48 = vadd.f32 %v1689_v15, %v4823_v20  ;;  %4103 = vmatmul.mubr.f32.gmra.mrb[90].mxu1 %v1719_v42  ;;  %s4542_s25 = scalar_lea.vmem %s3300_s24, 2048  ;;  %p4547_p9 = scmp.lt.s32.totalorder %s3300_s24, %s3300_s24 }
 0xaea   :  { %v1723_v25 = vmax.f32 %v1707_v18, 0.0  ;;  %p4543_p8 = scmp.ne.s32.totalorder %s3300_s24, %s4542_s25  ;;  %p4548_p10 = scmp.lt.s32.totalorder %s4542_s25, %s4542_s25 }
 0xaeb   :  { %v1721_v23 = vmax.f32 %v1705_v48, 0.0  ;;  %4105 = vmatprep.mubr.f32.mxu1 %v1720_v17 }
 0xaec   :  { %p4549_p11 = por %p4548_p10, %p4547_p9 }
 0xaed   :  { %4106 = vmatmul.mubr.f32.gmra.mrb[92].mxu1 %v1721_v23 }
 0xaee   :  { %4108 = vmatprep.mubr.f32.mxu1 %v1722_v57  ;;  %p4550_p12 = pnand %p4549_p11, %p4543_p8 }
 0xaf1   :  { %4109 = vmatmul.mubr.f32.gmra.mrb[94].mxu1 %v1723_v25 }
 0xaf2   :  { %4159 = vmatprep.mubr.bf16.mxu1 %v4959_v19 }
 0xba8   :  { %v4089_v16 = vpop.f32.mrb[80].mxu1 }
 0xba9   :  { %v5115_v26 = vadd.f32 %v4089_v16, %v3336_v21  ;;  %v1813_v20 = vpop.f32.mrb[81].mxu1 }
 0xbaa   :  { %v5117_v59 = vadd.f32 %v3336_v21, %v1813_v20 }
 0xbab   :  { %v5170_v17 = vmul.f32 0.1, %v5115_v26 }
 0xbac   :  { %v1908_v12 = vpack.c.bf16 %v5115_v26, %v5117_v59  ;;  %v4092_v27 = vpop.f32.mrb[82].mxu1  ;;  %v5173_v48 = vmul.f32 0.1, %v5117_v59 }
 0xbad   :  { %v1829_v28 = vadd.f32 %v4092_v27, %v3336_v21  ;;  %v1823_v52 = vpop.f32.mrb[83].mxu1 }
 0xbae   :  { %v1824_v54 = vadd.f32 %v3336_v21, %v1823_v52  ;;  %4111 = vmatprep.subr.bf16.mxu0 %v1908_v12 }
 0xbaf   :  { %4112 = vmatpush3.bf16.msra.mxu0 %v1908_v12  ;;  %v5165_v58 = vmul.f32 0.1, %v1829_v28 }
 0xbb0   :  { %v1909_v61 = vpack.c.bf16 %v1829_v28, %v1824_v54  ;;  %v4095_v24 = vpop.f32.mrb[84].mxu1  ;;  %v5167_v44 = vmul.f32 0.1, %v1824_v54 }
 0xbb1   :  { %v5121_v62 = vadd.f32 %v4095_v24, %v3336_v21  ;;  %v1833_v14 = vpop.f32.mrb[85].mxu1 }
 0xbb2   :  { %v5123_v30 = vadd.f32 %v3336_v21, %v1833_v14  ;;  %4113 = vmatprep.subr.bf16.mxu0 %v1909_v61 }
 0xbb3   :  { %4114 = vmatpush3.bf16.msra.mxu0 %v1909_v61  ;;  %v5186_v24 = vmul.f32 0.1, %v5121_v62 }
 0xbb4   :  { %v1910_v10 = vpack.c.bf16 %v5121_v62, %v5123_v30  ;;  %v4098_v63 = vpop.f32.mrb[86].mxu1  ;;  %v5189_v14 = vmul.f32 0.1, %v5123_v30 }
 0xbb5   :  { %v5127_v13 = vadd.f32 %v4098_v63, %v3336_v21  ;;  %v1843_v0 = vpop.f32.mrb[87].mxu1 }
 0xbb6   :  { %v5129_v7 = vadd.f32 %v3336_v21, %v1843_v0  ;;  %4115 = vmatprep.subr.bf16.mxu0 %v1910_v10 }
 0xbb7   :  { %4116 = vmatpush3.bf16.msra.mxu0 %v1910_v10  ;;  %v5180_v26 = vmul.f32 0.1, %v5127_v13 }
 0xbb8   :  { %v1911_v40 = vpack.c.bf16 %v5127_v13, %v5129_v7  ;;  %v4101_v39 = vpop.f32.mrb[88].mxu1  ;;  %v5183_v52 = vmul.f32 0.1, %v5129_v7 }
 0xbb9   :  { %v5133_v41 = vadd.f32 %v4101_v39, %v3336_v21  ;;  %v1853_v43 = vpop.f32.mrb[89].mxu1 }
 0xbba   :  { %v5135_v45 = vadd.f32 %v3336_v21, %v1853_v43  ;;  %4117 = vmatprep.subr.bf16.mxu0 %v1911_v40 }
 0xbbb   :  { %4118 = vmatpush3.bf16.msra.mxu0 %v1911_v40 }
 0xbbc   :  { %v1912_v46 = vpack.c.bf16 %v5133_v41, %v5135_v45  ;;  %v4104_v32 = vpop.f32.mrb[90].mxu1 }
 0xbbd   :  { %v5139_v34 = vadd.f32 %v4104_v32, %v3336_v21  ;;  %v1863_v35 = vpop.f32.mrb[91].mxu1 }
 0xbbe   :  { %v5141_v50 = vadd.f32 %v3336_v21, %v1863_v35  ;;  %4119 = vmatprep.subr.bf16.mxu0 %v1912_v46 }
 0xbbf   :  { %4120 = vmatpush3.bf16.msra.mxu0 %v1912_v46  ;;  %v5196_v32 = vmul.f32 0.1, %v5139_v34 }
 0xbc0   :  { %v1913_v29 = vpack.c.bf16 %v5139_v34, %v5141_v50  ;;  %v4107_v53 = vpop.f32.mrb[92].mxu1 }
 0xbc1   :  { %v5145_v55 = vadd.f32 %v4107_v53, %v3336_v21  ;;  %v1873_v33 = vpop.f32.mrb[93].mxu1 }
 0xbc2   :  { %v5147_v60 = vadd.f32 %v3336_v21, %v1873_v33  ;;  %4121 = vmatprep.subr.bf16.mxu0 %v1913_v29 }
 0xbc3   :  { %4122 = vmatpush3.bf16.msra.mxu0 %v1913_v29  ;;  %v5199_v29 = vmul.f32 0.1, %v5141_v50 }
 0xbc4   :  { %v1914_v22 = vpack.c.bf16 %v5145_v55, %v5147_v60  ;;  %v4110_v47 = vpop.f32.mrb[94].mxu1 }
 0xbc5   :  { %v5151_v4 = vadd.f32 %v4110_v47, %v3336_v21  ;;  %v1883_v5 = vpop.f32.mrb[95].mxu1  ;;  %v5205_v47 = vmul.f32 0.1, %v5135_v45 }
 0xbc6   :  { %v5153_v49 = vadd.f32 %v3336_v21, %v1883_v5  ;;  %4123 = vmatprep.subr.bf16.mxu0 %v1914_v22 }
 0xbc7   :  { %4124 = vmatpush3.bf16.msra.mxu0 %v1914_v22  ;;  %v5202_v22 = vmul.f32 0.1, %v5133_v41 }
 0xbc8   :  { %v1915_v6 = vpack.c.bf16 %v5151_v4, %v5153_v49 }
 0xbca   :  { %4125 = vmatprep.subr.bf16.mxu0 %v1915_v6 }
 0xbcb   :  { %4126 = vmatpush3.bf16.msra.mxu0 %v1915_v6 }
 0xbce   :  { %4128 = vmatmul.mubr.bf16.vlgmr.msra.gmra.mrb[96].mxu0 %v4978_v1 }
 0xbcf   :  { %4131 = vmatprep.mubr.bf16.mxu0 %v4981_v2 }
 0xbd6   :  { %4132 = vmatmul.mubr.bf16.gmra.mrb[100].mxu0 %v4984_v3 }
 0xbd7   :  { %4135 = vmatprep.mubr.bf16.mxu0 %v4987_v31 }
 0xbde   :  { %4136 = vmatmul.mubr.bf16.gmra.mrb[104].mxu0 %v4990_v36 }
 0xbdf   :  { %4139 = vmatprep.mubr.bf16.mxu0 %v4993_v37 }
 0xbe6   :  { %4140 = vmatmul.mubr.bf16.gmra.mrb[108].mxu0 %v4996_v38 }
 0xbe7   :  { %4191 = vmatprep.mubr.bf16.mxu0 %v4959_v19 }
 0xca1   :  { %v4129_v8 = vpop.f32.mrb[96].mxu0 }
 0xca2   :  { %v2015_v9 = vmul.f32 0.9, %v4129_v8  ;;  %v1950_v11 = vpop.f32.mrb[97].mxu0 }
 0xca3   :  { %v2013_v42 = vmul.f32 0.9, %v1950_v11  ;;  %v4130_v51 = vpop.f32.mrb[98].mxu0 }
 0xca4   :  { %v2016_v15 = vmul.f32 0.9, %v4130_v51  ;;  %v1953_v56 = vpop.f32.mrb[99].mxu0  ;;  %v2031_v19 = vadd.f32 %v2015_v9, %v5167_v44 }
 0xca5   :  { %v2014_v18 = vmul.f32 0.9, %v1953_v56  ;;  %v2029_v57 = vadd.f32 %v2013_v42, %v5173_v48 }
 0xca6   :  { %v2032_v23 = vadd.f32 %v2016_v15, %v5165_v58  ;;  %v5212_v15 = vmul.f32 0.1, %v5151_v4 }
 0xca7   :  { %v2030_v25 = vadd.f32 %v2014_v18, %v5170_v17  ;;  %v5215_v18 = vmul.f32 0.1, %v5153_v49 }
 0xca8   :  { %v2046_v21 = vpack.c.bf16 %v2032_v23, %v2031_v19 }
 0xca9   :  { %v4133_v16 = vpop.f32.mrb[100].mxu0  ;;  %v2045_v20 = vpack.c.bf16 %v2030_v25, %v2029_v57  ;;  %v5218_v57 = vmul.f32 0.1, %v5145_v55  ;;  %v5221_v25 = vmul.f32 0.1, %v5147_v60  ;;  %v5234_v55 = vld [vmem:[#allocation2] sm:$0xff]  }
 0xcaa   :  { %v2019_v12 = vmul.f32 0.9, %v4133_v16  ;;  %v1966_v27 = vpop.f32.mrb[101].mxu0 }
 0xcab   :  { %v2017_v28 = vmul.f32 0.9, %v1966_v27  ;;  %v4134_v59 = vpop.f32.mrb[102].mxu0  ;;  %4143 = vmatprep.subr.bf16.mxu1 %v2045_v20 }
 0xcac   :  { %v2020_v54 = vmul.f32 0.9, %v4134_v59  ;;  %v1969_v61 = vpop.f32.mrb[103].mxu0  ;;  %4144 = vmatpush3.bf16.msra.mxu1 %v2045_v20  ;;  %v2035_v63 = vadd.f32 %v2019_v12, %v5183_v52 }
 0xcad   :  { %v2018_v10 = vmul.f32 0.9, %v1969_v61  ;;  %4145 = vmatprep.subr.bf16.mxu1 %v2046_v21  ;;  %v2033_v0 = vadd.f32 %v2017_v28, %v5189_v14 }
 0xcae   :  { %v2036_v13 = vadd.f32 %v2020_v54, %v5180_v26 }
 0xcaf   :  { %v2034_v7 = vadd.f32 %v2018_v10, %v5186_v24 }
 0xcb0   :  { %4146 = vmatpush3.bf16.msra.mxu1 %v2046_v21  ;;  %v2048_v40 = vpack.c.bf16 %v2036_v13, %v2035_v63 }
 0xcb1   :  { %v4137_v39 = vpop.f32.mrb[104].mxu0  ;;  %v2047_v43 = vpack.c.bf16 %v2034_v7, %v2033_v0 }
 0xcb2   :  { %v2023_v46 = vmul.f32 0.9, %v4137_v39  ;;  %v1982_v62 = vpop.f32.mrb[105].mxu0 }
 0xcb3   :  { %v2021_v30 = vmul.f32 0.9, %v1982_v62  ;;  %v4138_v35 = vpop.f32.mrb[106].mxu0  ;;  %4147 = vmatprep.subr.bf16.mxu1 %v2047_v43 }
 0xcb4   :  { %v2024_v53 = vmul.f32 0.9, %v4138_v35  ;;  %v1985_v33 = vpop.f32.mrb[107].mxu0  ;;  %4148 = vmatpush3.bf16.msra.mxu1 %v2047_v43  ;;  %v2039_v34 = vadd.f32 %v2023_v46, %v5199_v29 }
 0xcb5   :  { %v2022_v5 = vmul.f32 0.9, %v1985_v33  ;;  %4149 = vmatprep.subr.bf16.mxu1 %v2048_v40  ;;  %v2037_v8 = vadd.f32 %v2021_v30, %v5205_v47 }
 0xcb6   :  { %v2040_v6 = vadd.f32 %v2024_v53, %v5196_v32 }
 0xcb7   :  { %v2038_v50 = vadd.f32 %v2022_v5, %v5202_v22 }
 0xcb8   :  { %4150 = vmatpush3.bf16.msra.mxu1 %v2048_v40  ;;  %v2050_v9 = vpack.c.bf16 %v2040_v6, %v2039_v34 }
 0xcb9   :  { %v4141_v11 = vpop.f32.mrb[108].mxu0  ;;  %v2049_v42 = vpack.c.bf16 %v2038_v50, %v2037_v8 }
 0xcba   :  { %v2027_v51 = vmul.f32 0.9, %v4141_v11  ;;  %v1998_v41 = vpop.f32.mrb[109].mxu0 }
 0xcbb   :  { %v2025_v45 = vmul.f32 0.9, %v1998_v41  ;;  %v4142_v56 = vpop.f32.mrb[110].mxu0  ;;  %4151 = vmatprep.subr.bf16.mxu1 %v2049_v42 }
 0xcbc   :  { %v2028_v19 = vmul.f32 0.9, %v4142_v56  ;;  %v2001_v23 = vpop.f32.mrb[111].mxu0  ;;  %4152 = vmatpush3.bf16.msra.mxu1 %v2049_v42  ;;  %v2043_v4 = vadd.f32 %v2027_v51, %v5215_v18 }
 0xcbd   :  { %v2026_v21 = vmul.f32 0.9, %v2001_v23  ;;  %4153 = vmatprep.subr.bf16.mxu1 %v2050_v9  ;;  %v2041_v20 = vadd.f32 %v2025_v45, %v5221_v25 }
 0xcbe   :  { %v2044_v16 = vadd.f32 %v2028_v19, %v5212_v15 }
 0xcbf   :  { %v2042_v49 = vadd.f32 %v2026_v21, %v5218_v57 }
 0xcc0   :  { %4154 = vmatpush3.bf16.msra.mxu1 %v2050_v9  ;;  %v2052_v12 = vpack.c.bf16 %v2044_v16, %v2043_v4 }
 0xcc1   :  { %v2051_v27 = vpack.c.bf16 %v2042_v49, %v2041_v20 }
 0xcc3   :  { %4155 = vmatprep.subr.bf16.mxu1 %v2051_v27 }
 0xcc4   :  { %4156 = vmatpush3.bf16.msra.mxu1 %v2051_v27 }
 0xcc5   :  { %4157 = vmatprep.subr.bf16.mxu1 %v2052_v12 }
 0xcc8   :  { %4158 = vmatpush3.bf16.msra.mxu1 %v2052_v12 }
 0xccb   :  { %4160 = vmatmul.mubr.bf16.vlgmr.msra.gmra.mrb[96].mxu1 %v4978_v1 }
 0xccc   :  { %4163 = vmatprep.mubr.bf16.mxu1 %v4981_v2 }
 0xcd3   :  { %4164 = vmatmul.mubr.bf16.gmra.mrb[100].mxu1 %v4984_v3 }
 0xcd4   :  { %4167 = vmatprep.mubr.bf16.mxu1 %v4987_v31 }
 0xcdb   :  { %4168 = vmatmul.mubr.bf16.gmra.mrb[104].mxu1 %v4990_v36 }
 0xcdc   :  { %4171 = vmatprep.mubr.bf16.mxu1 %v4993_v37 }
 0xce3   :  { %4172 = vmatmul.mubr.bf16.gmra.mrb[108].mxu1 %v4996_v38 }
 0xce4   :  { %4223 = vmatprep.mubr.bf16.mxu1 %v5234_v55 }
 0xd9e   :  { %v4161_v60 = vpop.f32.mrb[96].mxu1 }
 0xd9f   :  { %v2152_v28 = vmul.f32 0.9, %v4161_v60  ;;  %v2087_v59 = vpop.f32.mrb[97].mxu1 }
 0xda0   :  { %v2150_v1 = vmul.f32 0.9, %v2087_v59  ;;  %v4162_v54 = vpop.f32.mrb[98].mxu1 }
 0xda1   :  { %v2153_v2 = vmul.f32 0.9, %v4162_v54  ;;  %v2090_v61 = vpop.f32.mrb[99].mxu1  ;;  %v2168_v31 = vadd.f32 %v2152_v28, %v5167_v44 }
 0xda2   :  { %v2151_v3 = vmul.f32 0.9, %v2090_v61  ;;  %v2166_v37 = vadd.f32 %v2150_v1, %v5173_v48 }
 0xda3   :  { %v2169_v36 = vadd.f32 %v2153_v2, %v5165_v58 }
 0xda4   :  { %v2167_v38 = vadd.f32 %v2151_v3, %v5170_v17 }
 0xda5   :  { %v2183_v10 = vpack.c.bf16 %v2169_v36, %v2168_v31  ;;  %v5253_v36 = vld [vmem:[#allocation2 + $0x8] sm:$0xff]  }
 0xda6   :  { %v4165_v63 = vpop.f32.mrb[100].mxu1  ;;  %v2182_v13 = vpack.c.bf16 %v2167_v38, %v2166_v37  ;;  %v5256_v37 = vld [vmem:[#allocation2 + $0x10] sm:$0xff]   ;;  %v5259_v38 = vld [vmem:[#allocation2 + $0x18] sm:$0xff]  }
 0xda7   :  { %v2156_v0 = vmul.f32 0.9, %v4165_v63  ;;  %v2103_v7 = vpop.f32.mrb[101].mxu1  ;;  %v5265_v63 = vld [vmem:[#allocation2 + $0x28] sm:$0xff]  }
 0xda8   :  { %v2154_v40 = vmul.f32 0.9, %v2103_v7  ;;  %v4166_v39 = vpop.f32.mrb[102].mxu1  ;;  %4175 = vmatprep.subr.bf16.mxu0 %v2182_v13 }
 0xda9   :  { %v2157_v43 = vmul.f32 0.9, %v4166_v39  ;;  %v2106_v46 = vpop.f32.mrb[103].mxu1  ;;  %4176 = vmatpush3.bf16.msra.mxu0 %v2182_v13  ;;  %v2172_v30 = vadd.f32 %v2156_v0, %v5183_v52  ;;  %v5268_v13 = vld [vmem:[#allocation2 + $0x30] sm:$0xff]   ;;  %v5271_v0 = vld [vmem:[#allocation2 + $0x38] sm:$0xff]  }
 0xdaa   :  { %v2155_v62 = vmul.f32 0.9, %v2106_v46  ;;  %4177 = vmatprep.subr.bf16.mxu0 %v2183_v10  ;;  %v2170_v53 = vadd.f32 %v2154_v40, %v5189_v14 }
 0xdab   :  { %v2173_v35 = vadd.f32 %v2157_v43, %v5180_v26 }
 0xdac   :  { %v2171_v33 = vadd.f32 %v2155_v62, %v5186_v24 }
 0xdad   :  { %4178 = vmatpush3.bf16.msra.mxu0 %v2183_v10  ;;  %v2185_v5 = vpack.c.bf16 %v2173_v35, %v2172_v30  ;;  %v5262_v10 = vld [vmem:[#allocation2 + $0x20] sm:$0xff]  }
 0xdae   :  { %v4169_v34 = vpop.f32.mrb[104].mxu1  ;;  %v2184_v6 = vpack.c.bf16 %v2171_v33, %v2170_v53 }
 0xdaf   :  { %v2160_v8 = vmul.f32 0.9, %v4169_v34  ;;  %v2119_v50 = vpop.f32.mrb[105].mxu1 }
 0xdb0   :  { %v2158_v9 = vmul.f32 0.9, %v2119_v50  ;;  %v4170_v11 = vpop.f32.mrb[106].mxu1  ;;  %4179 = vmatprep.subr.bf16.mxu0 %v2184_v6 }
 0xdb1   :  { %v2161_v42 = vmul.f32 0.9, %v4170_v11  ;;  %v2122_v51 = vpop.f32.mrb[107].mxu1  ;;  %4180 = vmatpush3.bf16.msra.mxu0 %v2184_v6  ;;  %v2176_v45 = vadd.f32 %v2160_v8, %v5199_v29 }
 0xdb2   :  { %v2159_v41 = vmul.f32 0.9, %v2122_v51  ;;  %4181 = vmatprep.subr.bf16.mxu0 %v2185_v5  ;;  %v2174_v19 = vadd.f32 %v2158_v9, %v5205_v47 }
 0xdb3   :  { %v2177_v56 = vadd.f32 %v2161_v42, %v5196_v32 }
 0xdb4   :  { %v2175_v23 = vadd.f32 %v2159_v41, %v5202_v22 }
 0xdb5   :  { %4182 = vmatpush3.bf16.msra.mxu0 %v2185_v5  ;;  %v2187_v21 = vpack.c.bf16 %v2177_v56, %v2176_v45 }
 0xdb6   :  { %v4173_v4 = vpop.f32.mrb[108].mxu1  ;;  %v2186_v16 = vpack.c.bf16 %v2175_v23, %v2174_v19 }
 0xdb7   :  { %v2164_v20 = vmul.f32 0.9, %v4173_v4  ;;  %v2135_v49 = vpop.f32.mrb[109].mxu1 }
 0xdb8   :  { %v2162_v12 = vmul.f32 0.9, %v2135_v49  ;;  %v4174_v27 = vpop.f32.mrb[110].mxu1  ;;  %4183 = vmatprep.subr.bf16.mxu0 %v2186_v16 }
 0xdb9   :  { %v2165_v60 = vmul.f32 0.9, %v4174_v27  ;;  %v2138_v28 = vpop.f32.mrb[111].mxu1  ;;  %4184 = vmatpush3.bf16.msra.mxu0 %v2186_v16  ;;  %v2180_v1 = vadd.f32 %v2164_v20, %v5215_v18 }
 0xdba   :  { %v2163_v59 = vmul.f32 0.9, %v2138_v28  ;;  %4185 = vmatprep.subr.bf16.mxu0 %v2187_v21  ;;  %v2178_v2 = vadd.f32 %v2162_v12, %v5221_v25 }
 0xdbb   :  { %v2181_v54 = vadd.f32 %v2165_v60, %v5212_v15 }
 0xdbc   :  { %v2179_v61 = vadd.f32 %v2163_v59, %v5218_v57 }
 0xdbd   :  { %4186 = vmatpush3.bf16.msra.mxu0 %v2187_v21  ;;  %v2189_v3 = vpack.c.bf16 %v2181_v54, %v2180_v1 }
 0xdbe   :  { %v2188_v31 = vpack.c.bf16 %v2179_v61, %v2178_v2 }
 0xdc0   :  { %4187 = vmatprep.subr.bf16.mxu0 %v2188_v31 }
 0xdc1   :  { %4188 = vmatpush3.bf16.msra.mxu0 %v2188_v31 }
 0xdc2   :  { %4189 = vmatprep.subr.bf16.mxu0 %v2189_v3 }
 0xdc5   :  { %4190 = vmatpush3.bf16.msra.mxu0 %v2189_v3 }
 0xdc8   :  { %4192 = vmatmul.mubr.bf16.vlgmr.msra.gmra.mrb[112].mxu0 %v5253_v36 }
 0xdc9   :  { %4195 = vmatprep.mubr.bf16.mxu0 %v5256_v37 }
 0xdd0   :  { %4196 = vmatmul.mubr.bf16.gmra.mrb[116].mxu0 %v5259_v38 }
 0xdd1   :  { %4199 = vmatprep.mubr.bf16.mxu0 %v5262_v10 }
 0xdd8   :  { %4200 = vmatmul.mubr.bf16.gmra.mrb[120].mxu0 %v5265_v63 }
 0xdd9   :  { %4203 = vmatprep.mubr.bf16.mxu0 %v5268_v13 }
 0xde0   :  { %4204 = vmatmul.mubr.bf16.gmra.mrb[124].mxu0 %v5271_v0 }
 0xde1   :  { %4255 = vmatprep.mubr.bf16.mxu0 %v5234_v55 }
 0xe9b   :  { %v4193_v7 = vpop.f32.mrb[112].mxu0 }
 0xe9c   :  { %v2289_v40 = vmul.f32 0.9, %v4193_v7  ;;  %v2224_v39 = vpop.f32.mrb[113].mxu0 }
 0xe9d   :  { %v2287_v43 = vmul.f32 0.9, %v2224_v39  ;;  %v4194_v46 = vpop.f32.mrb[114].mxu0 }
 0xe9e   :  { %v2290_v62 = vmul.f32 0.9, %v4194_v46  ;;  %v2227_v30 = vpop.f32.mrb[115].mxu0  ;;  %v2305_v53 = vadd.f32 %v2289_v40, %v5167_v44 }
 0xe9f   :  { %v2288_v35 = vmul.f32 0.9, %v2227_v30  ;;  %v2303_v5 = vadd.f32 %v2287_v43, %v5173_v48 }
 0xea0   :  { %v2306_v33 = vadd.f32 %v2290_v62, %v5165_v58 }
 0xea1   :  { %v2304_v34 = vadd.f32 %v2288_v35, %v5170_v17 }
 0xea2   :  { %v2320_v6 = vpack.c.bf16 %v2306_v33, %v2305_v53 }
 0xea3   :  { %v4197_v8 = vpop.f32.mrb[116].mxu0  ;;  %v2319_v50 = vpack.c.bf16 %v2304_v34, %v2303_v5 }
 0xea4   :  { %v2293_v9 = vmul.f32 0.9, %v4197_v8  ;;  %v2240_v11 = vpop.f32.mrb[117].mxu0 }
 0xea5   :  { %v2291_v42 = vmul.f32 0.9, %v2240_v11  ;;  %v4198_v51 = vpop.f32.mrb[118].mxu0  ;;  %4207 = vmatprep.subr.bf16.mxu1 %v2319_v50 }
 0xea6   :  { %v2294_v41 = vmul.f32 0.9, %v4198_v51  ;;  %v2243_v45 = vpop.f32.mrb[119].mxu0  ;;  %4208 = vmatpush3.bf16.msra.mxu1 %v2319_v50  ;;  %v2309_v19 = vadd.f32 %v2293_v9, %v5183_v52 }
 0xea7   :  { %v2292_v56 = vmul.f32 0.9, %v2243_v45  ;;  %4209 = vmatprep.subr.bf16.mxu1 %v2320_v6  ;;  %v2307_v21 = vadd.f32 %v2291_v42, %v5189_v14 }
 0xea8   :  { %v2310_v23 = vadd.f32 %v2294_v41, %v5180_v26 }
 0xea9   :  { %v2308_v4 = vadd.f32 %v2292_v56, %v5186_v24 }
 0xeaa   :  { %4210 = vmatpush3.bf16.msra.mxu1 %v2320_v6  ;;  %v2322_v16 = vpack.c.bf16 %v2310_v23, %v2309_v19 }
 0xeab   :  { %v4201_v20 = vpop.f32.mrb[120].mxu0  ;;  %v2321_v49 = vpack.c.bf16 %v2308_v4, %v2307_v21 }
 0xeac   :  { %v2297_v12 = vmul.f32 0.9, %v4201_v20  ;;  %v2256_v27 = vpop.f32.mrb[121].mxu0 }
 0xead   :  { %v2295_v60 = vmul.f32 0.9, %v2256_v27  ;;  %v4202_v28 = vpop.f32.mrb[122].mxu0  ;;  %4211 = vmatprep.subr.bf16.mxu1 %v2321_v49 }
 0xeae   :  { %v2298_v59 = vmul.f32 0.9, %v4202_v28  ;;  %v2259_v1 = vpop.f32.mrb[123].mxu0  ;;  %4212 = vmatpush3.bf16.msra.mxu1 %v2321_v49  ;;  %v2313_v2 = vadd.f32 %v2297_v12, %v5199_v29 }
 0xeaf   :  { %v2296_v54 = vmul.f32 0.9, %v2259_v1  ;;  %4213 = vmatprep.subr.bf16.mxu1 %v2322_v16  ;;  %v2311_v3 = vadd.f32 %v2295_v60, %v5205_v47 }
 0xeb0   :  { %v2314_v61 = vadd.f32 %v2298_v59, %v5196_v32 }
 0xeb1   :  { %v2312_v31 = vadd.f32 %v2296_v54, %v5202_v22 }
 0xeb2   :  { %4214 = vmatpush3.bf16.msra.mxu1 %v2322_v16  ;;  %v2324_v7 = vpack.c.bf16 %v2314_v61, %v2313_v2 }
 0xeb3   :  { %v4205_v40 = vpop.f32.mrb[124].mxu0  ;;  %v2323_v39 = vpack.c.bf16 %v2312_v31, %v2311_v3 }
 0xeb4   :  { %v2301_v43 = vmul.f32 0.9, %v4205_v40  ;;  %v2272_v46 = vpop.f32.mrb[125].mxu0 }
 0xeb5   :  { %v2299_v62 = vmul.f32 0.9, %v2272_v46  ;;  %v4206_v30 = vpop.f32.mrb[126].mxu0  ;;  %4215 = vmatprep.subr.bf16.mxu1 %v2323_v39 }
 0xeb6   :  { %v2302_v35 = vmul.f32 0.9, %v4206_v30  ;;  %v2275_v53 = vpop.f32.mrb[127].mxu0  ;;  %4216 = vmatpush3.bf16.msra.mxu1 %v2323_v39  ;;  %v2317_v5 = vadd.f32 %v2301_v43, %v5215_v18 }
 0xeb7   :  { %v2300_v33 = vmul.f32 0.9, %v2275_v53  ;;  %4217 = vmatprep.subr.bf16.mxu1 %v2324_v7  ;;  %v2315_v6 = vadd.f32 %v2299_v62, %v5221_v25 }
 0xeb8   :  { %v2318_v34 = vadd.f32 %v2302_v35, %v5212_v15 }
 0xeb9   :  { %v2316_v8 = vadd.f32 %v2300_v33, %v5218_v57 }
 0xeba   :  { %4218 = vmatpush3.bf16.msra.mxu1 %v2324_v7  ;;  %v2326_v50 = vpack.c.bf16 %v2318_v34, %v2317_v5 }
 0xebb   :  { %v2325_v9 = vpack.c.bf16 %v2316_v8, %v2315_v6 }
 0xebd   :  { %4219 = vmatprep.subr.bf16.mxu1 %v2325_v9 }
 0xebe   :  { %4220 = vmatpush3.bf16.msra.mxu1 %v2325_v9 }
 0xebf   :  { %4221 = vmatprep.subr.bf16.mxu1 %v2326_v50 }
 0xec2   :  { %4222 = vmatpush3.bf16.msra.mxu1 %v2326_v50 }
 0xec5   :  { %4224 = vmatmul.mubr.bf16.vlgmr.msra.gmra.mrb[112].mxu1 %v5253_v36 }
 0xec6   :  { %4227 = vmatprep.mubr.bf16.mxu1 %v5256_v37 }
 0xecd   :  { %4228 = vmatmul.mubr.bf16.gmra.mrb[116].mxu1 %v5259_v38 }
 0xece   :  { %4231 = vmatprep.mubr.bf16.mxu1 %v5262_v10 }
 0xed5   :  { %4232 = vmatmul.mubr.bf16.gmra.mrb[120].mxu1 %v5265_v63 }
 0xed6   :  { %4235 = vmatprep.mubr.bf16.mxu1 %v5268_v13 }
 0xedd   :  { %4236 = vmatmul.mubr.bf16.gmra.mrb[124].mxu1 %v5271_v0 }
 0xede   :  { %4287 = vmatprep.mubr.bf16.mxu1 %v5234_v55 }
 0xf98   :  { %v4225_v11 = vpop.f32.mrb[112].mxu1 }
 0xf99   :  { %v2426_v42 = vmul.f32 0.9, %v4225_v11  ;;  %v2361_v51 = vpop.f32.mrb[113].mxu1 }
 0xf9a   :  { %v2424_v41 = vmul.f32 0.9, %v2361_v51  ;;  %v4226_v45 = vpop.f32.mrb[114].mxu1 }
 0xf9b   :  { %v2427_v56 = vmul.f32 0.9, %v4226_v45  ;;  %v2364_v19 = vpop.f32.mrb[115].mxu1  ;;  %v2442_v21 = vadd.f32 %v2426_v42, %v5167_v44 }
 0xf9c   :  { %v2425_v23 = vmul.f32 0.9, %v2364_v19  ;;  %v2440_v16 = vadd.f32 %v2424_v41, %v5173_v48 }
 0xf9d   :  { %v2443_v4 = vadd.f32 %v2427_v56, %v5165_v58 }
 0xf9e   :  { %v2441_v20 = vadd.f32 %v2425_v23, %v5170_v17 }
 0xf9f   :  { %v2457_v49 = vpack.c.bf16 %v2443_v4, %v2442_v21 }
 0xfa0   :  { %v4229_v12 = vpop.f32.mrb[116].mxu1  ;;  %v2456_v27 = vpack.c.bf16 %v2441_v20, %v2440_v16 }
 0xfa1   :  { %v2430_v60 = vmul.f32 0.9, %v4229_v12  ;;  %v2377_v28 = vpop.f32.mrb[117].mxu1 }
 0xfa2   :  { %v2428_v59 = vmul.f32 0.9, %v2377_v28  ;;  %v4230_v1 = vpop.f32.mrb[118].mxu1  ;;  %4239 = vmatprep.subr.bf16.mxu0 %v2456_v27 }
 0xfa3   :  { %v2431_v54 = vmul.f32 0.9, %v4230_v1  ;;  %v2380_v2 = vpop.f32.mrb[119].mxu1  ;;  %4240 = vmatpush3.bf16.msra.mxu0 %v2456_v27  ;;  %v2446_v3 = vadd.f32 %v2430_v60, %v5183_v52 }
 0xfa4   :  { %v2429_v61 = vmul.f32 0.9, %v2380_v2  ;;  %4241 = vmatprep.subr.bf16.mxu0 %v2457_v49  ;;  %v2444_v7 = vadd.f32 %v2428_v59, %v5189_v14 }
 0xfa5   :  { %v2447_v31 = vadd.f32 %v2431_v54, %v5180_v26 }
 0xfa6   :  { %v2445_v40 = vadd.f32 %v2429_v61, %v5186_v24 }
 0xfa7   :  { %4242 = vmatpush3.bf16.msra.mxu0 %v2457_v49  ;;  %v2459_v39 = vpack.c.bf16 %v2447_v31, %v2446_v3 }
 0xfa8   :  { %v4233_v43 = vpop.f32.mrb[120].mxu1  ;;  %v2458_v46 = vpack.c.bf16 %v2445_v40, %v2444_v7 }
 0xfa9   :  { %v2434_v62 = vmul.f32 0.9, %v4233_v43  ;;  %v2393_v30 = vpop.f32.mrb[121].mxu1 }
 0xfaa   :  { %v2432_v35 = vmul.f32 0.9, %v2393_v30  ;;  %v4234_v53 = vpop.f32.mrb[122].mxu1  ;;  %4243 = vmatprep.subr.bf16.mxu0 %v2458_v46 }
 0xfab   :  { %v2435_v33 = vmul.f32 0.9, %v4234_v53  ;;  %v2396_v5 = vpop.f32.mrb[123].mxu1  ;;  %4244 = vmatpush3.bf16.msra.mxu0 %v2458_v46  ;;  %v2450_v6 = vadd.f32 %v2434_v62, %v5199_v29 }
 0xfac   :  { %v2433_v34 = vmul.f32 0.9, %v2396_v5  ;;  %4245 = vmatprep.subr.bf16.mxu0 %v2459_v39  ;;  %v2448_v50 = vadd.f32 %v2432_v35, %v5205_v47 }
 0xfad   :  { %v2451_v8 = vadd.f32 %v2435_v33, %v5196_v32 }
 0xfae   :  { %v2449_v9 = vadd.f32 %v2433_v34, %v5202_v22 }
 0xfaf   :  { %4246 = vmatpush3.bf16.msra.mxu0 %v2459_v39  ;;  %v2461_v11 = vpack.c.bf16 %v2451_v8, %v2450_v6 }
 0xfb0   :  { %v4237_v42 = vpop.f32.mrb[124].mxu1  ;;  %v2460_v51 = vpack.c.bf16 %v2449_v9, %v2448_v50 }
 0xfb1   :  { %v2438_v41 = vmul.f32 0.9, %v4237_v42  ;;  %v2409_v45 = vpop.f32.mrb[125].mxu1 }
 0xfb2   :  { %v2436_v56 = vmul.f32 0.9, %v2409_v45  ;;  %v4238_v19 = vpop.f32.mrb[126].mxu1  ;;  %4247 = vmatprep.subr.bf16.mxu0 %v2460_v51 }
 0xfb3   :  { %v2439_v23 = vmul.f32 0.9, %v4238_v19  ;;  %v2412_v21 = vpop.f32.mrb[127].mxu1  ;;  %4248 = vmatpush3.bf16.msra.mxu0 %v2460_v51  ;;  %v2454_v16 = vadd.f32 %v2438_v41, %v5215_v18 }
 0xfb4   :  { %v2437_v4 = vmul.f32 0.9, %v2412_v21  ;;  %4249 = vmatprep.subr.bf16.mxu0 %v2461_v11  ;;  %v2452_v49 = vadd.f32 %v2436_v56, %v5221_v25 }
 0xfb5   :  { %v2455_v20 = vadd.f32 %v2439_v23, %v5212_v15 }
 0xfb6   :  { %v2453_v12 = vadd.f32 %v2437_v4, %v5218_v57 }
 0xfb7   :  { %4250 = vmatpush3.bf16.msra.mxu0 %v2461_v11  ;;  %v2463_v27 = vpack.c.bf16 %v2455_v20, %v2454_v16 }
 0xfb8   :  { %v2462_v60 = vpack.c.bf16 %v2453_v12, %v2452_v49 }
 0xfba   :  { %4251 = vmatprep.subr.bf16.mxu0 %v2462_v60 }
 0xfbb   :  { %4252 = vmatpush3.bf16.msra.mxu0 %v2462_v60 }
 0xfbc   :  { %4253 = vmatprep.subr.bf16.mxu0 %v2463_v27 }
 0xfbf   :  { %4254 = vmatpush3.bf16.msra.mxu0 %v2463_v27 }
 0xfc2   :  { %4256 = vmatmul.mubr.bf16.vlgmr.msra.gmra.mrb[128].mxu0 %v5253_v36 }
 0xfc3   :  { %4259 = vmatprep.mubr.bf16.mxu0 %v5256_v37 }
 0xfca   :  { %4260 = vmatmul.mubr.bf16.gmra.mrb[132].mxu0 %v5259_v38 }
 0xfcb   :  { %4263 = vmatprep.mubr.bf16.mxu0 %v5262_v10 }
 0xfd2   :  { %4264 = vmatmul.mubr.bf16.gmra.mrb[136].mxu0 %v5265_v63 }
 0xfd3   :  { %4267 = vmatprep.mubr.bf16.mxu0 %v5268_v13 }
 0xfda   :  { %4268 = vmatmul.mubr.bf16.gmra.mrb[140].mxu0 %v5271_v0 }
 0xfdb   :  { %4319 = vmatprep.mubr.bf16.mxu0 %v5234_v55 }
0x1095   :  { %v4257_v28 = vpop.f32.mrb[128].mxu0 }
0x1096   :  { %v2563_v59 = vmul.f32 0.9, %v4257_v28  ;;  %v2498_v1 = vpop.f32.mrb[129].mxu0 }
0x1097   :  { %v2561_v54 = vmul.f32 0.9, %v2498_v1  ;;  %v4258_v2 = vpop.f32.mrb[130].mxu0 }
0x1098   :  { %v2564_v61 = vmul.f32 0.9, %v4258_v2  ;;  %v2501_v3 = vpop.f32.mrb[131].mxu0  ;;  %v2579_v7 = vadd.f32 %v2563_v59, %v5167_v44 }
0x1099   :  { %v2562_v31 = vmul.f32 0.9, %v2501_v3  ;;  %v2577_v39 = vadd.f32 %v2561_v54, %v5173_v48 }
0x109a   :  { %v2580_v40 = vadd.f32 %v2564_v61, %v5165_v58 }
0x109b   :  { %v2578_v43 = vadd.f32 %v2562_v31, %v5170_v17 }
0x109c   :  { %v2594_v46 = vpack.c.bf16 %v2580_v40, %v2579_v7 }
0x109d   :  { %v4261_v62 = vpop.f32.mrb[132].mxu0  ;;  %v2593_v30 = vpack.c.bf16 %v2578_v43, %v2577_v39 }
0x109e   :  { %v2567_v35 = vmul.f32 0.9, %v4261_v62  ;;  %v2514_v53 = vpop.f32.mrb[133].mxu0 }
0x109f   :  { %v2565_v33 = vmul.f32 0.9, %v2514_v53  ;;  %v4262_v5 = vpop.f32.mrb[134].mxu0  ;;  %4271 = vmatprep.subr.bf16.mxu1 %v2593_v30 }
0x10a0   :  { %v2568_v34 = vmul.f32 0.9, %v4262_v5  ;;  %v2517_v6 = vpop.f32.mrb[135].mxu0  ;;  %4272 = vmatpush3.bf16.msra.mxu1 %v2593_v30  ;;  %v2583_v50 = vadd.f32 %v2567_v35, %v5183_v52 }
0x10a1   :  { %v2566_v8 = vmul.f32 0.9, %v2517_v6  ;;  %4273 = vmatprep.subr.bf16.mxu1 %v2594_v46  ;;  %v2581_v11 = vadd.f32 %v2565_v33, %v5189_v14 }
0x10a2   :  { %v2584_v9 = vadd.f32 %v2568_v34, %v5180_v26 }
0x10a3   :  { %v2582_v42 = vadd.f32 %v2566_v8, %v5186_v24 }
0x10a4   :  { %4274 = vmatpush3.bf16.msra.mxu1 %v2594_v46  ;;  %v2596_v51 = vpack.c.bf16 %v2584_v9, %v2583_v50 }
0x10a5   :  { %v4265_v41 = vpop.f32.mrb[136].mxu0  ;;  %v2595_v45 = vpack.c.bf16 %v2582_v42, %v2581_v11 }
0x10a6   :  { %v2571_v56 = vmul.f32 0.9, %v4265_v41  ;;  %v2530_v19 = vpop.f32.mrb[137].mxu0 }
0x10a7   :  { %v2569_v23 = vmul.f32 0.9, %v2530_v19  ;;  %v4266_v21 = vpop.f32.mrb[138].mxu0  ;;  %4275 = vmatprep.subr.bf16.mxu1 %v2595_v45 }
0x10a8   :  { %v2572_v4 = vmul.f32 0.9, %v4266_v21  ;;  %v2533_v16 = vpop.f32.mrb[139].mxu0  ;;  %4276 = vmatpush3.bf16.msra.mxu1 %v2595_v45  ;;  %v2587_v49 = vadd.f32 %v2571_v56, %v5199_v29 }
0x10a9   :  { %v2570_v20 = vmul.f32 0.9, %v2533_v16  ;;  %4277 = vmatprep.subr.bf16.mxu1 %v2596_v51  ;;  %v2585_v27 = vadd.f32 %v2569_v23, %v5205_v47 }
0x10aa   :  { %v2588_v12 = vadd.f32 %v2572_v4, %v5196_v32 }
0x10ab   :  { %v2586_v60 = vadd.f32 %v2570_v20, %v5202_v22 }
0x10ac   :  { %4278 = vmatpush3.bf16.msra.mxu1 %v2596_v51  ;;  %v2598_v28 = vpack.c.bf16 %v2588_v12, %v2587_v49 }
0x10ad   :  { %v4269_v59 = vpop.f32.mrb[140].mxu0  ;;  %v2597_v1 = vpack.c.bf16 %v2586_v60, %v2585_v27 }
0x10ae   :  { %v2575_v54 = vmul.f32 0.9, %v4269_v59  ;;  %v2546_v2 = vpop.f32.mrb[141].mxu0 }
0x10af   :  { %v2573_v61 = vmul.f32 0.9, %v2546_v2  ;;  %v4270_v3 = vpop.f32.mrb[142].mxu0  ;;  %4279 = vmatprep.subr.bf16.mxu1 %v2597_v1 }
0x10b0   :  { %v2576_v31 = vmul.f32 0.9, %v4270_v3  ;;  %v2549_v7 = vpop.f32.mrb[143].mxu0  ;;  %4280 = vmatpush3.bf16.msra.mxu1 %v2597_v1  ;;  %v2591_v39 = vadd.f32 %v2575_v54, %v5215_v18 }
0x10b1   :  { %v2574_v40 = vmul.f32 0.9, %v2549_v7  ;;  %4281 = vmatprep.subr.bf16.mxu1 %v2598_v28  ;;  %v2589_v46 = vadd.f32 %v2573_v61, %v5221_v25 }
0x10b2   :  { %v2592_v43 = vadd.f32 %v2576_v31, %v5212_v15 }
0x10b3   :  { %v2590_v62 = vadd.f32 %v2574_v40, %v5218_v57 }
0x10b4   :  { %4282 = vmatpush3.bf16.msra.mxu1 %v2598_v28  ;;  %v2600_v30 = vpack.c.bf16 %v2592_v43, %v2591_v39 }
0x10b5   :  { %v2599_v35 = vpack.c.bf16 %v2590_v62, %v2589_v46 }
0x10b7   :  { %4283 = vmatprep.subr.bf16.mxu1 %v2599_v35 }
0x10b8   :  { %4284 = vmatpush3.bf16.msra.mxu1 %v2599_v35 }
0x10b9   :  { %4285 = vmatprep.subr.bf16.mxu1 %v2600_v30 }
0x10bc   :  { %4286 = vmatpush3.bf16.msra.mxu1 %v2600_v30 }
0x10bf   :  { %4288 = vmatmul.mubr.bf16.vlgmr.msra.gmra.mrb[128].mxu1 %v5253_v36 }
0x10c0   :  { %4291 = vmatprep.mubr.bf16.mxu1 %v5256_v37 }
0x10c7   :  { %4292 = vmatmul.mubr.bf16.gmra.mrb[132].mxu1 %v5259_v38 }
0x10c8   :  { %4295 = vmatprep.mubr.bf16.mxu1 %v5262_v10 }
0x10cf   :  { %4296 = vmatmul.mubr.bf16.gmra.mrb[136].mxu1 %v5265_v63 }
0x10d0   :  { %4299 = vmatprep.mubr.bf16.mxu1 %v5268_v13 }
0x10d7   :  { %4300 = vmatmul.mubr.bf16.gmra.mrb[140].mxu1 %v5271_v0 }
0x10d8   :  { %4351 = vmatprep.mubr.bf16.mxu1 %v5234_v55 }
0x1192   :  { %v4289_v53 = vpop.f32.mrb[128].mxu1 }
0x1193   :  { %v2700_v33 = vmul.f32 0.9, %v4289_v53  ;;  %v2635_v5 = vpop.f32.mrb[129].mxu1 }
0x1194   :  { %v2698_v34 = vmul.f32 0.9, %v2635_v5  ;;  %v4290_v6 = vpop.f32.mrb[130].mxu1 }
0x1195   :  { %v2701_v8 = vmul.f32 0.9, %v4290_v6  ;;  %v2638_v50 = vpop.f32.mrb[131].mxu1  ;;  %v2716_v11 = vadd.f32 %v2700_v33, %v5167_v44 }
0x1196   :  { %v2699_v9 = vmul.f32 0.9, %v2638_v50  ;;  %v2714_v51 = vadd.f32 %v2698_v34, %v5173_v48 }
0x1197   :  { %v2717_v42 = vadd.f32 %v2701_v8, %v5165_v58 }
0x1198   :  { %v2715_v41 = vadd.f32 %v2699_v9, %v5170_v17 }
0x1199   :  { %v2731_v45 = vpack.c.bf16 %v2717_v42, %v2716_v11 }
0x119a   :  { %v4293_v56 = vpop.f32.mrb[132].mxu1  ;;  %v2730_v19 = vpack.c.bf16 %v2715_v41, %v2714_v51 }
0x119b   :  { %v2704_v23 = vmul.f32 0.9, %v4293_v56  ;;  %v2651_v21 = vpop.f32.mrb[133].mxu1 }
0x119c   :  { %v2702_v4 = vmul.f32 0.9, %v2651_v21  ;;  %v4294_v16 = vpop.f32.mrb[134].mxu1  ;;  %4303 = vmatprep.subr.bf16.mxu0 %v2730_v19 }
0x119d   :  { %v2705_v20 = vmul.f32 0.9, %v4294_v16  ;;  %v2654_v49 = vpop.f32.mrb[135].mxu1  ;;  %4304 = vmatpush3.bf16.msra.mxu0 %v2730_v19  ;;  %v2720_v27 = vadd.f32 %v2704_v23, %v5183_v52 }
0x119e   :  { %v2703_v12 = vmul.f32 0.9, %v2654_v49  ;;  %4305 = vmatprep.subr.bf16.mxu0 %v2731_v45  ;;  %v2718_v28 = vadd.f32 %v2702_v4, %v5189_v14 }
0x119f   :  { %v2721_v60 = vadd.f32 %v2705_v20, %v5180_v26 }
0x11a0   :  { %v2719_v59 = vadd.f32 %v2703_v12, %v5186_v24 }
0x11a1   :  { %4306 = vmatpush3.bf16.msra.mxu0 %v2731_v45  ;;  %v2733_v1 = vpack.c.bf16 %v2721_v60, %v2720_v27 }
0x11a2   :  { %v4297_v54 = vpop.f32.mrb[136].mxu1  ;;  %v2732_v2 = vpack.c.bf16 %v2719_v59, %v2718_v28 }
0x11a3   :  { %v2708_v61 = vmul.f32 0.9, %v4297_v54  ;;  %v2667_v3 = vpop.f32.mrb[137].mxu1 }
0x11a4   :  { %v2706_v31 = vmul.f32 0.9, %v2667_v3  ;;  %v4298_v7 = vpop.f32.mrb[138].mxu1  ;;  %4307 = vmatprep.subr.bf16.mxu0 %v2732_v2 }
0x11a5   :  { %v2709_v40 = vmul.f32 0.9, %v4298_v7  ;;  %v2670_v39 = vpop.f32.mrb[139].mxu1  ;;  %4308 = vmatpush3.bf16.msra.mxu0 %v2732_v2  ;;  %v2724_v46 = vadd.f32 %v2708_v61, %v5199_v29 }
0x11a6   :  { %v2707_v43 = vmul.f32 0.9, %v2670_v39  ;;  %4309 = vmatprep.subr.bf16.mxu0 %v2733_v1  ;;  %v2722_v30 = vadd.f32 %v2706_v31, %v5205_v47 }
0x11a7   :  { %v2725_v62 = vadd.f32 %v2709_v40, %v5196_v32 }
0x11a8   :  { %v2723_v35 = vadd.f32 %v2707_v43, %v5202_v22 }
0x11a9   :  { %4310 = vmatpush3.bf16.msra.mxu0 %v2733_v1  ;;  %v2735_v53 = vpack.c.bf16 %v2725_v62, %v2724_v46 }
0x11aa   :  { %v4301_v33 = vpop.f32.mrb[140].mxu1  ;;  %v2734_v5 = vpack.c.bf16 %v2723_v35, %v2722_v30 }
0x11ab   :  { %v2712_v34 = vmul.f32 0.9, %v4301_v33  ;;  %v2683_v6 = vpop.f32.mrb[141].mxu1 }
0x11ac   :  { %v2710_v8 = vmul.f32 0.9, %v2683_v6  ;;  %v4302_v50 = vpop.f32.mrb[142].mxu1  ;;  %4311 = vmatprep.subr.bf16.mxu0 %v2734_v5 }
0x11ad   :  { %v2713_v9 = vmul.f32 0.9, %v4302_v50  ;;  %v2686_v11 = vpop.f32.mrb[143].mxu1  ;;  %4312 = vmatpush3.bf16.msra.mxu0 %v2734_v5  ;;  %v2728_v51 = vadd.f32 %v2712_v34, %v5215_v18 }
0x11ae   :  { %v2711_v42 = vmul.f32 0.9, %v2686_v11  ;;  %4313 = vmatprep.subr.bf16.mxu0 %v2735_v53  ;;  %v2726_v45 = vadd.f32 %v2710_v8, %v5221_v25 }
0x11af   :  { %v2729_v41 = vadd.f32 %v2713_v9, %v5212_v15 }
0x11b0   :  { %v2727_v56 = vadd.f32 %v2711_v42, %v5218_v57 }
0x11b1   :  { %4314 = vmatpush3.bf16.msra.mxu0 %v2735_v53  ;;  %v2737_v19 = vpack.c.bf16 %v2729_v41, %v2728_v51 }
0x11b2   :  { %v2736_v23 = vpack.c.bf16 %v2727_v56, %v2726_v45 }
0x11b4   :  { %4315 = vmatprep.subr.bf16.mxu0 %v2736_v23 }
0x11b5   :  { %4316 = vmatpush3.bf16.msra.mxu0 %v2736_v23 }
0x11b6   :  { %4317 = vmatprep.subr.bf16.mxu0 %v2737_v19 }
0x11b9   :  { %4318 = vmatpush3.bf16.msra.mxu0 %v2737_v19 }
0x11bc   :  { %4320 = vmatmul.mubr.bf16.vlgmr.msra.gmra.mrb[144].mxu0 %v5253_v36 }
0x11bd   :  { %4323 = vmatprep.mubr.bf16.mxu0 %v5256_v37 }
0x11c4   :  { %4324 = vmatmul.mubr.bf16.gmra.mrb[148].mxu0 %v5259_v38 }
0x11c5   :  { %4327 = vmatprep.mubr.bf16.mxu0 %v5262_v10 }
0x11cc   :  { %4328 = vmatmul.mubr.bf16.gmra.mrb[152].mxu0 %v5265_v63 }
0x11cd   :  { %4331 = vmatprep.mubr.bf16.mxu0 %v5268_v13 }
0x11d4   :  { %4332 = vmatmul.mubr.bf16.gmra.mrb[156].mxu0 %v5271_v0 }
0x11d5   :  { %4383 = vmatprep.mubr.bf16.mxu0 %v5234_v55 }
0x128f   :  { %v4321_v21 = vpop.f32.mrb[144].mxu0 }
0x1290   :  { %v2837_v4 = vmul.f32 0.9, %v4321_v21  ;;  %v2772_v16 = vpop.f32.mrb[145].mxu0 }
0x1291   :  { %v2835_v20 = vmul.f32 0.9, %v2772_v16  ;;  %v4322_v49 = vpop.f32.mrb[146].mxu0 }
0x1292   :  { %v2838_v12 = vmul.f32 0.9, %v4322_v49  ;;  %v2775_v27 = vpop.f32.mrb[147].mxu0  ;;  %v2853_v28 = vadd.f32 %v2837_v4, %v5167_v44 }
0x1293   :  { %v2836_v60 = vmul.f32 0.9, %v2775_v27  ;;  %v2851_v1 = vadd.f32 %v2835_v20, %v5173_v48 }
0x1294   :  { %v2854_v59 = vadd.f32 %v2838_v12, %v5165_v58 }
0x1295   :  { %v2852_v54 = vadd.f32 %v2836_v60, %v5170_v17 }
0x1296   :  { %v2868_v2 = vpack.c.bf16 %v2854_v59, %v2853_v28 }
0x1297   :  { %v4325_v61 = vpop.f32.mrb[148].mxu0  ;;  %v2867_v3 = vpack.c.bf16 %v2852_v54, %v2851_v1 }
0x1298   :  { %v2841_v55 = vmul.f32 0.9, %v4325_v61  ;;  %v2788_v31 = vpop.f32.mrb[149].mxu0 }
0x1299   :  { %v2839_v7 = vmul.f32 0.9, %v2788_v31  ;;  %v4326_v40 = vpop.f32.mrb[150].mxu0  ;;  %4335 = vmatprep.subr.bf16.mxu1 %v2867_v3 }
0x129a   :  { %v2842_v39 = vmul.f32 0.9, %v4326_v40  ;;  %v2791_v43 = vpop.f32.mrb[151].mxu0  ;;  %4336 = vmatpush3.bf16.msra.mxu1 %v2867_v3  ;;  %v2857_v62 = vadd.f32 %v2841_v55, %v5183_v52 }
0x129b   :  { %v2840_v46 = vmul.f32 0.9, %v2791_v43  ;;  %4337 = vmatprep.subr.bf16.mxu1 %v2868_v2  ;;  %v2855_v35 = vadd.f32 %v2839_v7, %v5189_v14 }
0x129c   :  { %v2858_v30 = vadd.f32 %v2842_v39, %v5180_v26 }
0x129d   :  { %v2856_v53 = vadd.f32 %v2840_v46, %v5186_v24 }
0x129e   :  { %4338 = vmatpush3.bf16.msra.mxu1 %v2868_v2  ;;  %v2870_v33 = vpack.c.bf16 %v2858_v30, %v2857_v62 }
0x129f   :  { %v4329_v5 = vpop.f32.mrb[152].mxu0  ;;  %v2869_v34 = vpack.c.bf16 %v2856_v53, %v2855_v35 }
0x12a0   :  { %v2845_v6 = vmul.f32 0.9, %v4329_v5  ;;  %v2804_v8 = vpop.f32.mrb[153].mxu0 }
0x12a1   :  { %v2843_v50 = vmul.f32 0.9, %v2804_v8  ;;  %v4330_v9 = vpop.f32.mrb[154].mxu0  ;;  %4339 = vmatprep.subr.bf16.mxu1 %v2869_v34 }
0x12a2   :  { %v2846_v11 = vmul.f32 0.9, %v4330_v9  ;;  %v2807_v42 = vpop.f32.mrb[155].mxu0  ;;  %4340 = vmatpush3.bf16.msra.mxu1 %v2869_v34  ;;  %v2861_v41 = vadd.f32 %v2845_v6, %v5199_v29 }
0x12a3   :  { %v2844_v51 = vmul.f32 0.9, %v2807_v42  ;;  %4341 = vmatprep.subr.bf16.mxu1 %v2870_v33  ;;  %v2859_v56 = vadd.f32 %v2843_v50, %v5205_v47 }
0x12a4   :  { %v2862_v45 = vadd.f32 %v2846_v11, %v5196_v32 }
0x12a5   :  { %v2860_v19 = vadd.f32 %v2844_v51, %v5202_v22 }
0x12a6   :  { %4342 = vmatpush3.bf16.msra.mxu1 %v2870_v33  ;;  %v2872_v23 = vpack.c.bf16 %v2862_v45, %v2861_v41 }
0x12a7   :  { %v4333_v21 = vpop.f32.mrb[156].mxu0  ;;  %v2871_v4 = vpack.c.bf16 %v2860_v19, %v2859_v56 }
0x12a8   :  { %v2849_v16 = vmul.f32 0.9, %v4333_v21  ;;  %v2820_v20 = vpop.f32.mrb[157].mxu0 }
0x12a9   :  { %v2847_v49 = vmul.f32 0.9, %v2820_v20  ;;  %v4334_v12 = vpop.f32.mrb[158].mxu0  ;;  %4343 = vmatprep.subr.bf16.mxu1 %v2871_v4 }
0x12aa   :  { %v2850_v27 = vmul.f32 0.9, %v4334_v12  ;;  %v2823_v60 = vpop.f32.mrb[159].mxu0  ;;  %4344 = vmatpush3.bf16.msra.mxu1 %v2871_v4  ;;  %v2865_v59 = vadd.f32 %v2849_v16, %v5215_v18 }
0x12ab   :  { %v2848_v28 = vmul.f32 0.9, %v2823_v60  ;;  %4345 = vmatprep.subr.bf16.mxu1 %v2872_v23  ;;  %v2863_v54 = vadd.f32 %v2847_v49, %v5221_v25 }
0x12ac   :  { %v2866_v1 = vadd.f32 %v2850_v27, %v5212_v15 }
0x12ad   :  { %v2864_v2 = vadd.f32 %v2848_v28, %v5218_v57 }
0x12ae   :  { %4346 = vmatpush3.bf16.msra.mxu1 %v2872_v23  ;;  %v2874_v61 = vpack.c.bf16 %v2866_v1, %v2865_v59 }
0x12af   :  { %v2873_v3 = vpack.c.bf16 %v2864_v2, %v2863_v54 }
0x12b1   :  { %4347 = vmatprep.subr.bf16.mxu1 %v2873_v3 }
0x12b2   :  { %4348 = vmatpush3.bf16.msra.mxu1 %v2873_v3 }
0x12b3   :  { %4349 = vmatprep.subr.bf16.mxu1 %v2874_v61 }
0x12b6   :  { %4350 = vmatpush3.bf16.msra.mxu1 %v2874_v61 }
0x12b9   :  { %4352 = vmatmul.mubr.bf16.vlgmr.msra.gmra.mrb[144].mxu1 %v5253_v36 }
0x12ba   :  { %4355 = vmatprep.mubr.bf16.mxu1 %v5256_v37 }
0x12c1   :  { %4356 = vmatmul.mubr.bf16.gmra.mrb[148].mxu1 %v5259_v38 }
0x12c2   :  { %4359 = vmatprep.mubr.bf16.mxu1 %v5262_v10 }
0x12c9   :  { %4360 = vmatmul.mubr.bf16.gmra.mrb[152].mxu1 %v5265_v63 }
0x12ca   :  { %4363 = vmatprep.mubr.bf16.mxu1 %v5268_v13 }
0x12d1   :  { %4364 = vmatmul.mubr.bf16.gmra.mrb[156].mxu1 %v5271_v0 }
0x12d2   :  { %4419 = vmatprep.mubr.bf16.mxu1 %v5256_v37 }
0x138c   :  { %v4353_v55 = vpop.f32.mrb[144].mxu1 }
0x138d   :  { %v2974_v31 = vmul.f32 0.9, %v4353_v55  ;;  %v2909_v7 = vpop.f32.mrb[145].mxu1 }
0x138e   :  { %v2972_v40 = vmul.f32 0.9, %v2909_v7  ;;  %v4354_v39 = vpop.f32.mrb[146].mxu1 }
0x138f   :  { %v2975_v43 = vmul.f32 0.9, %v4354_v39  ;;  %v2912_v46 = vpop.f32.mrb[147].mxu1  ;;  %v2990_v30 = vadd.f32 %v2974_v31, %v5167_v44 }
0x1390   :  { %v2973_v62 = vmul.f32 0.9, %v2912_v46  ;;  %v2988_v53 = vadd.f32 %v2972_v40, %v5173_v48 }
0x1391   :  { %v2991_v35 = vadd.f32 %v2975_v43, %v5165_v58 }
0x1392   :  { %v2989_v33 = vadd.f32 %v2973_v62, %v5170_v17 }
0x1393   :  { %v3005_v5 = vpack.c.bf16 %v2991_v35, %v2990_v30 }
0x1394   :  { %v4357_v34 = vpop.f32.mrb[148].mxu1  ;;  %v3004_v6 = vpack.c.bf16 %v2989_v33, %v2988_v53 }
0x1395   :  { %v2978_v8 = vmul.f32 0.9, %v4357_v34  ;;  %v2925_v50 = vpop.f32.mrb[149].mxu1 }
0x1396   :  { %v2976_v9 = vmul.f32 0.9, %v2925_v50  ;;  %v4358_v11 = vpop.f32.mrb[150].mxu1  ;;  %4367 = vmatprep.subr.bf16.mxu0 %v3004_v6 }
0x1397   :  { %v2979_v42 = vmul.f32 0.9, %v4358_v11  ;;  %v2928_v51 = vpop.f32.mrb[151].mxu1  ;;  %4368 = vmatpush3.bf16.msra.mxu0 %v3004_v6  ;;  %v2994_v45 = vadd.f32 %v2978_v8, %v5183_v52  ;;  %v4513_v8 = vld [vmem:[#allocation2] sm:$0xff]  }
0x1398   :  { %v2977_v41 = vmul.f32 0.9, %v2928_v51  ;;  %4369 = vmatprep.subr.bf16.mxu0 %v3005_v5  ;;  %v2992_v19 = vadd.f32 %v2976_v9, %v5189_v14 }
0x1399   :  { %v2995_v56 = vadd.f32 %v2979_v42, %v5180_v26 }
0x139a   :  { %v2993_v23 = vadd.f32 %v2977_v41, %v5186_v24 }
0x139b   :  { %4370 = vmatpush3.bf16.msra.mxu0 %v3005_v5  ;;  %v3007_v21 = vpack.c.bf16 %v2995_v56, %v2994_v45 }
0x139c   :  { %v4361_v4 = vpop.f32.mrb[152].mxu1  ;;  %v3006_v16 = vpack.c.bf16 %v2993_v23, %v2992_v19 }
0x139d   :  { %v2982_v20 = vmul.f32 0.9, %v4361_v4  ;;  %v2941_v49 = vpop.f32.mrb[153].mxu1 }
0x139e   :  { %v2980_v12 = vmul.f32 0.9, %v2941_v49  ;;  %v4362_v27 = vpop.f32.mrb[154].mxu1  ;;  %4371 = vmatprep.subr.bf16.mxu0 %v3006_v16 }
0x139f   :  { %v2983_v60 = vmul.f32 0.9, %v4362_v27  ;;  %v2944_v28 = vpop.f32.mrb[155].mxu1  ;;  %4372 = vmatpush3.bf16.msra.mxu0 %v3006_v16  ;;  %v2998_v1 = vadd.f32 %v2982_v20, %v5199_v29 }
0x13a0   :  { %v2981_v59 = vmul.f32 0.9, %v2944_v28  ;;  %4373 = vmatprep.subr.bf16.mxu0 %v3007_v21  ;;  %v2996_v2 = vadd.f32 %v2980_v12, %v5205_v47 }
0x13a1   :  { %v2999_v54 = vadd.f32 %v2983_v60, %v5196_v32 }
0x13a2   :  { %v2997_v61 = vadd.f32 %v2981_v59, %v5202_v22 }
0x13a3   :  { %4374 = vmatpush3.bf16.msra.mxu0 %v3007_v21  ;;  %v3009_v3 = vpack.c.bf16 %v2999_v54, %v2998_v1 }
0x13a4   :  { %v4365_v55 = vpop.f32.mrb[156].mxu1  ;;  %v3008_v31 = vpack.c.bf16 %v2997_v61, %v2996_v2 }
0x13a5   :  { %v2986_v7 = vmul.f32 0.9, %v4365_v55  ;;  %v2957_v40 = vpop.f32.mrb[157].mxu1 }
0x13a6   :  { %v2984_v39 = vmul.f32 0.9, %v2957_v40  ;;  %v4366_v43 = vpop.f32.mrb[158].mxu1  ;;  %4375 = vmatprep.subr.bf16.mxu0 %v3008_v31 }
0x13a7   :  { %v2987_v46 = vmul.f32 0.9, %v4366_v43  ;;  %v2960_v62 = vpop.f32.mrb[159].mxu1  ;;  %4376 = vmatpush3.bf16.msra.mxu0 %v3008_v31  ;;  %v3002_v35 = vadd.f32 %v2986_v7, %v5215_v18 }
0x13a8   :  { %v2985_v30 = vmul.f32 0.9, %v2960_v62  ;;  %4377 = vmatprep.subr.bf16.mxu0 %v3009_v3  ;;  %v3000_v33 = vadd.f32 %v2984_v39, %v5221_v25 }
0x13a9   :  { %v3003_v53 = vadd.f32 %v2987_v46, %v5212_v15 }
0x13aa   :  { %v3001_v5 = vadd.f32 %v2985_v30, %v5218_v57 }
0x13ab   :  { %4378 = vmatpush3.bf16.msra.mxu0 %v3009_v3  ;;  %v3011_v34 = vpack.c.bf16 %v3003_v53, %v3002_v35 }
0x13ac   :  { %v3010_v6 = vpack.c.bf16 %v3001_v5, %v3000_v33 }
0x13ae   :  { %4379 = vmatprep.subr.bf16.mxu0 %v3010_v6 }
0x13af   :  { %4380 = vmatpush3.bf16.msra.mxu0 %v3010_v6 }
0x13b0   :  { %4381 = vmatprep.subr.bf16.mxu0 %v3011_v34 }
0x13b3   :  { %4382 = vmatpush3.bf16.msra.mxu0 %v3011_v34 }
0x13b6   :  { %4384 = vmatmul.mubr.bf16.vlgmr.msra.gmra.mrb[160].mxu0 %v5253_v36 }
0x13b7   :  { %4387 = vmatprep.mubr.bf16.mxu0 %v5256_v37 }
0x13be   :  { %4388 = vmatmul.mubr.bf16.gmra.mrb[164].mxu0 %v5259_v38 }
0x13bf   :  { %4391 = vmatprep.mubr.bf16.mxu0 %v5262_v10 }
0x13c6   :  { %4392 = vmatmul.mubr.bf16.gmra.mrb[168].mxu0 %v5265_v63 }
0x13c7   :  { %4395 = vmatprep.mubr.bf16.mxu0 %v5268_v13 }
0x13ce   :  { %4396 = vmatmul.mubr.bf16.gmra.mrb[172].mxu0 %v5271_v0 }
0x13cf   :  { %4415 = vmatprep.mubr.bf16.mxu0 %v4513_v8 }
0x1489   :  { %v4385_v50 = vpop.f32.mrb[160].mxu0 }
0x148a   :  { %v3111_v9 = vmul.f32 0.9, %v4385_v50  ;;  %v3046_v11 = vpop.f32.mrb[161].mxu0 }
0x148b   :  { %v3109_v42 = vmul.f32 0.9, %v3046_v11  ;;  %v4386_v51 = vpop.f32.mrb[162].mxu0 }
0x148c   :  { %v3112_v36 = vmul.f32 0.9, %v4386_v51  ;;  %v3049_v41 = vpop.f32.mrb[163].mxu0  ;;  %v3127_v38 = vadd.f32 %v3111_v9, %v5167_v44 }
0x148d   :  { %v3110_v37 = vmul.f32 0.9, %v3049_v41  ;;  %v3125_v63 = vadd.f32 %v3109_v42, %v5173_v48 }
0x148e   :  { %v3128_v10 = vadd.f32 %v3112_v36, %v5165_v58 }
0x148f   :  { %v3126_v13 = vadd.f32 %v3110_v37, %v5170_v17 }
0x1490   :  { %v3142_v45 = vpack.c.bf16 %v3128_v10, %v3127_v38  ;;  %v4514_v38 = vld [vmem:[#allocation2 + $0x8] sm:$0xff]   ;;  %v4515_v10 = vld [vmem:[#allocation2 + $0x18] sm:$0xff]  }
0x1491   :  { %v3141_v0 = vpack.c.bf16 %v3126_v13, %v3125_v63  ;;  %v4389_v56 = vpop.f32.mrb[164].mxu0  ;;  %v4516_v63 = vld [vmem:[#allocation2 + $0x20] sm:$0xff]   ;;  %v4517_v13 = vld [vmem:[#allocation2 + $0x28] sm:$0xff]  }
0x1492   :  { %v3115_v19 = vmul.f32 0.9, %v4389_v56  ;;  %v3062_v23 = vpop.f32.mrb[165].mxu0 }
0x1493   :  { %v3113_v21 = vmul.f32 0.9, %v3062_v23  ;;  %v4390_v4 = vpop.f32.mrb[166].mxu0  ;;  %4399 = vmatprep.subr.bf16.mxu0 %v3141_v0  ;;  %4467 = vmatprep.subr.bf16.mxu1 %v3141_v0 }
0x1494   :  { %v3116_v16 = vmul.f32 0.9, %v4390_v4  ;;  %v3065_v20 = vpop.f32.mrb[167].mxu0  ;;  %4400 = vmatpush3.bf16.msra.mxu0 %v3141_v0  ;;  %4475 = vmatpush3.bf16.msra.mxu1 %v3141_v0  ;;  %v3131_v12 = vadd.f32 %v3115_v19, %v5183_v52  ;;  %v4519_v0 = vld [vmem:[#allocation2 + $0x38] sm:$0xff]  }
0x1495   :  { %v3114_v49 = vmul.f32 0.9, %v3065_v20  ;;  %4401 = vmatprep.subr.bf16.mxu0 %v3142_v45  ;;  %4468 = vmatprep.subr.bf16.mxu1 %v3142_v45  ;;  %v3129_v60 = vadd.f32 %v3113_v21, %v5189_v14 }
0x1496   :  { %v3132_v27 = vadd.f32 %v3116_v16, %v5180_v26 }
0x1497   :  { %v3130_v28 = vadd.f32 %v3114_v49, %v5186_v24 }
0x1498   :  { %v3144_v59 = vpack.c.bf16 %v3132_v27, %v3131_v12  ;;  %4402 = vmatpush3.bf16.msra.mxu0 %v3142_v45  ;;  %4476 = vmatpush3.bf16.msra.mxu1 %v3142_v45  ;;  %v4518_v45 = vld [vmem:[#allocation2 + $0x30] sm:$0xff]  }
0x1499   :  { %v3143_v1 = vpack.c.bf16 %v3130_v28, %v3129_v60  ;;  %v4393_v54 = vpop.f32.mrb[168].mxu0 }
0x149a   :  { %v3119_v2 = vmul.f32 0.9, %v4393_v54  ;;  %v3078_v61 = vpop.f32.mrb[169].mxu0 }
0x149b   :  { %v3117_v3 = vmul.f32 0.9, %v3078_v61  ;;  %v4394_v55 = vpop.f32.mrb[170].mxu0  ;;  %4403 = vmatprep.subr.bf16.mxu0 %v3143_v1  ;;  %4469 = vmatprep.subr.bf16.mxu1 %v3143_v1 }
0x149c   :  { %v3120_v31 = vmul.f32 0.9, %v4394_v55  ;;  %v3081_v7 = vpop.f32.mrb[171].mxu0  ;;  %4404 = vmatpush3.bf16.msra.mxu0 %v3143_v1  ;;  %4477 = vmatpush3.bf16.msra.mxu1 %v3143_v1  ;;  %v3135_v39 = vadd.f32 %v3119_v2, %v5199_v29 }
0x149d   :  { %v3118_v40 = vmul.f32 0.9, %v3081_v7  ;;  %4405 = vmatprep.subr.bf16.mxu0 %v3144_v59  ;;  %4470 = vmatprep.subr.bf16.mxu1 %v3144_v59  ;;  %v3133_v46 = vadd.f32 %v3117_v3, %v5205_v47 }
0x149e   :  { %v3136_v43 = vadd.f32 %v3120_v31, %v5196_v32 }
0x149f   :  { %v3134_v62 = vadd.f32 %v3118_v40, %v5202_v22 }
0x14a0   :  { %v3146_v30 = vpack.c.bf16 %v3136_v43, %v3135_v39  ;;  %4406 = vmatpush3.bf16.msra.mxu0 %v3144_v59  ;;  %4478 = vmatpush3.bf16.msra.mxu1 %v3144_v59 }
0x14a1   :  { %v3145_v35 = vpack.c.bf16 %v3134_v62, %v3133_v46  ;;  %v4397_v53 = vpop.f32.mrb[172].mxu0 }
0x14a2   :  { %v3123_v33 = vmul.f32 0.9, %v4397_v53  ;;  %v3094_v5 = vpop.f32.mrb[173].mxu0 }
0x14a3   :  { %v3121_v34 = vmul.f32 0.9, %v3094_v5  ;;  %v4398_v6 = vpop.f32.mrb[174].mxu0  ;;  %4407 = vmatprep.subr.bf16.mxu0 %v3145_v35  ;;  %4471 = vmatprep.subr.bf16.mxu1 %v3145_v35 }
0x14a4   :  { %v3124_v8 = vmul.f32 0.9, %v4398_v6  ;;  %v3097_v50 = vpop.f32.mrb[175].mxu0  ;;  %4408 = vmatpush3.bf16.msra.mxu0 %v3145_v35  ;;  %4479 = vmatpush3.bf16.msra.mxu1 %v3145_v35  ;;  %v3139_v11 = vadd.f32 %v3123_v33, %v5215_v18 }
0x14a5   :  { %v3122_v9 = vmul.f32 0.9, %v3097_v50  ;;  %4409 = vmatprep.subr.bf16.mxu0 %v3146_v30  ;;  %4472 = vmatprep.subr.bf16.mxu1 %v3146_v30  ;;  %v3137_v51 = vadd.f32 %v3121_v34, %v5221_v25 }
0x14a6   :  { %v3140_v42 = vadd.f32 %v3124_v8, %v5212_v15 }
0x14a7   :  { %v3138_v36 = vadd.f32 %v3122_v9, %v5218_v57 }
0x14a8   :  { %v3148_v41 = vpack.c.bf16 %v3140_v42, %v3139_v11  ;;  %4410 = vmatpush3.bf16.msra.mxu0 %v3146_v30  ;;  %4480 = vmatpush3.bf16.msra.mxu1 %v3146_v30 }
0x14a9   :  { %v3147_v37 = vpack.c.bf16 %v3138_v36, %v3137_v51 }
0x14ab   :  { %4411 = vmatprep.subr.bf16.mxu0 %v3147_v37  ;;  %4473 = vmatprep.subr.bf16.mxu1 %v3147_v37 }
0x14ac   :  { %4412 = vmatpush3.bf16.msra.mxu0 %v3147_v37  ;;  %4481 = vmatpush3.bf16.msra.mxu1 %v3147_v37 }
0x14ad   :  { %4413 = vmatprep.subr.bf16.mxu0 %v3148_v41  ;;  %4474 = vmatprep.subr.bf16.mxu1 %v3148_v41 }
0x14b0   :  { %4414 = vmatpush3.bf16.msra.mxu0 %v3148_v41  ;;  %4482 = vmatpush3.bf16.msra.mxu1 %v3148_v41 }
0x14b3   :  { %4416 = vmatmul.mubr.bf16.vlgmr.msra.gmra.mrb[176].mxu0 %v4514_v38  ;;  %4420 = vmatmul.mubr.bf16.vlgmr.msra.gmra.mrb[160].mxu1 %v4515_v10 }
0x14b4   :  { %4423 = vmatprep.mubr.bf16.mxu1 %v4516_v63 }
0x14bb   :  { %4424 = vmatmul.mubr.bf16.gmra.mrb[164].mxu1 %v4517_v13 }
0x14bc   :  { %4427 = vmatprep.mubr.bf16.mxu1 %v4518_v45 }
0x14c3   :  { %4428 = vmatmul.mubr.bf16.gmra.mrb[168].mxu1 %v4519_v0 }
0x1586   :  { %v4417_v56 = vpop.f32.mrb[176].mxu0  ;;  %v4421_v19 = vpop.f32.mrb[160].mxu1 }
0x1587   :  { %v3248_v23 = vmul.f32 0.9, %v4417_v56  ;;  %v3252_v21 = vmul.f32 0.9, %v4421_v19  ;;  %v3183_v4 = vpop.f32.mrb[177].mxu0  ;;  %v3199_v16 = vpop.f32.mrb[161].mxu1 }
0x1588   :  { %v3246_v20 = vmul.f32 0.9, %v3183_v4  ;;  %v3250_v49 = vmul.f32 0.9, %v3199_v16  ;;  %v4418_v12 = vpop.f32.mrb[178].mxu0  ;;  %v4422_v27 = vpop.f32.mrb[162].mxu1 }
0x1589   :  { %v3264_v60 = vadd.f32 %v3248_v23, %v5167_v44  ;;  %v3268_v28 = vadd.f32 %v3252_v21, %v5183_v52  ;;  %v3249_v59 = vmul.f32 0.9, %v4418_v12  ;;  %v3253_v1 = vmul.f32 0.9, %v4422_v27  ;;  %v3186_v54 = vpop.f32.mrb[179].mxu0  ;;  %v3202_v2 = vpop.f32.mrb[163].mxu1 }
0x158a   :  { %v3262_v61 = vadd.f32 %v3246_v20, %v5173_v48  ;;  %v3266_v3 = vadd.f32 %v3250_v49, %v5189_v14  ;;  %v3247_v55 = vmul.f32 0.9, %v3186_v54  ;;  %v3251_v31 = vmul.f32 0.9, %v3202_v2 }
0x158b   :  { %3280 = vst [vmem:[#allocation5 + $0x10] sm:$0xff] %v3264_v60  ;;  %3284 = vst [vmem:[#allocation5 + $0x30] sm:$0xff] %v3268_v28  ;;  %v3265_v7 = vadd.f32 %v3249_v59, %v5165_v58  ;;  %v3269_v40 = vadd.f32 %v3253_v1, %v5180_v26 }
0x158c   :  { %3278 = vst [vmem:[#allocation5] sm:$0xff] %v3262_v61  ;;  %3282 = vst [vmem:[#allocation5 + $0x20] sm:$0xff] %v3266_v3  ;;  %v3263_v44 = vadd.f32 %v3247_v55, %v5170_v17  ;;  %v3267_v52 = vadd.f32 %v3251_v31, %v5186_v24 }
0x158d   :  { %3281 = vst [vmem:[#allocation5 + $0x18] sm:$0xff] %v3265_v7  ;;  %3285 = vst [vmem:[#allocation5 + $0x38] sm:$0xff] %v3269_v40 }
0x158e   :  { %3279 = vst [vmem:[#allocation5 + $0x8] sm:$0xff] %v3263_v44  ;;  %3283 = vst [vmem:[#allocation5 + $0x28] sm:$0xff] %v3267_v52  ;;  %v4425_v48 = vpop.f32.mrb[164].mxu1 }
0x158f   :  { %v3256_v14 = vmul.f32 0.9, %v4425_v48  ;;  %v3215_v39 = vpop.f32.mrb[165].mxu1 }
0x1590   :  { %v3254_v43 = vmul.f32 0.9, %v3215_v39  ;;  %v4426_v46 = vpop.f32.mrb[166].mxu1 }
0x1591   :  { %v3272_v62 = vadd.f32 %v3256_v14, %v5199_v29  ;;  %v3257_v58 = vmul.f32 0.9, %v4426_v46  ;;  %v3218_v30 = vpop.f32.mrb[167].mxu1 }
0x1592   :  { %v3270_v26 = vadd.f32 %v3254_v43, %v5205_v47  ;;  %v3255_v35 = vmul.f32 0.9, %v3218_v30 }
0x1593   :  { %3288 = vst [vmem:[#allocation5 + $0x50] sm:$0xff] %v3272_v62  ;;  %v3273_v17 = vadd.f32 %v3257_v58, %v5196_v32 }
0x1594   :  { %3286 = vst [vmem:[#allocation5 + $0x40] sm:$0xff] %v3270_v26  ;;  %v3271_v24 = vadd.f32 %v3255_v35, %v5202_v22 }
0x1595   :  { %3289 = vst [vmem:[#allocation5 + $0x58] sm:$0xff] %v3273_v17 }
0x1596   :  { %3287 = vst [vmem:[#allocation5 + $0x48] sm:$0xff] %v3271_v24  ;;  %v4429_v53 = vpop.f32.mrb[168].mxu1 }
0x1597   :  { %v3260_v33 = vmul.f32 0.9, %v4429_v53  ;;  %v3231_v5 = vpop.f32.mrb[169].mxu1 }
0x1598   :  { %v3258_v34 = vmul.f32 0.9, %v3231_v5  ;;  %v4430_v6 = vpop.f32.mrb[170].mxu1 }
0x1599   :  { %v3276_v29 = vadd.f32 %v3260_v33, %v5215_v18  ;;  %v3261_v8 = vmul.f32 0.9, %v4430_v6  ;;  %v3234_v47 = vpop.f32.mrb[171].mxu1 }
0x159a   :  { %v3274_v50 = vadd.f32 %v3258_v34, %v5221_v25  ;;  %v3259_v9 = vmul.f32 0.9, %v3234_v47 }
0x159b   :  { %3292 = vst [vmem:[#allocation5 + $0x70] sm:$0xff] %v3276_v29  ;;  %v3277_v32 = vadd.f32 %v3261_v8, %v5212_v15 }
0x159c   :  { %3290 = vst [vmem:[#allocation5 + $0x60] sm:$0xff] %v3274_v50  ;;  %v3275_v22 = vadd.f32 %v3259_v9, %v5218_v57 }
0x159d   :  { %3293 = vst [vmem:[#allocation5 + $0x78] sm:$0xff] %v3277_v32 }
0x159e   :  { %3291 = vst [vmem:[#allocation5 + $0x68] sm:$0xff] %v3275_v22 }
0x159f   :  { %4553 = shalt.err (!%p4550_p12)
}
0x15a0   :  { %s4554_s28 = scalar_lea.hbm %s5468_s6, 2048 }
0x15a1   :  { %p4555_p13 = scmp.ne.s32.totalorder %s5468_s6, %s4554_s28  ;;  %p4558_p0 = scmp.lt.u32.totalorder %s4554_s28, %s5468_s6 }
0x15a3   :  { %p4560_p1 = pnand %p4558_p0, %p4555_p13 }
0x15a5   :  { %4563 = shalt.err (!%p4560_p1)
}
0x15a6   :  { %s4572_s9 = smov 128   ;;  %s4573_s10 = smov 8  }
0x15a7   :  { %3305 = dma.vmem_to_hbm [thread:$0]  %s3300_s24, 2048, %s5468_s6, [#allocation4], %s4572_s9, %s4572_s9, %s4573_s10  }
0x15a8   :  { %4566 = dma.done.wait [#allocation4], 2048  }
0x15a9   :  { %4567 = vsyncadd [#allocation4], 4294965248 }
0x15aa   :  { %3309 = vsyncpa [#allocation3], 1 }
0x15ab   :  { %3310 = vsyncpa [#allocation4], 1 }

</bundles_post_ra>
